<compile_context>
chip_gen: v5e
topology: v5e:2x2
jax: 0.10.0
libtpu: 0.0.40
codegen_flags: <defaults>
</compile_context>

<pallas_src>
import functools
import math

import jax
import jax.numpy as jnp
from jax.experimental import pallas as pl
from jax.experimental.pallas import tpu as pltpu

_MM_DTYPE = jnp.bfloat16            # MXU operand dtype (state / gate math f32)
_LANE = 128
_VMEM_LIMIT_BYTES = 48 * 1024 * 1024   # scoped VMEM limit (<= v7x 64 MiB physical)
_VMEM_TILE_BUDGET = 36 * 1024 * 1024   # budget used when sizing activation tiles


# --------------------------------------------------------------------------- #
# Small helpers
# --------------------------------------------------------------------------- #
def _round_up(n, m):
    return -(-n // m) * m


def _pick_tile(n, quantum, max_tile):
    """Largest multiple of `quantum` that divides n and is <= max_tile."""
    assert n % quantum == 0, (n, quantum)
    t = min(n, max_tile)
    t -= t % quantum
    t = max(t, quantum)
    while n % t:
        t -= quantum
    return t


def _pad_last_gatewise(w, h, hp):
    """Pad trailing 4*h gate axis to 4*hp, gate block by gate block (i,f,g,o)."""
    if h == hp:
        return w
    lead = w.shape[:-1]
    w4 = w.reshape(lead + (4, h))
    pad = [(0, 0)] * len(lead) + [(0, 0), (0, hp - h)]
    return jnp.pad(w4, pad).reshape(lead + (4 * hp,))


def _pad_rows(w, r, rp):
    if r == rp:
        return w
    return jnp.pad(w, ((0, rp - r),) + ((0, 0),) * (w.ndim - 1))


def _choose_recurrence_tiles(B, T, H, P):
    """(b_tile, t_chunk) sized against the VMEM budget.

    Large b_tile fills the MXU M dim of the per-step (b_tile,H)@(H,4H) matmul;
    large t_chunk amortizes per-grid-step overhead and the Wh load/cast.
    """
    b_tile = min(_round_up(B, 8), 256)
    t_chunk = min(_round_up(T, 8), 32)

    def fits(tc, bt):
        gx = 2 * tc * bt * 4 * H * 2                     # bf16 gx block, double-buffered
        out = 2 * tc * bt * P * 4                        # output block (worst-case f32)
        wts = 2 * (H * 4 * H + H * P) * 2 + 2 * P * 4    # wh + proj_w (bf16) + proj_b
        scr = 2 * bt * H * 4 + tc * bt * H * 2           # h/c f32 + bf16 chunk history
        return gx + out + wts + scr <= _VMEM_TILE_BUDGET

    while t_chunk > 8 and not fits(t_chunk, b_tile):
        t_chunk -= 8
    while b_tile > 8 and not fits(t_chunk, b_tile):
        b_tile -= 8
    return b_tile, t_chunk


# --------------------------------------------------------------------------- #
# Hoisted input projection: gx = X @ W + b (row + lane tiled, bf16 output).
# --------------------------------------------------------------------------- #
def _proj_kernel(x_ref, w_ref, b_ref, o_ref):
    o_ref[...] = (jnp.dot(x_ref[...].astype(_MM_DTYPE), w_ref[...],
                          preferred_element_type=jnp.float32)
                  + b_ref[...]).astype(o_ref.dtype)


def input_projection_pallas(x2d, w, b):
    """x2d: (N, Fin) f32; w: (Fin, Fout) bf16; b: (1, Fout) f32 -> (N, Fout) bf16."""
    N, Fin = x2d.shape
    Fout = w.shape[1]
    tn = _pick_tile(N, 8, 256)
    ft = _pick_tile(Fout, _LANE, 512)
    return pl.pallas_call(
        _proj_kernel,
        out_shape=jax.ShapeDtypeStruct((N, Fout), _MM_DTYPE),
        grid_spec=pltpu.PrefetchScalarGridSpec(
            num_scalar_prefetch=0,
            grid=(N // tn, Fout // ft),
            in_specs=[
                pl.BlockSpec((tn, Fin), lambda i, j: (i, 0)),
                pl.BlockSpec((Fin, ft), lambda i, j: (0, j)),
                pl.BlockSpec((1, ft), lambda i, j: (0, j)),
            ],
            out_specs=pl.BlockSpec((tn, ft), lambda i, j: (i, j)),
        ),
        compiler_params=pltpu.CompilerParams(
            dimension_semantics=("parallel", "parallel"),
            vmem_limit_bytes=_VMEM_LIMIT_BYTES),
    )(x2d, w, b)


# --------------------------------------------------------------------------- #
# LSTM recurrence kernel.
#   grid = (batch tiles [parallel], time chunks [arbitrary]); per grid step a
#   chunk of timesteps is processed with h/c resident in VMEM scratch.  Only
#   gx[t] + h @ Wh remains per step (x projection already hoisted).  Optional
#   fused output projection (chunk-level matmul + single whole-block store).
# --------------------------------------------------------------------------- #
def _lstm_chunk(gx_ref, wh_ref, h_scr, c_scr, emit, unroll):
    t = pl.program_id(1)

    @pl.when(t == 0)
    def _():
        # init_hidden(): zero h and c for this batch tile.
        h_scr[...] = jnp.zeros_like(h_scr)
        c_scr[...] = jnp.zeros_like(c_scr)

    H = h_scr.shape[-1]
    t_chunk = gx_ref.shape[0]
    wh = wh_ref[...].astype(_MM_DTYPE)          # (H, 4H) loaded once per chunk

    def step(k, h, c):
        gates = (gx_ref[k].astype(jnp.float32)
                 + jnp.dot(h.astype(_MM_DTYPE), wh,
                           preferred_element_type=jnp.float32))
        # PyTorch gate ordering i, f, g, o; slices are 128-lane aligned.
        i = jax.nn.sigmoid(gates[:, 0 * H:1 * H])
        f = jax.nn.sigmoid(gates[:, 1 * H:2 * H])
        g = jnp.tanh(gates[:, 2 * H:3 * H])
        o = jax.nn.sigmoid(gates[:, 3 * H:4 * H])
        c = f * c + i * g
        h = o * jnp.tanh(c)
        emit(k, h)
        return h, c

    h, c = h_scr[...], c_scr[...]
    if unroll:                                   # small chunks: static unroll
        for k in range(t_chunk):
            h, c = step(k, h, c)
    else:                                        # large tiles: bounded live ranges
        h, c = jax.lax.fori_loop(0, t_chunk, lambda k, hc: step(k, *hc), (h, c))
    h_scr[...] = h
    c_scr[...] = c


def _lstm_kernel(gx_ref, wh_ref, out_ref, h_scr, c_scr, *, unroll):
    def emit(k, h):
        out_ref[k] = h.astype(out_ref.dtype)
    _lstm_chunk(gx_ref, wh_ref, h_scr, c_scr, emit, unroll)


def _lstm_proj_kernel(gx_ref, wh_ref, pw_ref, pb_ref, out_ref,
                      h_scr, c_scr, hs_scr, *, unroll):
    def emit(k, h):
        hs_scr[k] = h.astype(hs_scr.dtype)       # bf16 chunk history

    _lstm_chunk(gx_ref, wh_ref, h_scr, c_scr, emit, unroll)

    # Fused output-projection epilogue: one chunk-level matmul + one
    # whole-block lane-dense store.
    TC, TB, H = hs_scr.shape
    proj = (jnp.dot(hs_scr[...].reshape(TC * TB, H), pw_ref[...],
                    preferred_element_type=jnp.float32)
            + pb_ref[...])
    out_ref[...] = proj.reshape(TC, TB, -1).astype(out_ref.dtype)


def lstm_recurrence_pallas(gates_x, wh, proj_w=None, proj_b=None, *,
                           t_chunk, b_tile, out_dtype, unroll):
    """gates_x: (Tp, Bp, 4H) bf16 (already x@Wx + b); wh: (H, 4H) bf16.

    Optional fused output projection proj_w: (H, P) bf16, proj_b: (1, P) f32.
    Returns (Tp, Bp, P) in out_dtype, with P = H if no projection.
    """
    Tp, Bp, G = gates_x.shape
    H = wh.shape[0]
    assert G == 4 * H
    assert Tp % t_chunk == 0 and Bp % b_tile == 0 and b_tile % 8 == 0
    nb, nt = Bp // b_tile, Tp // t_chunk
    P = H if proj_w is None else proj_w.shape[1]

    gx_spec = pl.BlockSpec((t_chunk, b_tile, 4 * H), lambda b, t: (t, b, 0))
    wh_spec = pl.BlockSpec((H, 4 * H), lambda b, t: (0, 0))
    out_spec = pl.BlockSpec((t_chunk, b_tile, P), lambda b, t: (t, b, 0))
    scratch = [pltpu.VMEM((b_tile, H), jnp.float32),      # h state
               pltpu.VMEM((b_tile, H), jnp.float32)]      # c state

    if proj_w is None:
        kernel = functools.partial(_lstm_kernel, unroll=unroll)
        in_specs = [gx_spec, wh_spec]
        args = (gates_x, wh)
    else:
        kernel = functools.partial(_lstm_proj_kernel, unroll=unroll)
        in_specs = [gx_spec, wh_spec,
                    pl.BlockSpec((H, P), lambda b, t: (0, 0)),
                    pl.BlockSpec((1, P), lambda b, t: (0, 0))]
        args = (gates_x, wh, proj_w, proj_b)
        scratch = scratch + [pltpu.VMEM((t_chunk, b_tile, H), _MM_DTYPE)]

    return pl.pallas_call(
        kernel,
        out_shape=jax.ShapeDtypeStruct((Tp, Bp, P), out_dtype),
        grid_spec=pltpu.PrefetchScalarGridSpec(
            num_scalar_prefetch=0,
            grid=(nb, nt),
            in_specs=in_specs,
            out_specs=out_spec,
            scratch_shapes=scratch),
        # Batch tiles independent (shards across v7x's 2 TensorCores when
        # nb >= 2); time is sequential (h/c carried in scratch).
        compiler_params=pltpu.CompilerParams(
            dimension_semantics=("parallel", "arbitrary"),
            vmem_limit_bytes=_VMEM_LIMIT_BYTES),
    )(*args)


# --------------------------------------------------------------------------- #
# Parameter init (PyTorch-style uniform(-1/sqrt(H), 1/sqrt(H)); LSTM biases
# drawn as b_ih + b_hh so the distribution matches their sum).
# --------------------------------------------------------------------------- #
def init_multi_lstm_seq_params(key, in_feat, enc_hidden, dec_hidden):
    ks = jax.random.split(key, 12)

    def u(k, shape, bound):
        return jax.random.uniform(k, shape, jnp.float32, -bound, bound)

    eb = 1.0 / math.sqrt(enc_hidden)
    db = 1.0 / math.sqrt(dec_hidden)
    lb = 1.0 / math.sqrt(enc_hidden)
    return {
        "enc_wx": u(ks[0], (in_feat, 4 * enc_hidden), eb),
        "enc_wh": u(ks[1], (enc_hidden, 4 * enc_hidden), eb),
        "enc_b":  u(ks[2], (1, 4 * enc_hidden), eb) + u(ks[3], (1, 4 * enc_hidden), eb),
        "trans_w": u(ks[4], (enc_hidden, dec_hidden), lb),
        "trans_b": u(ks[5], (1, dec_hidden), lb),
        "dec_wx": u(ks[6], (dec_hidden, 4 * dec_hidden), db),
        "dec_wh": u(ks[7], (dec_hidden, 4 * dec_hidden), db),
        "dec_b":  u(ks[8], (1, 4 * dec_hidden), db) + u(ks[9], (1, 4 * dec_hidden), db),
    }


# --------------------------------------------------------------------------- #
# Forward pass mirroring MultiLSTMSeq.forward
# --------------------------------------------------------------------------- #
def multi_lstm_seq_forward(params, x_btf, doc_len=None):
    B, T, F = x_btf.shape
    He = params["enc_wh"].shape[0]
    Hd = params["dec_wh"].shape[0]
    Hep = _round_up(He, _LANE)
    Hdp = _round_up(Hd, _LANE)

    # --- eval-mode fusion: trans_linear (+ identity dropout) folded into the
    #     decoder's input projection, applied as the encoder kernel epilogue:
    #     gx_dec = h_enc @ (trans_w @ dec_wx) + (trans_b @ dec_wx + dec_b)
    if He != Hd:
        w_fold = params["trans_w"] @ params["dec_wx"]
        b_fold = params["trans_b"] @ params["dec_wx"] + params["dec_b"]
    else:  # PyTorch skips trans_linear when feature_len matches
        w_fold = params["dec_wx"]
        b_fold = params["dec_b"]
    # TODO(synk): training-mode nn.Dropout (mask + 1/(1-p) scale) not applied;
    # the trans_w @ dec_wx folding is only valid while dropout is identity.

    # --- lane-pad hidden dims to multiples of 128 (gate-block-wise zero
    #     padding keeps padded h/c lanes exactly zero through the recurrence).
    enc_wx = _pad_last_gatewise(params["enc_wx"], He, Hep).astype(_MM_DTYPE)
    enc_wh = _pad_rows(_pad_last_gatewise(params["enc_wh"], He, Hep),
                       He, Hep).astype(_MM_DTYPE)
    enc_b = _pad_last_gatewise(params["enc_b"], He, Hep)
    w_fold_p = _pad_rows(_pad_last_gatewise(w_fold, Hd, Hdp),
                         He, Hep).astype(_MM_DTYPE)
    b_fold_p = _pad_last_gatewise(b_fold, Hd, Hdp)
    dec_wh = _pad_rows(_pad_last_gatewise(params["dec_wh"], Hd, Hdp),
                       Hd, Hdp).astype(_MM_DTYPE)

    # --- tile sizes against an explicit VMEM budget; pad batch / time.
    b_tile, t_chunk = _choose_recurrence_tiles(B, T, max(Hep, Hdp), 4 * Hdp)
    Bp = _round_up(B, b_tile)
    Tp = _round_up(T, t_chunk)
    unroll = t_chunk <= 8

    # Single layout pass on the raw input; everything downstream is time-major.
    x_tbf = jnp.transpose(x_btf, (1, 0, 2))                     # (T, B, F)
    x_tbf = jnp.pad(x_tbf, ((0, Tp - T), (0, Bp - B), (0, 0)))

    # --- encoder: hoisted input projection (bf16 gx) + chunked recurrence
    #     whose fused epilogue emits the decoder gate inputs directly.
    gx_enc = input_projection_pallas(
        x_tbf.reshape(Tp * Bp, F), enc_wx, enc_b).reshape(Tp, Bp, 4 * Hep)
    gx_dec = lstm_recurrence_pallas(
        gx_enc, enc_wh, proj_w=w_fold_p, proj_b=b_fold_p,
        t_chunk=t_chunk, b_tile=b_tile, out_dtype=_MM_DTYPE,
        unroll=unroll)                                          # (Tp, Bp, 4Hdp)

    # --- decoder recurrence.
    dec = lstm_recurrence_pallas(
        gx_dec, dec_wh, t_chunk=t_chunk, b_tile=b_tile,
        out_dtype=jnp.float32, unroll=unroll)                   # (Tp, Bp, Hdp)

    # TODO(synk): doc_len packed-sequence masking and LSTMEncoder/LSTMDecoder
    # internals (encoder.attention) are not defined in the provided source;
    # the decoder runs as a plain LSTM over the full (causally padded) sequence.
    return jnp.transpose(dec[:T, :B, :Hd], (1, 0, 2))           # (B, T, Hd)


if __name__ == "__main__":
    B, T, F_IN = 2, 8, 16
    ENC_H, DEC_H = 32, 48   # different -> exercises the folded trans_linear path

    key = jax.random.PRNGKey(0)
    k_x, k_p = jax.random.split(key)
    x = jax.random.normal(k_x, (B, T, F_IN), dtype=jnp.float32)
    doc_len = jnp.full((B,), T, dtype=jnp.int32)
    params = init_multi_lstm_seq_params(k_p, F_IN, ENC_H, DEC_H)

    fwd = jax.jit(multi_lstm_seq_forward)
    out = jax.block_until_ready(fwd(params, x, doc_len))
    assert out.shape == (B, T, DEC_H), out.shape
    assert bool(jnp.isfinite(out).all())
    print("KERNEL_OK")
</pallas_src>

<mosaic_0001>
module attributes {stable_mosaic.version = 11 : i64} {
  func.func @_proj_kernel(%arg0: i32, %arg1: i32, %arg2: memref<64x16xf32, #tpu.memory_space<vmem>>, %arg3: memref<16x512xbf16, #tpu.memory_space<vmem>>, %arg4: memref<1x512xf32, #tpu.memory_space<vmem>>, %arg5: memref<64x512xbf16, #tpu.memory_space<vmem>>) attributes {dimension_semantics = [#tpu.dimension_semantics<parallel>, #tpu.dimension_semantics<parallel>], iteration_bounds = array<i64: 1, 1>, scalar_prefetch = 0 : i64, scratch_operands = 0 : i64, tpu.core_type = #tpu.core_type<tc>, window_params = [{transform_indices = @transform_0, window_bounds = array<i64: 64, 16>}, {transform_indices = @transform_1, window_bounds = array<i64: 16, 512>}, {transform_indices = @transform_2, window_bounds = array<i64: 1, 512>}, {transform_indices = @transform_3, window_bounds = array<i64: 64, 512>}]} {
    %c0 = arith.constant 0 : index
    %c0_0 = arith.constant 0 : index
    %0 = vector.load %arg2[%c0, %c0_0] : memref<64x16xf32, #tpu.memory_space<vmem>>, vector<64x16xf32>
    %1 = arith.truncf %0 : vector<64x16xf32> to vector<64x16xbf16>
    %c0_1 = arith.constant 0 : index
    %c0_2 = arith.constant 0 : index
    %2 = vector.load %arg3[%c0_1, %c0_2] : memref<16x512xbf16, #tpu.memory_space<vmem>>, vector<16x512xbf16>
    %cst = arith.constant dense<0.000000e+00> : vector<64x512xf32>
    %3 = tpu.matmul %1, %2, %cst {dimension_numbers = #tpu.dot_dimension_numbers<[1], [0], [0], [1], [0, 0, 1, 1], [], []>} : vector<64x16xbf16>, vector<16x512xbf16>, vector<64x512xf32> -> vector<64x512xf32>
    %c0_3 = arith.constant 0 : index
    %c0_4 = arith.constant 0 : index
    %4 = vector.load %arg4[%c0_3, %c0_4] : memref<1x512xf32, #tpu.memory_space<vmem>>, vector<1x512xf32>
    %5 = vector.broadcast %4 : vector<1x512xf32> to vector<64x512xf32>
    %6 = arith.addf %3, %5 : vector<64x512xf32>
    %7 = arith.truncf %6 : vector<64x512xf32> to vector<64x512xbf16>
    %c0_5 = arith.constant 0 : index
    %c0_6 = arith.constant 0 : index
    %8 = vector.load %arg5[%c0_5, %c0_6] : memref<64x512xbf16, #tpu.memory_space<vmem>>, vector<64x512xbf16>
    tpu.vector_store %arg5[%c0_5, %c0_6], %7 {strides = array<i32>} : memref<64x512xbf16, #tpu.memory_space<vmem>>, vector<64x512xbf16>,
    return
  }
  func.func @transform_0(%arg0: i32, %arg1: i32) -> (i32, i32) {
    %c0_i32 = arith.constant 0 : i32
    %c0_i32_0 = arith.constant 0 : i32
    return %arg0, %c0_i32 : i32, i32
  }
  func.func @transform_1(%arg0: i32, %arg1: i32) -> (i32, i32) {
    %c0_i32 = arith.constant 0 : i32
    %c0_i32_0 = arith.constant 0 : i32
    return %c0_i32, %arg1 : i32, i32
  }
  func.func @transform_2(%arg0: i32, %arg1: i32) -> (i32, i32) {
    %c0_i32 = arith.constant 0 : i32
    %c0_i32_0 = arith.constant 0 : i32
    return %c0_i32, %arg1 : i32, i32
  }
  func.func @transform_3(%arg0: i32, %arg1: i32) -> (i32, i32) {
    %c0_i32 = arith.constant 0 : i32
    return %arg0, %arg1 : i32, i32
  }
}

module attributes {stable_mosaic.version = 11 : i64} {
  func.func @_lstm_proj_kernel(%arg0: i32, %arg1: i32, %arg2: memref<8x8x512xbf16, #tpu.memory_space<vmem>>, %arg3: memref<128x512xbf16, #tpu.memory_space<vmem>>, %arg4: memref<128x512xbf16, #tpu.memory_space<vmem>>, %arg5: memref<1x512xf32, #tpu.memory_space<vmem>>, %arg6: memref<8x8x512xbf16, #tpu.memory_space<vmem>>, %arg7: memref<8x128xf32, #tpu.memory_space<vmem>>, %arg8: memref<8x128xf32, #tpu.memory_space<vmem>>, %arg9: memref<8x8x128xbf16, #tpu.memory_space<vmem>>) attributes {dimension_semantics = [#tpu.dimension_semantics<parallel>, #tpu.dimension_semantics<arbitrary>], iteration_bounds = array<i64: 1, 1>, scalar_prefetch = 0 : i64, scratch_operands = 3 : i64, tpu.core_type = #tpu.core_type<tc>, window_params = [{transform_indices = @transform_0, window_bounds = array<i64: 8, 8, 512>}, {pipeline_mode = #tpu.pipeline_mode<synchronous>, transform_indices = @transform_1, window_bounds = array<i64: 128, 512>}, {pipeline_mode = #tpu.pipeline_mode<synchronous>, transform_indices = @transform_2, window_bounds = array<i64: 128, 512>}, {pipeline_mode = #tpu.pipeline_mode<synchronous>, transform_indices = @transform_3, window_bounds = array<i64: 1, 512>}, {transform_indices = @transform_4, window_bounds = array<i64: 8, 8, 512>}]} {
    %c0_i32 = arith.constant 0 : i32
    %0 = arith.cmpi eq, %arg1, %c0_i32 : i32
    %1 = arith.extui %0 : i1 to i32
    %c0_i32_0 = arith.constant 0 : i32
    %2 = arith.cmpi ne, %1, %c0_i32_0 : i32
    scf.if %2 {
      %cst_93 = arith.constant 0.000000e+00 : f32
      %298 = vector.broadcast %cst_93 : f32 to vector<8x128xf32>
      %c0_94 = arith.constant 0 : index
      %c0_95 = arith.constant 0 : index
      %299 = vector.load %arg7[%c0_94, %c0_95] : memref<8x128xf32, #tpu.memory_space<vmem>>, vector<8x128xf32>
      tpu.vector_store %arg7[%c0_94, %c0_95], %298 {strides = array<i32>} : memref<8x128xf32, #tpu.memory_space<vmem>>, vector<8x128xf32>,
      %cst_96 = arith.constant 0.000000e+00 : f32
      %300 = vector.broadcast %cst_96 : f32 to vector<8x128xf32>
      %c0_97 = arith.constant 0 : index
      %c0_98 = arith.constant 0 : index
      %301 = vector.load %arg8[%c0_97, %c0_98] : memref<8x128xf32, #tpu.memory_space<vmem>>, vector<8x128xf32>
      tpu.vector_store %arg8[%c0_97, %c0_98], %300 {strides = array<i32>} : memref<8x128xf32, #tpu.memory_space<vmem>>, vector<8x128xf32>,
    } else {
    }
    %c0 = arith.constant 0 : index
    %c0_1 = arith.constant 0 : index
    %3 = vector.load %arg3[%c0, %c0_1] : memref<128x512xbf16, #tpu.memory_space<vmem>>, vector<128x512xbf16>
    %c0_2 = arith.constant 0 : index
    %c0_3 = arith.constant 0 : index
    %4 = vector.load %arg7[%c0_2, %c0_3] : memref<8x128xf32, #tpu.memory_space<vmem>>, vector<8x128xf32>
    %c0_4 = arith.constant 0 : index
    %c0_5 = arith.constant 0 : index
    %5 = vector.load %arg8[%c0_4, %c0_5] : memref<8x128xf32, #tpu.memory_space<vmem>>, vector<8x128xf32>
    %c0_6 = arith.constant 0 : index
    %c0_7 = arith.constant 0 : index
    %c0_8 = arith.constant 0 : index
    %6 = vector.load %arg2[%c0_6, %c0_7, %c0_8] : memref<8x8x512xbf16, #tpu.memory_space<vmem>>, vector<1x8x512xbf16>
    %7 = vector.shape_cast %6 : vector<1x8x512xbf16> to vector<8x512xbf16>
    %8 = arith.extf %7 : vector<8x512xbf16> to vector<8x512xf32>
    %9 = arith.truncf %4 : vector<8x128xf32> to vector<8x128xbf16>
    %cst = arith.constant dense<0.000000e+00> : vector<8x512xf32>
    %10 = tpu.matmul %9, %3, %cst {dimension_numbers = #tpu.dot_dimension_numbers<[1], [0], [0], [1], [0, 0, 1, 1], [], []>} : vector<8x128xbf16>, vector<128x512xbf16>, vector<8x512xf32> -> vector<8x512xf32>
    %11 = arith.addf %8, %10 : vector<8x512xf32>
    %12 = vector.extract_strided_slice %11 {offsets = [0, 0], sizes = [8, 128], strides = [1, 1]} : vector<8x512xf32> to vector<8x128xf32>
    %13 = arith.negf %12 : vector<8x128xf32>
    %14 = math.exp %13 : vector<8x128xf32>
    %cst_9 = arith.constant 1.000000e+00 : f32
    %15 = vector.broadcast %cst_9 : f32 to vector<8x128xf32>
    %16 = arith.addf %15, %14 : vector<8x128xf32>
    %17 = arith.divf %15, %16 : vector<8x128xf32>
    %18 = vector.extract_strided_slice %11 {offsets = [0, 128], sizes = [8, 128], strides = [1, 1]} : vector<8x512xf32> to vector<8x128xf32>
    %19 = arith.negf %18 : vector<8x128xf32>
    %20 = math.exp %19 : vector<8x128xf32>
    %cst_10 = arith.constant 1.000000e+00 : f32
    %21 = vector.broadcast %cst_10 : f32 to vector<8x128xf32>
    %22 = arith.addf %21, %20 : vector<8x128xf32>
    %23 = arith.divf %21, %22 : vector<8x128xf32>
    %24 = vector.extract_strided_slice %11 {offsets = [0, 256], sizes = [8, 128], strides = [1, 1]} : vector<8x512xf32> to vector<8x128xf32>
    %25 = math.tanh %24 : vector<8x128xf32>
    %26 = vector.extract_strided_slice %11 {offsets = [0, 384], sizes = [8, 128], strides = [1, 1]} : vector<8x512xf32> to vector<8x128xf32>
    %27 = arith.negf %26 : vector<8x128xf32>
    %28 = math.exp %27 : vector<8x128xf32>
    %cst_11 = arith.constant 1.000000e+00 : f32
    %29 = vector.broadcast %cst_11 : f32 to vector<8x128xf32>
    %30 = arith.addf %29, %28 : vector<8x128xf32>
    %31 = arith.divf %29, %30 : vector<8x128xf32>
    %32 = arith.mulf %23, %5 : vector<8x128xf32>
    %33 = arith.mulf %17, %25 : vector<8x128xf32>
    %34 = arith.addf %32, %33 : vector<8x128xf32>
    %35 = math.tanh %34 : vector<8x128xf32>
    %36 = arith.mulf %31, %35 : vector<8x128xf32>
    %37 = arith.truncf %36 : vector<8x128xf32> to vector<8x128xbf16>
    %c0_12 = arith.constant 0 : index
    %c0_13 = arith.constant 0 : index
    %c0_14 = arith.constant 0 : index
    %38 = vector.load %arg9[%c0_12, %c0_13, %c0_14] : memref<8x8x128xbf16, #tpu.memory_space<vmem>>, vector<1x8x128xbf16>
    %39 = vector.shape_cast %38 : vector<1x8x128xbf16> to vector<8x128xbf16>
    %40 = vector.shape_cast %37 : vector<8x128xbf16> to vector<1x8x128xbf16>
    tpu.vector_store %arg9[%c0_12, %c0_13, %c0_14], %40 {strides = array<i32>} : memref<8x8x128xbf16, #tpu.memory_space<vmem>>, vector<1x8x128xbf16>,
    %c1 = arith.constant 1 : index
    %c0_15 = arith.constant 0 : index
    %c0_16 = arith.constant 0 : index
    %41 = vector.load %arg2[%c1, %c0_15, %c0_16] : memref<8x8x512xbf16, #tpu.memory_space<vmem>>, vector<1x8x512xbf16>
    %42 = vector.shape_cast %41 : vector<1x8x512xbf16> to vector<8x512xbf16>
    %43 = arith.extf %42 : vector<8x512xbf16> to vector<8x512xf32>
    %44 = arith.truncf %36 : vector<8x128xf32> to vector<8x128xbf16>
    %cst_17 = arith.constant dense<0.000000e+00> : vector<8x512xf32>
    %45 = tpu.matmul %44, %3, %cst_17 {dimension_numbers = #tpu.dot_dimension_numbers<[1], [0], [0], [1], [0, 0, 1, 1], [], []>} : vector<8x128xbf16>, vector<128x512xbf16>, vector<8x512xf32> -> vector<8x512xf32>
    %46 = arith.addf %43, %45 : vector<8x512xf32>
    %47 = vector.extract_strided_slice %46 {offsets = [0, 0], sizes = [8, 128], strides = [1, 1]} : vector<8x512xf32> to vector<8x128xf32>
    %48 = arith.negf %47 : vector<8x128xf32>
    %49 = math.exp %48 : vector<8x128xf32>
    %cst_18 = arith.constant 1.000000e+00 : f32
    %50 = vector.broadcast %cst_18 : f32 to vector<8x128xf32>
    %51 = arith.addf %50, %49 : vector<8x128xf32>
    %52 = arith.divf %50, %51 : vector<8x128xf32>
    %53 = vector.extract_strided_slice %46 {offsets = [0, 128], sizes = [8, 128], strides = [1, 1]} : vector<8x512xf32> to vector<8x128xf32>
    %54 = arith.negf %53 : vector<8x128xf32>
    %55 = math.exp %54 : vector<8x128xf32>
    %cst_19 = arith.constant 1.000000e+00 : f32
    %56 = vector.broadcast %cst_19 : f32 to vector<8x128xf32>
    %57 = arith.addf %56, %55 : vector<8x128xf32>
    %58 = arith.divf %56, %57 : vector<8x128xf32>
    %59 = vector.extract_strided_slice %46 {offsets = [0, 256], sizes = [8, 128], strides = [1, 1]} : vector<8x512xf32> to vector<8x128xf32>
    %60 = math.tanh %59 : vector<8x128xf32>
    %61 = vector.extract_strided_slice %46 {offsets = [0, 384], sizes = [8, 128], strides = [1, 1]} : vector<8x512xf32> to vector<8x128xf32>
    %62 = arith.negf %61 : vector<8x128xf32>
    %63 = math.exp %62 : vector<8x128xf32>
    %cst_20 = arith.constant 1.000000e+00 : f32
    %64 = vector.broadcast %cst_20 : f32 to vector<8x128xf32>
    %65 = arith.addf %64, %63 : vector<8x128xf32>
    %66 = arith.divf %64, %65 : vector<8x128xf32>
    %67 = arith.mulf %58, %34 : vector<8x128xf32>
    %68 = arith.mulf %52, %60 : vector<8x128xf32>
    %69 = arith.addf %67, %68 : vector<8x128xf32>
    %70 = math.tanh %69 : vector<8x128xf32>
    %71 = arith.mulf %66, %70 : vector<8x128xf32>
    %72 = arith.truncf %71 : vector<8x128xf32> to vector<8x128xbf16>
    %c1_21 = arith.constant 1 : index
    %c0_22 = arith.constant 0 : index
    %c0_23 = arith.constant 0 : index
    %73 = vector.load %arg9[%c1_21, %c0_22, %c0_23] : memref<8x8x128xbf16, #tpu.memory_space<vmem>>, vector<1x8x128xbf16>
    %74 = vector.shape_cast %73 : vector<1x8x128xbf16> to vector<8x128xbf16>
    %75 = vector.shape_cast %72 : vector<8x128xbf16> to vector<1x8x128xbf16>
    tpu.vector_store %arg9[%c1_21, %c0_22, %c0_23], %75 {strides = array<i32>} : memref<8x8x128xbf16, #tpu.memory_space<vmem>>, vector<1x8x128xbf16>,
    %c2 = arith.constant 2 : index
    %c0_24 = arith.constant 0 : index
    %c0_25 = arith.constant 0 : index
    %76 = vector.load %arg2[%c2, %c0_24, %c0_25] : memref<8x8x512xbf16, #tpu.memory_space<vmem>>, vector<1x8x512xbf16>
    %77 = vector.shape_cast %76 : vector<1x8x512xbf16> to vector<8x512xbf16>
    %78 = arith.extf %77 : vector<8x512xbf16> to vector<8x512xf32>
    %79 = arith.truncf %71 : vector<8x128xf32> to vector<8x128xbf16>
    %cst_26 = arith.constant dense<0.000000e+00> : vector<8x512xf32>
    %80 = tpu.matmul %79, %3, %cst_26 {dimension_numbers = #tpu.dot_dimension_numbers<[1], [0], [0], [1], [0, 0, 1, 1], [], []>} : vector<8x128xbf16>, vector<128x512xbf16>, vector<8x512xf32> -> vector<8x512xf32>
    %81 = arith.addf %78, %80 : vector<8x512xf32>
    %82 = vector.extract_strided_slice %81 {offsets = [0, 0], sizes = [8, 128], strides = [1, 1]} : vector<8x512xf32> to vector<8x128xf32>
    %83 = arith.negf %82 : vector<8x128xf32>
    %84 = math.exp %83 : vector<8x128xf32>
    %cst_27 = arith.constant 1.000000e+00 : f32
    %85 = vector.broadcast %cst_27 : f32 to vector<8x128xf32>
    %86 = arith.addf %85, %84 : vector<8x128xf32>
    %87 = arith.divf %85, %86 : vector<8x128xf32>
    %88 = vector.extract_strided_slice %81 {offsets = [0, 128], sizes = [8, 128], strides = [1, 1]} : vector<8x512xf32> to vector<8x128xf32>
    %89 = arith.negf %88 : vector<8x128xf32>
    %90 = math.exp %89 : vector<8x128xf32>
    %cst_28 = arith.constant 1.000000e+00 : f32
    %91 = vector.broadcast %cst_28 : f32 to vector<8x128xf32>
    %92 = arith.addf %91, %90 : vector<8x128xf32>
    %93 = arith.divf %91, %92 : vector<8x128xf32>
    %94 = vector.extract_strided_slice %81 {offsets = [0, 256], sizes = [8, 128], strides = [1, 1]} : vector<8x512xf32> to vector<8x128xf32>
    %95 = math.tanh %94 : vector<8x128xf32>
    %96 = vector.extract_strided_slice %81 {offsets = [0, 384], sizes = [8, 128], strides = [1, 1]} : vector<8x512xf32> to vector<8x128xf32>
    %97 = arith.negf %96 : vector<8x128xf32>
    %98 = math.exp %97 : vector<8x128xf32>
    %cst_29 = arith.constant 1.000000e+00 : f32
    %99 = vector.broadcast %cst_29 : f32 to vector<8x128xf32>
    %100 = arith.addf %99, %98 : vector<8x128xf32>
    %101 = arith.divf %99, %100 : vector<8x128xf32>
    %102 = arith.mulf %93, %69 : vector<8x128xf32>
    %103 = arith.mulf %87, %95 : vector<8x128xf32>
    %104 = arith.addf %102, %103 : vector<8x128xf32>
    %105 = math.tanh %104 : vector<8x128xf32>
    %106 = arith.mulf %101, %105 : vector<8x128xf32>
    %107 = arith.truncf %106 : vector<8x128xf32> to vector<8x128xbf16>
    %c2_30 = arith.constant 2 : index
    %c0_31 = arith.constant 0 : index
    %c0_32 = arith.constant 0 : index
    %108 = vector.load %arg9[%c2_30, %c0_31, %c0_32] : memref<8x8x128xbf16, #tpu.memory_space<vmem>>, vector<1x8x128xbf16>
    %109 = vector.shape_cast %108 : vector<1x8x128xbf16> to vector<8x128xbf16>
    %110 = vector.shape_cast %107 : vector<8x128xbf16> to vector<1x8x128xbf16>
    tpu.vector_store %arg9[%c2_30, %c0_31, %c0_32], %110 {strides = array<i32>} : memref<8x8x128xbf16, #tpu.memory_space<vmem>>, vector<1x8x128xbf16>,
    %c3 = arith.constant 3 : index
    %c0_33 = arith.constant 0 : index
    %c0_34 = arith.constant 0 : index
    %111 = vector.load %arg2[%c3, %c0_33, %c0_34] : memref<8x8x512xbf16, #tpu.memory_space<vmem>>, vector<1x8x512xbf16>
    %112 = vector.shape_cast %111 : vector<1x8x512xbf16> to vector<8x512xbf16>
    %113 = arith.extf %112 : vector<8x512xbf16> to vector<8x512xf32>
    %114 = arith.truncf %106 : vector<8x128xf32> to vector<8x128xbf16>
    %cst_35 = arith.constant dense<0.000000e+00> : vector<8x512xf32>
    %115 = tpu.matmul %114, %3, %cst_35 {dimension_numbers = #tpu.dot_dimension_numbers<[1], [0], [0], [1], [0, 0, 1, 1], [], []>} : vector<8x128xbf16>, vector<128x512xbf16>, vector<8x512xf32> -> vector<8x512xf32>
    %116 = arith.addf %113, %115 : vector<8x512xf32>
    %117 = vector.extract_strided_slice %116 {offsets = [0, 0], sizes = [8, 128], strides = [1, 1]} : vector<8x512xf32> to vector<8x128xf32>
    %118 = arith.negf %117 : vector<8x128xf32>
    %119 = math.exp %118 : vector<8x128xf32>
    %cst_36 = arith.constant 1.000000e+00 : f32
    %120 = vector.broadcast %cst_36 : f32 to vector<8x128xf32>
    %121 = arith.addf %120, %119 : vector<8x128xf32>
    %122 = arith.divf %120, %121 : vector<8x128xf32>
    %123 = vector.extract_strided_slice %116 {offsets = [0, 128], sizes = [8, 128], strides = [1, 1]} : vector<8x512xf32> to vector<8x128xf32>
    %124 = arith.negf %123 : vector<8x128xf32>
    %125 = math.exp %124 : vector<8x128xf32>
    %cst_37 = arith.constant 1.000000e+00 : f32
    %126 = vector.broadcast %cst_37 : f32 to vector<8x128xf32>
    %127 = arith.addf %126, %125 : vector<8x128xf32>
    %128 = arith.divf %126, %127 : vector<8x128xf32>
    %129 = vector.extract_strided_slice %116 {offsets = [0, 256], sizes = [8, 128], strides = [1, 1]} : vector<8x512xf32> to vector<8x128xf32>
    %130 = math.tanh %129 : vector<8x128xf32>
    %131 = vector.extract_strided_slice %116 {offsets = [0, 384], sizes = [8, 128], strides = [1, 1]} : vector<8x512xf32> to vector<8x128xf32>
    %132 = arith.negf %131 : vector<8x128xf32>
    %133 = math.exp %132 : vector<8x128xf32>
    %cst_38 = arith.constant 1.000000e+00 : f32
    %134 = vector.broadcast %cst_38 : f32 to vector<8x128xf32>
    %135 = arith.addf %134, %133 : vector<8x128xf32>
    %136 = arith.divf %134, %135 : vector<8x128xf32>
    %137 = arith.mulf %128, %104 : vector<8x128xf32>
    %138 = arith.mulf %122, %130 : vector<8x128xf32>
    %139 = arith.addf %137, %138 : vector<8x128xf32>
    %140 = math.tanh %139 : vector<8x128xf32>
    %141 = arith.mulf %136, %140 : vector<8x128xf32>
    %142 = arith.truncf %141 : vector<8x128xf32> to vector<8x128xbf16>
    %c3_39 = arith.constant 3 : index
    %c0_40 = arith.constant 0 : index
    %c0_41 = arith.constant 0 : index
    %143 = vector.load %arg9[%c3_39, %c0_40, %c0_41] : memref<8x8x128xbf16, #tpu.memory_space<vmem>>, vector<1x8x128xbf16>
    %144 = vector.shape_cast %143 : vector<1x8x128xbf16> to vector<8x128xbf16>
    %145 = vector.shape_cast %142 : vector<8x128xbf16> to vector<1x8x128xbf16>
    tpu.vector_store %arg9[%c3_39, %c0_40, %c0_41], %145 {strides = array<i32>} : memref<8x8x128xbf16, #tpu.memory_space<vmem>>, vector<1x8x128xbf16>,
    %c4 = arith.constant 4 : index
    %c0_42 = arith.constant 0 : index
    %c0_43 = arith.constant 0 : index
    %146 = vector.load %arg2[%c4, %c0_42, %c0_43] : memref<8x8x512xbf16, #tpu.memory_space<vmem>>, vector<1x8x512xbf16>
    %147 = vector.shape_cast %146 : vector<1x8x512xbf16> to vector<8x512xbf16>
    %148 = arith.extf %147 : vector<8x512xbf16> to vector<8x512xf32>
    %149 = arith.truncf %141 : vector<8x128xf32> to vector<8x128xbf16>
    %cst_44 = arith.constant dense<0.000000e+00> : vector<8x512xf32>
    %150 = tpu.matmul %149, %3, %cst_44 {dimension_numbers = #tpu.dot_dimension_numbers<[1], [0], [0], [1], [0, 0, 1, 1], [], []>} : vector<8x128xbf16>, vector<128x512xbf16>, vector<8x512xf32> -> vector<8x512xf32>
    %151 = arith.addf %148, %150 : vector<8x512xf32>
    %152 = vector.extract_strided_slice %151 {offsets = [0, 0], sizes = [8, 128], strides = [1, 1]} : vector<8x512xf32> to vector<8x128xf32>
    %153 = arith.negf %152 : vector<8x128xf32>
    %154 = math.exp %153 : vector<8x128xf32>
    %cst_45 = arith.constant 1.000000e+00 : f32
    %155 = vector.broadcast %cst_45 : f32 to vector<8x128xf32>
    %156 = arith.addf %155, %154 : vector<8x128xf32>
    %157 = arith.divf %155, %156 : vector<8x128xf32>
    %158 = vector.extract_strided_slice %151 {offsets = [0, 128], sizes = [8, 128], strides = [1, 1]} : vector<8x512xf32> to vector<8x128xf32>
    %159 = arith.negf %158 : vector<8x128xf32>
    %160 = math.exp %159 : vector<8x128xf32>
    %cst_46 = arith.constant 1.000000e+00 : f32
    %161 = vector.broadcast %cst_46 : f32 to vector<8x128xf32>
    %162 = arith.addf %161, %160 : vector<8x128xf32>
    %163 = arith.divf %161, %162 : vector<8x128xf32>
    %164 = vector.extract_strided_slice %151 {offsets = [0, 256], sizes = [8, 128], strides = [1, 1]} : vector<8x512xf32> to vector<8x128xf32>
    %165 = math.tanh %164 : vector<8x128xf32>
    %166 = vector.extract_strided_slice %151 {offsets = [0, 384], sizes = [8, 128], strides = [1, 1]} : vector<8x512xf32> to vector<8x128xf32>
    %167 = arith.negf %166 : vector<8x128xf32>
    %168 = math.exp %167 : vector<8x128xf32>
    %cst_47 = arith.constant 1.000000e+00 : f32
    %169 = vector.broadcast %cst_47 : f32 to vector<8x128xf32>
    %170 = arith.addf %169, %168 : vector<8x128xf32>
    %171 = arith.divf %169, %170 : vector<8x128xf32>
    %172 = arith.mulf %163, %139 : vector<8x128xf32>
    %173 = arith.mulf %157, %165 : vector<8x128xf32>
    %174 = arith.addf %172, %173 : vector<8x128xf32>
    %175 = math.tanh %174 : vector<8x128xf32>
    %176 = arith.mulf %171, %175 : vector<8x128xf32>
    %177 = arith.truncf %176 : vector<8x128xf32> to vector<8x128xbf16>
    %c4_48 = arith.constant 4 : index
    %c0_49 = arith.constant 0 : index
    %c0_50 = arith.constant 0 : index
    %178 = vector.load %arg9[%c4_48, %c0_49, %c0_50] : memref<8x8x128xbf16, #tpu.memory_space<vmem>>, vector<1x8x128xbf16>
    %179 = vector.shape_cast %178 : vector<1x8x128xbf16> to vector<8x128xbf16>
    %180 = vector.shape_cast %177 : vector<8x128xbf16> to vector<1x8x128xbf16>
    tpu.vector_store %arg9[%c4_48, %c0_49, %c0_50], %180 {strides = array<i32>} : memref<8x8x128xbf16, #tpu.memory_space<vmem>>, vector<1x8x128xbf16>,
    %c5 = arith.constant 5 : index
    %c0_51 = arith.constant 0 : index
    %c0_52 = arith.constant 0 : index
    %181 = vector.load %arg2[%c5, %c0_51, %c0_52] : memref<8x8x512xbf16, #tpu.memory_space<vmem>>, vector<1x8x512xbf16>
    %182 = vector.shape_cast %181 : vector<1x8x512xbf16> to vector<8x512xbf16>
    %183 = arith.extf %182 : vector<8x512xbf16> to vector<8x512xf32>
    %184 = arith.truncf %176 : vector<8x128xf32> to vector<8x128xbf16>
    %cst_53 = arith.constant dense<0.000000e+00> : vector<8x512xf32>
    %185 = tpu.matmul %184, %3, %cst_53 {dimension_numbers = #tpu.dot_dimension_numbers<[1], [0], [0], [1], [0, 0, 1, 1], [], []>} : vector<8x128xbf16>, vector<128x512xbf16>, vector<8x512xf32> -> vector<8x512xf32>
    %186 = arith.addf %183, %185 : vector<8x512xf32>
    %187 = vector.extract_strided_slice %186 {offsets = [0, 0], sizes = [8, 128], strides = [1, 1]} : vector<8x512xf32> to vector<8x128xf32>
    %188 = arith.negf %187 : vector<8x128xf32>
    %189 = math.exp %188 : vector<8x128xf32>
    %cst_54 = arith.constant 1.000000e+00 : f32
    %190 = vector.broadcast %cst_54 : f32 to vector<8x128xf32>
    %191 = arith.addf %190, %189 : vector<8x128xf32>
    %192 = arith.divf %190, %191 : vector<8x128xf32>
    %193 = vector.extract_strided_slice %186 {offsets = [0, 128], sizes = [8, 128], strides = [1, 1]} : vector<8x512xf32> to vector<8x128xf32>
    %194 = arith.negf %193 : vector<8x128xf32>
    %195 = math.exp %194 : vector<8x128xf32>
    %cst_55 = arith.constant 1.000000e+00 : f32
    %196 = vector.broadcast %cst_55 : f32 to vector<8x128xf32>
    %197 = arith.addf %196, %195 : vector<8x128xf32>
    %198 = arith.divf %196, %197 : vector<8x128xf32>
    %199 = vector.extract_strided_slice %186 {offsets = [0, 256], sizes = [8, 128], strides = [1, 1]} : vector<8x512xf32> to vector<8x128xf32>
    %200 = math.tanh %199 : vector<8x128xf32>
    %201 = vector.extract_strided_slice %186 {offsets = [0, 384], sizes = [8, 128], strides = [1, 1]} : vector<8x512xf32> to vector<8x128xf32>
    %202 = arith.negf %201 : vector<8x128xf32>
    %203 = math.exp %202 : vector<8x128xf32>
    %cst_56 = arith.constant 1.000000e+00 : f32
    %204 = vector.broadcast %cst_56 : f32 to vector<8x128xf32>
    %205 = arith.addf %204, %203 : vector<8x128xf32>
    %206 = arith.divf %204, %205 : vector<8x128xf32>
    %207 = arith.mulf %198, %174 : vector<8x128xf32>
    %208 = arith.mulf %192, %200 : vector<8x128xf32>
    %209 = arith.addf %207, %208 : vector<8x128xf32>
    %210 = math.tanh %209 : vector<8x128xf32>
    %211 = arith.mulf %206, %210 : vector<8x128xf32>
    %212 = arith.truncf %211 : vector<8x128xf32> to vector<8x128xbf16>
    %c5_57 = arith.constant 5 : index
    %c0_58 = arith.constant 0 : index
    %c0_59 = arith.constant 0 : index
    %213 = vector.load %arg9[%c5_57, %c0_58, %c0_59] : memref<8x8x128xbf16, #tpu.memory_space<vmem>>, vector<1x8x128xbf16>
    %214 = vector.shape_cast %213 : vector<1x8x128xbf16> to vector<8x128xbf16>
    %215 = vector.shape_cast %212 : vector<8x128xbf16> to vector<1x8x128xbf16>
    tpu.vector_store %arg9[%c5_57, %c0_58, %c0_59], %215 {strides = array<i32>} : memref<8x8x128xbf16, #tpu.memory_space<vmem>>, vector<1x8x128xbf16>,
    %c6 = arith.constant 6 : index
    %c0_60 = arith.constant 0 : index
    %c0_61 = arith.constant 0 : index
    %216 = vector.load %arg2[%c6, %c0_60, %c0_61] : memref<8x8x512xbf16, #tpu.memory_space<vmem>>, vector<1x8x512xbf16>
    %217 = vector.shape_cast %216 : vector<1x8x512xbf16> to vector<8x512xbf16>
    %218 = arith.extf %217 : vector<8x512xbf16> to vector<8x512xf32>
    %219 = arith.truncf %211 : vector<8x128xf32> to vector<8x128xbf16>
    %cst_62 = arith.constant dense<0.000000e+00> : vector<8x512xf32>
    %220 = tpu.matmul %219, %3, %cst_62 {dimension_numbers = #tpu.dot_dimension_numbers<[1], [0], [0], [1], [0, 0, 1, 1], [], []>} : vector<8x128xbf16>, vector<128x512xbf16>, vector<8x512xf32> -> vector<8x512xf32>
    %221 = arith.addf %218, %220 : vector<8x512xf32>
    %222 = vector.extract_strided_slice %221 {offsets = [0, 0], sizes = [8, 128], strides = [1, 1]} : vector<8x512xf32> to vector<8x128xf32>
    %223 = arith.negf %222 : vector<8x128xf32>
    %224 = math.exp %223 : vector<8x128xf32>
    %cst_63 = arith.constant 1.000000e+00 : f32
    %225 = vector.broadcast %cst_63 : f32 to vector<8x128xf32>
    %226 = arith.addf %225, %224 : vector<8x128xf32>
    %227 = arith.divf %225, %226 : vector<8x128xf32>
    %228 = vector.extract_strided_slice %221 {offsets = [0, 128], sizes = [8, 128], strides = [1, 1]} : vector<8x512xf32> to vector<8x128xf32>
    %229 = arith.negf %228 : vector<8x128xf32>
    %230 = math.exp %229 : vector<8x128xf32>
    %cst_64 = arith.constant 1.000000e+00 : f32
    %231 = vector.broadcast %cst_64 : f32 to vector<8x128xf32>
    %232 = arith.addf %231, %230 : vector<8x128xf32>
    %233 = arith.divf %231, %232 : vector<8x128xf32>
    %234 = vector.extract_strided_slice %221 {offsets = [0, 256], sizes = [8, 128], strides = [1, 1]} : vector<8x512xf32> to vector<8x128xf32>
    %235 = math.tanh %234 : vector<8x128xf32>
    %236 = vector.extract_strided_slice %221 {offsets = [0, 384], sizes = [8, 128], strides = [1, 1]} : vector<8x512xf32> to vector<8x128xf32>
    %237 = arith.negf %236 : vector<8x128xf32>
    %238 = math.exp %237 : vector<8x128xf32>
    %cst_65 = arith.constant 1.000000e+00 : f32
    %239 = vector.broadcast %cst_65 : f32 to vector<8x128xf32>
    %240 = arith.addf %239, %238 : vector<8x128xf32>
    %241 = arith.divf %239, %240 : vector<8x128xf32>
    %242 = arith.mulf %233, %209 : vector<8x128xf32>
    %243 = arith.mulf %227, %235 : vector<8x128xf32>
    %244 = arith.addf %242, %243 : vector<8x128xf32>
    %245 = math.tanh %244 : vector<8x128xf32>
    %246 = arith.mulf %241, %245 : vector<8x128xf32>
    %247 = arith.truncf %246 : vector<8x128xf32> to vector<8x128xbf16>
    %c6_66 = arith.constant 6 : index
    %c0_67 = arith.constant 0 : index
    %c0_68 = arith.constant 0 : index
    %248 = vector.load %arg9[%c6_66, %c0_67, %c0_68] : memref<8x8x128xbf16, #tpu.memory_space<vmem>>, vector<1x8x128xbf16>
    %249 = vector.shape_cast %248 : vector<1x8x128xbf16> to vector<8x128xbf16>
    %250 = vector.shape_cast %247 : vector<8x128xbf16> to vector<1x8x128xbf16>
    tpu.vector_store %arg9[%c6_66, %c0_67, %c0_68], %250 {strides = array<i32>} : memref<8x8x128xbf16, #tpu.memory_space<vmem>>, vector<1x8x128xbf16>,
    %c7 = arith.constant 7 : index
    %c0_69 = arith.constant 0 : index
    %c0_70 = arith.constant 0 : index
    %251 = vector.load %arg2[%c7, %c0_69, %c0_70] : memref<8x8x512xbf16, #tpu.memory_space<vmem>>, vector<1x8x512xbf16>
    %252 = vector.shape_cast %251 : vector<1x8x512xbf16> to vector<8x512xbf16>
    %253 = arith.extf %252 : vector<8x512xbf16> to vector<8x512xf32>
    %254 = arith.truncf %246 : vector<8x128xf32> to vector<8x128xbf16>
    %cst_71 = arith.constant dense<0.000000e+00> : vector<8x512xf32>
    %255 = tpu.matmul %254, %3, %cst_71 {dimension_numbers = #tpu.dot_dimension_numbers<[1], [0], [0], [1], [0, 0, 1, 1], [], []>} : vector<8x128xbf16>, vector<128x512xbf16>, vector<8x512xf32> -> vector<8x512xf32>
    %256 = arith.addf %253, %255 : vector<8x512xf32>
    %257 = vector.extract_strided_slice %256 {offsets = [0, 0], sizes = [8, 128], strides = [1, 1]} : vector<8x512xf32> to vector<8x128xf32>
    %258 = arith.negf %257 : vector<8x128xf32>
    %259 = math.exp %258 : vector<8x128xf32>
    %cst_72 = arith.constant 1.000000e+00 : f32
    %260 = vector.broadcast %cst_72 : f32 to vector<8x128xf32>
    %261 = arith.addf %260, %259 : vector<8x128xf32>
    %262 = arith.divf %260, %261 : vector<8x128xf32>
    %263 = vector.extract_strided_slice %256 {offsets = [0, 128], sizes = [8, 128], strides = [1, 1]} : vector<8x512xf32> to vector<8x128xf32>
    %264 = arith.negf %263 : vector<8x128xf32>
    %265 = math.exp %264 : vector<8x128xf32>
    %cst_73 = arith.constant 1.000000e+00 : f32
    %266 = vector.broadcast %cst_73 : f32 to vector<8x128xf32>
    %267 = arith.addf %266, %265 : vector<8x128xf32>
    %268 = arith.divf %266, %267 : vector<8x128xf32>
    %269 = vector.extract_strided_slice %256 {offsets = [0, 256], sizes = [8, 128], strides = [1, 1]} : vector<8x512xf32> to vector<8x128xf32>
    %270 = math.tanh %269 : vector<8x128xf32>
    %271 = vector.extract_strided_slice %256 {offsets = [0, 384], sizes = [8, 128], strides = [1, 1]} : vector<8x512xf32> to vector<8x128xf32>
    %272 = arith.negf %271 : vector<8x128xf32>
    %273 = math.exp %272 : vector<8x128xf32>
    %cst_74 = arith.constant 1.000000e+00 : f32
    %274 = vector.broadcast %cst_74 : f32 to vector<8x128xf32>
    %275 = arith.addf %274, %273 : vector<8x128xf32>
    %276 = arith.divf %274, %275 : vector<8x128xf32>
    %277 = arith.mulf %268, %244 : vector<8x128xf32>
    %278 = arith.mulf %262, %270 : vector<8x128xf32>
    %279 = arith.addf %277, %278 : vector<8x128xf32>
    %280 = math.tanh %279 : vector<8x128xf32>
    %281 = arith.mulf %276, %280 : vector<8x128xf32>
    %282 = arith.truncf %281 : vector<8x128xf32> to vector<8x128xbf16>
    %c7_75 = arith.constant 7 : index
    %c0_76 = arith.constant 0 : index
    %c0_77 = arith.constant 0 : index
    %283 = vector.load %arg9[%c7_75, %c0_76, %c0_77] : memref<8x8x128xbf16, #tpu.memory_space<vmem>>, vector<1x8x128xbf16>
    %284 = vector.shape_cast %283 : vector<1x8x128xbf16> to vector<8x128xbf16>
    %285 = vector.shape_cast %282 : vector<8x128xbf16> to vector<1x8x128xbf16>
    tpu.vector_store %arg9[%c7_75, %c0_76, %c0_77], %285 {strides = array<i32>} : memref<8x8x128xbf16, #tpu.memory_space<vmem>>, vector<1x8x128xbf16>,
    %c0_78 = arith.constant 0 : index
    %c0_79 = arith.constant 0 : index
    %286 = vector.load %arg7[%c0_78, %c0_79] : memref<8x128xf32, #tpu.memory_space<vmem>>, vector<8x128xf32>
    tpu.vector_store %arg7[%c0_78, %c0_79], %281 {strides = array<i32>} : memref<8x128xf32, #tpu.memory_space<vmem>>, vector<8x128xf32>,
    %c0_80 = arith.constant 0 : index
    %c0_81 = arith.constant 0 : index
    %287 = vector.load %arg8[%c0_80, %c0_81] : memref<8x128xf32, #tpu.memory_space<vmem>>, vector<8x128xf32>
    tpu.vector_store %arg8[%c0_80, %c0_81], %279 {strides = array<i32>} : memref<8x128xf32, #tpu.memory_space<vmem>>, vector<8x128xf32>,
    %c0_82 = arith.constant 0 : index
    %c0_83 = arith.constant 0 : index
    %c0_84 = arith.constant 0 : index
    %288 = vector.load %arg9[%c0_82, %c0_83, %c0_84] : memref<8x8x128xbf16, #tpu.memory_space<vmem>>, vector<8x8x128xbf16>
    %289 = vector.shape_cast %288 : vector<8x8x128xbf16> to vector<64x128xbf16>
    %c0_85 = arith.constant 0 : index
    %c0_86 = arith.constant 0 : index
    %290 = vector.load %arg4[%c0_85, %c0_86] : memref<128x512xbf16, #tpu.memory_space<vmem>>, vector<128x512xbf16>
    %cst_87 = arith.constant dense<0.000000e+00> : vector<64x512xf32>
    %291 = tpu.matmul %289, %290, %cst_87 {dimension_numbers = #tpu.dot_dimension_numbers<[1], [0], [0], [1], [0, 0, 1, 1], [], []>} : vector<64x128xbf16>, vector<128x512xbf16>, vector<64x512xf32> -> vector<64x512xf32>
    %c0_88 = arith.constant 0 : index
    %c0_89 = arith.constant 0 : index
    %292 = vector.load %arg5[%c0_88, %c0_89] : memref<1x512xf32, #tpu.memory_space<vmem>>, vector<1x512xf32>
    %293 = vector.broadcast %292 : vector<1x512xf32> to vector<64x512xf32>
    %294 = arith.addf %291, %293 : vector<64x512xf32>
    %295 = vector.shape_cast %294 : vector<64x512xf32> to vector<8x8x512xf32>
    %296 = arith.truncf %295 : vector<8x8x512xf32> to vector<8x8x512xbf16>
    %c0_90 = arith.constant 0 : index
    %c0_91 = arith.constant 0 : index
    %c0_92 = arith.constant 0 : index
    %297 = vector.load %arg6[%c0_90, %c0_91, %c0_92] : memref<8x8x512xbf16, #tpu.memory_space<vmem>>, vector<8x8x512xbf16>
    tpu.vector_store %arg6[%c0_90, %c0_91, %c0_92], %296 {strides = array<i32>} : memref<8x8x512xbf16, #tpu.memory_space<vmem>>, vector<8x8x512xbf16>,
    return
  }
  func.func @transform_0(%arg0: i32, %arg1: i32) -> (i32, i32, i32) {
    %c0_i32 = arith.constant 0 : i32
    %c0_i32_0 = arith.constant 0 : i32
    return %arg1, %arg0, %c0_i32 : i32, i32, i32
  }
  func.func @transform_1(%arg0: i32, %arg1: i32) -> (i32, i32) {
    %c0_i32 = arith.constant 0 : i32
    %c0_i32_0 = arith.constant 0 : i32
    %c0_i32_1 = arith.constant 0 : i32
    return %c0_i32, %c0_i32_0 : i32, i32
  }
  func.func @transform_2(%arg0: i32, %arg1: i32) -> (i32, i32) {
    %c0_i32 = arith.constant 0 : i32
    %c0_i32_0 = arith.constant 0 : i32
    %c0_i32_1 = arith.constant 0 : i32
    return %c0_i32, %c0_i32_0 : i32, i32
  }
  func.func @transform_3(%arg0: i32, %arg1: i32) -> (i32, i32) {
    %c0_i32 = arith.constant 0 : i32
    %c0_i32_0 = arith.constant 0 : i32
    %c0_i32_1 = arith.constant 0 : i32
    return %c0_i32, %c0_i32_0 : i32, i32
  }
  func.func @transform_4(%arg0: i32, %arg1: i32) -> (i32, i32, i32) {
    %c0_i32 = arith.constant 0 : i32
    %c0_i32_0 = arith.constant 0 : i32
    return %arg1, %arg0, %c0_i32 : i32, i32, i32
  }
}

module attributes {stable_mosaic.version = 11 : i64} {
  func.func @_lstm_kernel(%arg0: i32, %arg1: i32, %arg2: memref<8x8x512xbf16, #tpu.memory_space<vmem>>, %arg3: memref<128x512xbf16, #tpu.memory_space<vmem>>, %arg4: memref<8x8x128xf32, #tpu.memory_space<vmem>>, %arg5: memref<8x128xf32, #tpu.memory_space<vmem>>, %arg6: memref<8x128xf32, #tpu.memory_space<vmem>>) attributes {dimension_semantics = [#tpu.dimension_semantics<parallel>, #tpu.dimension_semantics<arbitrary>], iteration_bounds = array<i64: 1, 1>, scalar_prefetch = 0 : i64, scratch_operands = 2 : i64, tpu.core_type = #tpu.core_type<tc>, window_params = [{transform_indices = @transform_0, window_bounds = array<i64: 8, 8, 512>}, {pipeline_mode = #tpu.pipeline_mode<synchronous>, transform_indices = @transform_1, window_bounds = array<i64: 128, 512>}, {transform_indices = @transform_2, window_bounds = array<i64: 8, 8, 128>}]} {
    %c0_i32 = arith.constant 0 : i32
    %0 = arith.cmpi eq, %arg1, %c0_i32 : i32
    %1 = arith.extui %0 : i1 to i32
    %c0_i32_0 = arith.constant 0 : i32
    %2 = arith.cmpi ne, %1, %c0_i32_0 : i32
    scf.if %2 {
      %cst_82 = arith.constant 0.000000e+00 : f32
      %280 = vector.broadcast %cst_82 : f32 to vector<8x128xf32>
      %c0_83 = arith.constant 0 : index
      %c0_84 = arith.constant 0 : index
      %281 = vector.load %arg5[%c0_83, %c0_84] : memref<8x128xf32, #tpu.memory_space<vmem>>, vector<8x128xf32>
      tpu.vector_store %arg5[%c0_83, %c0_84], %280 {strides = array<i32>} : memref<8x128xf32, #tpu.memory_space<vmem>>, vector<8x128xf32>,
      %cst_85 = arith.constant 0.000000e+00 : f32
      %282 = vector.broadcast %cst_85 : f32 to vector<8x128xf32>
      %c0_86 = arith.constant 0 : index
      %c0_87 = arith.constant 0 : index
      %283 = vector.load %arg6[%c0_86, %c0_87] : memref<8x128xf32, #tpu.memory_space<vmem>>, vector<8x128xf32>
      tpu.vector_store %arg6[%c0_86, %c0_87], %282 {strides = array<i32>} : memref<8x128xf32, #tpu.memory_space<vmem>>, vector<8x128xf32>,
    } else {
    }
    %c0 = arith.constant 0 : index
    %c0_1 = arith.constant 0 : index
    %3 = vector.load %arg3[%c0, %c0_1] : memref<128x512xbf16, #tpu.memory_space<vmem>>, vector<128x512xbf16>
    %c0_2 = arith.constant 0 : index
    %c0_3 = arith.constant 0 : index
    %4 = vector.load %arg5[%c0_2, %c0_3] : memref<8x128xf32, #tpu.memory_space<vmem>>, vector<8x128xf32>
    %c0_4 = arith.constant 0 : index
    %c0_5 = arith.constant 0 : index
    %5 = vector.load %arg6[%c0_4, %c0_5] : memref<8x128xf32, #tpu.memory_space<vmem>>, vector<8x128xf32>
    %c0_6 = arith.constant 0 : index
    %c0_7 = arith.constant 0 : index
    %c0_8 = arith.constant 0 : index
    %6 = vector.load %arg2[%c0_6, %c0_7, %c0_8] : memref<8x8x512xbf16, #tpu.memory_space<vmem>>, vector<1x8x512xbf16>
    %7 = vector.shape_cast %6 : vector<1x8x512xbf16> to vector<8x512xbf16>
    %8 = arith.extf %7 : vector<8x512xbf16> to vector<8x512xf32>
    %9 = arith.truncf %4 : vector<8x128xf32> to vector<8x128xbf16>
    %cst = arith.constant dense<0.000000e+00> : vector<8x512xf32>
    %10 = tpu.matmul %9, %3, %cst {dimension_numbers = #tpu.dot_dimension_numbers<[1], [0], [0], [1], [0, 0, 1, 1], [], []>} : vector<8x128xbf16>, vector<128x512xbf16>, vector<8x512xf32> -> vector<8x512xf32>
    %11 = arith.addf %8, %10 : vector<8x512xf32>
    %12 = vector.extract_strided_slice %11 {offsets = [0, 0], sizes = [8, 128], strides = [1, 1]} : vector<8x512xf32> to vector<8x128xf32>
    %13 = arith.negf %12 : vector<8x128xf32>
    %14 = math.exp %13 : vector<8x128xf32>
    %cst_9 = arith.constant 1.000000e+00 : f32
    %15 = vector.broadcast %cst_9 : f32 to vector<8x128xf32>
    %16 = arith.addf %15, %14 : vector<8x128xf32>
    %17 = arith.divf %15, %16 : vector<8x128xf32>
    %18 = vector.extract_strided_slice %11 {offsets = [0, 128], sizes = [8, 128], strides = [1, 1]} : vector<8x512xf32> to vector<8x128xf32>
    %19 = arith.negf %18 : vector<8x128xf32>
    %20 = math.exp %19 : vector<8x128xf32>
    %cst_10 = arith.constant 1.000000e+00 : f32
    %21 = vector.broadcast %cst_10 : f32 to vector<8x128xf32>
    %22 = arith.addf %21, %20 : vector<8x128xf32>
    %23 = arith.divf %21, %22 : vector<8x128xf32>
    %24 = vector.extract_strided_slice %11 {offsets = [0, 256], sizes = [8, 128], strides = [1, 1]} : vector<8x512xf32> to vector<8x128xf32>
    %25 = math.tanh %24 : vector<8x128xf32>
    %26 = vector.extract_strided_slice %11 {offsets = [0, 384], sizes = [8, 128], strides = [1, 1]} : vector<8x512xf32> to vector<8x128xf32>
    %27 = arith.negf %26 : vector<8x128xf32>
    %28 = math.exp %27 : vector<8x128xf32>
    %cst_11 = arith.constant 1.000000e+00 : f32
    %29 = vector.broadcast %cst_11 : f32 to vector<8x128xf32>
    %30 = arith.addf %29, %28 : vector<8x128xf32>
    %31 = arith.divf %29, %30 : vector<8x128xf32>
    %32 = arith.mulf %23, %5 : vector<8x128xf32>
    %33 = arith.mulf %17, %25 : vector<8x128xf32>
    %34 = arith.addf %32, %33 : vector<8x128xf32>
    %35 = math.tanh %34 : vector<8x128xf32>
    %36 = arith.mulf %31, %35 : vector<8x128xf32>
    %c0_12 = arith.constant 0 : index
    %c0_13 = arith.constant 0 : index
    %c0_14 = arith.constant 0 : index
    %37 = vector.load %arg4[%c0_12, %c0_13, %c0_14] : memref<8x8x128xf32, #tpu.memory_space<vmem>>, vector<1x8x128xf32>
    %38 = vector.shape_cast %37 : vector<1x8x128xf32> to vector<8x128xf32>
    %39 = vector.shape_cast %36 : vector<8x128xf32> to vector<1x8x128xf32>
    tpu.vector_store %arg4[%c0_12, %c0_13, %c0_14], %39 {strides = array<i32>} : memref<8x8x128xf32, #tpu.memory_space<vmem>>, vector<1x8x128xf32>,
    %c1 = arith.constant 1 : index
    %c0_15 = arith.constant 0 : index
    %c0_16 = arith.constant 0 : index
    %40 = vector.load %arg2[%c1, %c0_15, %c0_16] : memref<8x8x512xbf16, #tpu.memory_space<vmem>>, vector<1x8x512xbf16>
    %41 = vector.shape_cast %40 : vector<1x8x512xbf16> to vector<8x512xbf16>
    %42 = arith.extf %41 : vector<8x512xbf16> to vector<8x512xf32>
    %43 = arith.truncf %36 : vector<8x128xf32> to vector<8x128xbf16>
    %cst_17 = arith.constant dense<0.000000e+00> : vector<8x512xf32>
    %44 = tpu.matmul %43, %3, %cst_17 {dimension_numbers = #tpu.dot_dimension_numbers<[1], [0], [0], [1], [0, 0, 1, 1], [], []>} : vector<8x128xbf16>, vector<128x512xbf16>, vector<8x512xf32> -> vector<8x512xf32>
    %45 = arith.addf %42, %44 : vector<8x512xf32>
    %46 = vector.extract_strided_slice %45 {offsets = [0, 0], sizes = [8, 128], strides = [1, 1]} : vector<8x512xf32> to vector<8x128xf32>
    %47 = arith.negf %46 : vector<8x128xf32>
    %48 = math.exp %47 : vector<8x128xf32>
    %cst_18 = arith.constant 1.000000e+00 : f32
    %49 = vector.broadcast %cst_18 : f32 to vector<8x128xf32>
    %50 = arith.addf %49, %48 : vector<8x128xf32>
    %51 = arith.divf %49, %50 : vector<8x128xf32>
    %52 = vector.extract_strided_slice %45 {offsets = [0, 128], sizes = [8, 128], strides = [1, 1]} : vector<8x512xf32> to vector<8x128xf32>
    %53 = arith.negf %52 : vector<8x128xf32>
    %54 = math.exp %53 : vector<8x128xf32>
    %cst_19 = arith.constant 1.000000e+00 : f32
    %55 = vector.broadcast %cst_19 : f32 to vector<8x128xf32>
    %56 = arith.addf %55, %54 : vector<8x128xf32>
    %57 = arith.divf %55, %56 : vector<8x128xf32>
    %58 = vector.extract_strided_slice %45 {offsets = [0, 256], sizes = [8, 128], strides = [1, 1]} : vector<8x512xf32> to vector<8x128xf32>
    %59 = math.tanh %58 : vector<8x128xf32>
    %60 = vector.extract_strided_slice %45 {offsets = [0, 384], sizes = [8, 128], strides = [1, 1]} : vector<8x512xf32> to vector<8x128xf32>
    %61 = arith.negf %60 : vector<8x128xf32>
    %62 = math.exp %61 : vector<8x128xf32>
    %cst_20 = arith.constant 1.000000e+00 : f32
    %63 = vector.broadcast %cst_20 : f32 to vector<8x128xf32>
    %64 = arith.addf %63, %62 : vector<8x128xf32>
    %65 = arith.divf %63, %64 : vector<8x128xf32>
    %66 = arith.mulf %57, %34 : vector<8x128xf32>
    %67 = arith.mulf %51, %59 : vector<8x128xf32>
    %68 = arith.addf %66, %67 : vector<8x128xf32>
    %69 = math.tanh %68 : vector<8x128xf32>
    %70 = arith.mulf %65, %69 : vector<8x128xf32>
    %c1_21 = arith.constant 1 : index
    %c0_22 = arith.constant 0 : index
    %c0_23 = arith.constant 0 : index
    %71 = vector.load %arg4[%c1_21, %c0_22, %c0_23] : memref<8x8x128xf32, #tpu.memory_space<vmem>>, vector<1x8x128xf32>
    %72 = vector.shape_cast %71 : vector<1x8x128xf32> to vector<8x128xf32>
    %73 = vector.shape_cast %70 : vector<8x128xf32> to vector<1x8x128xf32>
    tpu.vector_store %arg4[%c1_21, %c0_22, %c0_23], %73 {strides = array<i32>} : memref<8x8x128xf32, #tpu.memory_space<vmem>>, vector<1x8x128xf32>,
    %c2 = arith.constant 2 : index
    %c0_24 = arith.constant 0 : index
    %c0_25 = arith.constant 0 : index
    %74 = vector.load %arg2[%c2, %c0_24, %c0_25] : memref<8x8x512xbf16, #tpu.memory_space<vmem>>, vector<1x8x512xbf16>
    %75 = vector.shape_cast %74 : vector<1x8x512xbf16> to vector<8x512xbf16>
    %76 = arith.extf %75 : vector<8x512xbf16> to vector<8x512xf32>
    %77 = arith.truncf %70 : vector<8x128xf32> to vector<8x128xbf16>
    %cst_26 = arith.constant dense<0.000000e+00> : vector<8x512xf32>
    %78 = tpu.matmul %77, %3, %cst_26 {dimension_numbers = #tpu.dot_dimension_numbers<[1], [0], [0], [1], [0, 0, 1, 1], [], []>} : vector<8x128xbf16>, vector<128x512xbf16>, vector<8x512xf32> -> vector<8x512xf32>
    %79 = arith.addf %76, %78 : vector<8x512xf32>
    %80 = vector.extract_strided_slice %79 {offsets = [0, 0], sizes = [8, 128], strides = [1, 1]} : vector<8x512xf32> to vector<8x128xf32>
    %81 = arith.negf %80 : vector<8x128xf32>
    %82 = math.exp %81 : vector<8x128xf32>
    %cst_27 = arith.constant 1.000000e+00 : f32
    %83 = vector.broadcast %cst_27 : f32 to vector<8x128xf32>
    %84 = arith.addf %83, %82 : vector<8x128xf32>
    %85 = arith.divf %83, %84 : vector<8x128xf32>
    %86 = vector.extract_strided_slice %79 {offsets = [0, 128], sizes = [8, 128], strides = [1, 1]} : vector<8x512xf32> to vector<8x128xf32>
    %87 = arith.negf %86 : vector<8x128xf32>
    %88 = math.exp %87 : vector<8x128xf32>
    %cst_28 = arith.constant 1.000000e+00 : f32
    %89 = vector.broadcast %cst_28 : f32 to vector<8x128xf32>
    %90 = arith.addf %89, %88 : vector<8x128xf32>
    %91 = arith.divf %89, %90 : vector<8x128xf32>
    %92 = vector.extract_strided_slice %79 {offsets = [0, 256], sizes = [8, 128], strides = [1, 1]} : vector<8x512xf32> to vector<8x128xf32>
    %93 = math.tanh %92 : vector<8x128xf32>
    %94 = vector.extract_strided_slice %79 {offsets = [0, 384], sizes = [8, 128], strides = [1, 1]} : vector<8x512xf32> to vector<8x128xf32>
    %95 = arith.negf %94 : vector<8x128xf32>
    %96 = math.exp %95 : vector<8x128xf32>
    %cst_29 = arith.constant 1.000000e+00 : f32
    %97 = vector.broadcast %cst_29 : f32 to vector<8x128xf32>
    %98 = arith.addf %97, %96 : vector<8x128xf32>
    %99 = arith.divf %97, %98 : vector<8x128xf32>
    %100 = arith.mulf %91, %68 : vector<8x128xf32>
    %101 = arith.mulf %85, %93 : vector<8x128xf32>
    %102 = arith.addf %100, %101 : vector<8x128xf32>
    %103 = math.tanh %102 : vector<8x128xf32>
    %104 = arith.mulf %99, %103 : vector<8x128xf32>
    %c2_30 = arith.constant 2 : index
    %c0_31 = arith.constant 0 : index
    %c0_32 = arith.constant 0 : index
    %105 = vector.load %arg4[%c2_30, %c0_31, %c0_32] : memref<8x8x128xf32, #tpu.memory_space<vmem>>, vector<1x8x128xf32>
    %106 = vector.shape_cast %105 : vector<1x8x128xf32> to vector<8x128xf32>
    %107 = vector.shape_cast %104 : vector<8x128xf32> to vector<1x8x128xf32>
    tpu.vector_store %arg4[%c2_30, %c0_31, %c0_32], %107 {strides = array<i32>} : memref<8x8x128xf32, #tpu.memory_space<vmem>>, vector<1x8x128xf32>,
    %c3 = arith.constant 3 : index
    %c0_33 = arith.constant 0 : index
    %c0_34 = arith.constant 0 : index
    %108 = vector.load %arg2[%c3, %c0_33, %c0_34] : memref<8x8x512xbf16, #tpu.memory_space<vmem>>, vector<1x8x512xbf16>
    %109 = vector.shape_cast %108 : vector<1x8x512xbf16> to vector<8x512xbf16>
    %110 = arith.extf %109 : vector<8x512xbf16> to vector<8x512xf32>
    %111 = arith.truncf %104 : vector<8x128xf32> to vector<8x128xbf16>
    %cst_35 = arith.constant dense<0.000000e+00> : vector<8x512xf32>
    %112 = tpu.matmul %111, %3, %cst_35 {dimension_numbers = #tpu.dot_dimension_numbers<[1], [0], [0], [1], [0, 0, 1, 1], [], []>} : vector<8x128xbf16>, vector<128x512xbf16>, vector<8x512xf32> -> vector<8x512xf32>
    %113 = arith.addf %110, %112 : vector<8x512xf32>
    %114 = vector.extract_strided_slice %113 {offsets = [0, 0], sizes = [8, 128], strides = [1, 1]} : vector<8x512xf32> to vector<8x128xf32>
    %115 = arith.negf %114 : vector<8x128xf32>
    %116 = math.exp %115 : vector<8x128xf32>
    %cst_36 = arith.constant 1.000000e+00 : f32
    %117 = vector.broadcast %cst_36 : f32 to vector<8x128xf32>
    %118 = arith.addf %117, %116 : vector<8x128xf32>
    %119 = arith.divf %117, %118 : vector<8x128xf32>
    %120 = vector.extract_strided_slice %113 {offsets = [0, 128], sizes = [8, 128], strides = [1, 1]} : vector<8x512xf32> to vector<8x128xf32>
    %121 = arith.negf %120 : vector<8x128xf32>
    %122 = math.exp %121 : vector<8x128xf32>
    %cst_37 = arith.constant 1.000000e+00 : f32
    %123 = vector.broadcast %cst_37 : f32 to vector<8x128xf32>
    %124 = arith.addf %123, %122 : vector<8x128xf32>
    %125 = arith.divf %123, %124 : vector<8x128xf32>
    %126 = vector.extract_strided_slice %113 {offsets = [0, 256], sizes = [8, 128], strides = [1, 1]} : vector<8x512xf32> to vector<8x128xf32>
    %127 = math.tanh %126 : vector<8x128xf32>
    %128 = vector.extract_strided_slice %113 {offsets = [0, 384], sizes = [8, 128], strides = [1, 1]} : vector<8x512xf32> to vector<8x128xf32>
    %129 = arith.negf %128 : vector<8x128xf32>
    %130 = math.exp %129 : vector<8x128xf32>
    %cst_38 = arith.constant 1.000000e+00 : f32
    %131 = vector.broadcast %cst_38 : f32 to vector<8x128xf32>
    %132 = arith.addf %131, %130 : vector<8x128xf32>
    %133 = arith.divf %131, %132 : vector<8x128xf32>
    %134 = arith.mulf %125, %102 : vector<8x128xf32>
    %135 = arith.mulf %119, %127 : vector<8x128xf32>
    %136 = arith.addf %134, %135 : vector<8x128xf32>
    %137 = math.tanh %136 : vector<8x128xf32>
    %138 = arith.mulf %133, %137 : vector<8x128xf32>
    %c3_39 = arith.constant 3 : index
    %c0_40 = arith.constant 0 : index
    %c0_41 = arith.constant 0 : index
    %139 = vector.load %arg4[%c3_39, %c0_40, %c0_41] : memref<8x8x128xf32, #tpu.memory_space<vmem>>, vector<1x8x128xf32>
    %140 = vector.shape_cast %139 : vector<1x8x128xf32> to vector<8x128xf32>
    %141 = vector.shape_cast %138 : vector<8x128xf32> to vector<1x8x128xf32>
    tpu.vector_store %arg4[%c3_39, %c0_40, %c0_41], %141 {strides = array<i32>} : memref<8x8x128xf32, #tpu.memory_space<vmem>>, vector<1x8x128xf32>,
    %c4 = arith.constant 4 : index
    %c0_42 = arith.constant 0 : index
    %c0_43 = arith.constant 0 : index
    %142 = vector.load %arg2[%c4, %c0_42, %c0_43] : memref<8x8x512xbf16, #tpu.memory_space<vmem>>, vector<1x8x512xbf16>
    %143 = vector.shape_cast %142 : vector<1x8x512xbf16> to vector<8x512xbf16>
    %144 = arith.extf %143 : vector<8x512xbf16> to vector<8x512xf32>
    %145 = arith.truncf %138 : vector<8x128xf32> to vector<8x128xbf16>
    %cst_44 = arith.constant dense<0.000000e+00> : vector<8x512xf32>
    %146 = tpu.matmul %145, %3, %cst_44 {dimension_numbers = #tpu.dot_dimension_numbers<[1], [0], [0], [1], [0, 0, 1, 1], [], []>} : vector<8x128xbf16>, vector<128x512xbf16>, vector<8x512xf32> -> vector<8x512xf32>
    %147 = arith.addf %144, %146 : vector<8x512xf32>
    %148 = vector.extract_strided_slice %147 {offsets = [0, 0], sizes = [8, 128], strides = [1, 1]} : vector<8x512xf32> to vector<8x128xf32>
    %149 = arith.negf %148 : vector<8x128xf32>
    %150 = math.exp %149 : vector<8x128xf32>
    %cst_45 = arith.constant 1.000000e+00 : f32
    %151 = vector.broadcast %cst_45 : f32 to vector<8x128xf32>
    %152 = arith.addf %151, %150 : vector<8x128xf32>
    %153 = arith.divf %151, %152 : vector<8x128xf32>
    %154 = vector.extract_strided_slice %147 {offsets = [0, 128], sizes = [8, 128], strides = [1, 1]} : vector<8x512xf32> to vector<8x128xf32>
    %155 = arith.negf %154 : vector<8x128xf32>
    %156 = math.exp %155 : vector<8x128xf32>
    %cst_46 = arith.constant 1.000000e+00 : f32
    %157 = vector.broadcast %cst_46 : f32 to vector<8x128xf32>
    %158 = arith.addf %157, %156 : vector<8x128xf32>
    %159 = arith.divf %157, %158 : vector<8x128xf32>
    %160 = vector.extract_strided_slice %147 {offsets = [0, 256], sizes = [8, 128], strides = [1, 1]} : vector<8x512xf32> to vector<8x128xf32>
    %161 = math.tanh %160 : vector<8x128xf32>
    %162 = vector.extract_strided_slice %147 {offsets = [0, 384], sizes = [8, 128], strides = [1, 1]} : vector<8x512xf32> to vector<8x128xf32>
    %163 = arith.negf %162 : vector<8x128xf32>
    %164 = math.exp %163 : vector<8x128xf32>
    %cst_47 = arith.constant 1.000000e+00 : f32
    %165 = vector.broadcast %cst_47 : f32 to vector<8x128xf32>
    %166 = arith.addf %165, %164 : vector<8x128xf32>
    %167 = arith.divf %165, %166 : vector<8x128xf32>
    %168 = arith.mulf %159, %136 : vector<8x128xf32>
    %169 = arith.mulf %153, %161 : vector<8x128xf32>
    %170 = arith.addf %168, %169 : vector<8x128xf32>
    %171 = math.tanh %170 : vector<8x128xf32>
    %172 = arith.mulf %167, %171 : vector<8x128xf32>
    %c4_48 = arith.constant 4 : index
    %c0_49 = arith.constant 0 : index
    %c0_50 = arith.constant 0 : index
    %173 = vector.load %arg4[%c4_48, %c0_49, %c0_50] : memref<8x8x128xf32, #tpu.memory_space<vmem>>, vector<1x8x128xf32>
    %174 = vector.shape_cast %173 : vector<1x8x128xf32> to vector<8x128xf32>
    %175 = vector.shape_cast %172 : vector<8x128xf32> to vector<1x8x128xf32>
    tpu.vector_store %arg4[%c4_48, %c0_49, %c0_50], %175 {strides = array<i32>} : memref<8x8x128xf32, #tpu.memory_space<vmem>>, vector<1x8x128xf32>,
    %c5 = arith.constant 5 : index
    %c0_51 = arith.constant 0 : index
    %c0_52 = arith.constant 0 : index
    %176 = vector.load %arg2[%c5, %c0_51, %c0_52] : memref<8x8x512xbf16, #tpu.memory_space<vmem>>, vector<1x8x512xbf16>
    %177 = vector.shape_cast %176 : vector<1x8x512xbf16> to vector<8x512xbf16>
    %178 = arith.extf %177 : vector<8x512xbf16> to vector<8x512xf32>
    %179 = arith.truncf %172 : vector<8x128xf32> to vector<8x128xbf16>
    %cst_53 = arith.constant dense<0.000000e+00> : vector<8x512xf32>
    %180 = tpu.matmul %179, %3, %cst_53 {dimension_numbers = #tpu.dot_dimension_numbers<[1], [0], [0], [1], [0, 0, 1, 1], [], []>} : vector<8x128xbf16>, vector<128x512xbf16>, vector<8x512xf32> -> vector<8x512xf32>
    %181 = arith.addf %178, %180 : vector<8x512xf32>
    %182 = vector.extract_strided_slice %181 {offsets = [0, 0], sizes = [8, 128], strides = [1, 1]} : vector<8x512xf32> to vector<8x128xf32>
    %183 = arith.negf %182 : vector<8x128xf32>
    %184 = math.exp %183 : vector<8x128xf32>
    %cst_54 = arith.constant 1.000000e+00 : f32
    %185 = vector.broadcast %cst_54 : f32 to vector<8x128xf32>
    %186 = arith.addf %185, %184 : vector<8x128xf32>
    %187 = arith.divf %185, %186 : vector<8x128xf32>
    %188 = vector.extract_strided_slice %181 {offsets = [0, 128], sizes = [8, 128], strides = [1, 1]} : vector<8x512xf32> to vector<8x128xf32>
    %189 = arith.negf %188 : vector<8x128xf32>
    %190 = math.exp %189 : vector<8x128xf32>
    %cst_55 = arith.constant 1.000000e+00 : f32
    %191 = vector.broadcast %cst_55 : f32 to vector<8x128xf32>
    %192 = arith.addf %191, %190 : vector<8x128xf32>
    %193 = arith.divf %191, %192 : vector<8x128xf32>
    %194 = vector.extract_strided_slice %181 {offsets = [0, 256], sizes = [8, 128], strides = [1, 1]} : vector<8x512xf32> to vector<8x128xf32>
    %195 = math.tanh %194 : vector<8x128xf32>
    %196 = vector.extract_strided_slice %181 {offsets = [0, 384], sizes = [8, 128], strides = [1, 1]} : vector<8x512xf32> to vector<8x128xf32>
    %197 = arith.negf %196 : vector<8x128xf32>
    %198 = math.exp %197 : vector<8x128xf32>
    %cst_56 = arith.constant 1.000000e+00 : f32
    %199 = vector.broadcast %cst_56 : f32 to vector<8x128xf32>
    %200 = arith.addf %199, %198 : vector<8x128xf32>
    %201 = arith.divf %199, %200 : vector<8x128xf32>
    %202 = arith.mulf %193, %170 : vector<8x128xf32>
    %203 = arith.mulf %187, %195 : vector<8x128xf32>
    %204 = arith.addf %202, %203 : vector<8x128xf32>
    %205 = math.tanh %204 : vector<8x128xf32>
    %206 = arith.mulf %201, %205 : vector<8x128xf32>
    %c5_57 = arith.constant 5 : index
    %c0_58 = arith.constant 0 : index
    %c0_59 = arith.constant 0 : index
    %207 = vector.load %arg4[%c5_57, %c0_58, %c0_59] : memref<8x8x128xf32, #tpu.memory_space<vmem>>, vector<1x8x128xf32>
    %208 = vector.shape_cast %207 : vector<1x8x128xf32> to vector<8x128xf32>
    %209 = vector.shape_cast %206 : vector<8x128xf32> to vector<1x8x128xf32>
    tpu.vector_store %arg4[%c5_57, %c0_58, %c0_59], %209 {strides = array<i32>} : memref<8x8x128xf32, #tpu.memory_space<vmem>>, vector<1x8x128xf32>,
    %c6 = arith.constant 6 : index
    %c0_60 = arith.constant 0 : index
    %c0_61 = arith.constant 0 : index
    %210 = vector.load %arg2[%c6, %c0_60, %c0_61] : memref<8x8x512xbf16, #tpu.memory_space<vmem>>, vector<1x8x512xbf16>
    %211 = vector.shape_cast %210 : vector<1x8x512xbf16> to vector<8x512xbf16>
    %212 = arith.extf %211 : vector<8x512xbf16> to vector<8x512xf32>
    %213 = arith.truncf %206 : vector<8x128xf32> to vector<8x128xbf16>
    %cst_62 = arith.constant dense<0.000000e+00> : vector<8x512xf32>
    %214 = tpu.matmul %213, %3, %cst_62 {dimension_numbers = #tpu.dot_dimension_numbers<[1], [0], [0], [1], [0, 0, 1, 1], [], []>} : vector<8x128xbf16>, vector<128x512xbf16>, vector<8x512xf32> -> vector<8x512xf32>
    %215 = arith.addf %212, %214 : vector<8x512xf32>
    %216 = vector.extract_strided_slice %215 {offsets = [0, 0], sizes = [8, 128], strides = [1, 1]} : vector<8x512xf32> to vector<8x128xf32>
    %217 = arith.negf %216 : vector<8x128xf32>
    %218 = math.exp %217 : vector<8x128xf32>
    %cst_63 = arith.constant 1.000000e+00 : f32
    %219 = vector.broadcast %cst_63 : f32 to vector<8x128xf32>
    %220 = arith.addf %219, %218 : vector<8x128xf32>
    %221 = arith.divf %219, %220 : vector<8x128xf32>
    %222 = vector.extract_strided_slice %215 {offsets = [0, 128], sizes = [8, 128], strides = [1, 1]} : vector<8x512xf32> to vector<8x128xf32>
    %223 = arith.negf %222 : vector<8x128xf32>
    %224 = math.exp %223 : vector<8x128xf32>
    %cst_64 = arith.constant 1.000000e+00 : f32
    %225 = vector.broadcast %cst_64 : f32 to vector<8x128xf32>
    %226 = arith.addf %225, %224 : vector<8x128xf32>
    %227 = arith.divf %225, %226 : vector<8x128xf32>
    %228 = vector.extract_strided_slice %215 {offsets = [0, 256], sizes = [8, 128], strides = [1, 1]} : vector<8x512xf32> to vector<8x128xf32>
    %229 = math.tanh %228 : vector<8x128xf32>
    %230 = vector.extract_strided_slice %215 {offsets = [0, 384], sizes = [8, 128], strides = [1, 1]} : vector<8x512xf32> to vector<8x128xf32>
    %231 = arith.negf %230 : vector<8x128xf32>
    %232 = math.exp %231 : vector<8x128xf32>
    %cst_65 = arith.constant 1.000000e+00 : f32
    %233 = vector.broadcast %cst_65 : f32 to vector<8x128xf32>
    %234 = arith.addf %233, %232 : vector<8x128xf32>
    %235 = arith.divf %233, %234 : vector<8x128xf32>
    %236 = arith.mulf %227, %204 : vector<8x128xf32>
    %237 = arith.mulf %221, %229 : vector<8x128xf32>
    %238 = arith.addf %236, %237 : vector<8x128xf32>
    %239 = math.tanh %238 : vector<8x128xf32>
    %240 = arith.mulf %235, %239 : vector<8x128xf32>
    %c6_66 = arith.constant 6 : index
    %c0_67 = arith.constant 0 : index
    %c0_68 = arith.constant 0 : index
    %241 = vector.load %arg4[%c6_66, %c0_67, %c0_68] : memref<8x8x128xf32, #tpu.memory_space<vmem>>, vector<1x8x128xf32>
    %242 = vector.shape_cast %241 : vector<1x8x128xf32> to vector<8x128xf32>
    %243 = vector.shape_cast %240 : vector<8x128xf32> to vector<1x8x128xf32>
    tpu.vector_store %arg4[%c6_66, %c0_67, %c0_68], %243 {strides = array<i32>} : memref<8x8x128xf32, #tpu.memory_space<vmem>>, vector<1x8x128xf32>,
    %c7 = arith.constant 7 : index
    %c0_69 = arith.constant 0 : index
    %c0_70 = arith.constant 0 : index
    %244 = vector.load %arg2[%c7, %c0_69, %c0_70] : memref<8x8x512xbf16, #tpu.memory_space<vmem>>, vector<1x8x512xbf16>
    %245 = vector.shape_cast %244 : vector<1x8x512xbf16> to vector<8x512xbf16>
    %246 = arith.extf %245 : vector<8x512xbf16> to vector<8x512xf32>
    %247 = arith.truncf %240 : vector<8x128xf32> to vector<8x128xbf16>
    %cst_71 = arith.constant dense<0.000000e+00> : vector<8x512xf32>
    %248 = tpu.matmul %247, %3, %cst_71 {dimension_numbers = #tpu.dot_dimension_numbers<[1], [0], [0], [1], [0, 0, 1, 1], [], []>} : vector<8x128xbf16>, vector<128x512xbf16>, vector<8x512xf32> -> vector<8x512xf32>
    %249 = arith.addf %246, %248 : vector<8x512xf32>
    %250 = vector.extract_strided_slice %249 {offsets = [0, 0], sizes = [8, 128], strides = [1, 1]} : vector<8x512xf32> to vector<8x128xf32>
    %251 = arith.negf %250 : vector<8x128xf32>
    %252 = math.exp %251 : vector<8x128xf32>
    %cst_72 = arith.constant 1.000000e+00 : f32
    %253 = vector.broadcast %cst_72 : f32 to vector<8x128xf32>
    %254 = arith.addf %253, %252 : vector<8x128xf32>
    %255 = arith.divf %253, %254 : vector<8x128xf32>
    %256 = vector.extract_strided_slice %249 {offsets = [0, 128], sizes = [8, 128], strides = [1, 1]} : vector<8x512xf32> to vector<8x128xf32>
    %257 = arith.negf %256 : vector<8x128xf32>
    %258 = math.exp %257 : vector<8x128xf32>
    %cst_73 = arith.constant 1.000000e+00 : f32
    %259 = vector.broadcast %cst_73 : f32 to vector<8x128xf32>
    %260 = arith.addf %259, %258 : vector<8x128xf32>
    %261 = arith.divf %259, %260 : vector<8x128xf32>
    %262 = vector.extract_strided_slice %249 {offsets = [0, 256], sizes = [8, 128], strides = [1, 1]} : vector<8x512xf32> to vector<8x128xf32>
    %263 = math.tanh %262 : vector<8x128xf32>
    %264 = vector.extract_strided_slice %249 {offsets = [0, 384], sizes = [8, 128], strides = [1, 1]} : vector<8x512xf32> to vector<8x128xf32>
    %265 = arith.negf %264 : vector<8x128xf32>
    %266 = math.exp %265 : vector<8x128xf32>
    %cst_74 = arith.constant 1.000000e+00 : f32
    %267 = vector.broadcast %cst_74 : f32 to vector<8x128xf32>
    %268 = arith.addf %267, %266 : vector<8x128xf32>
    %269 = arith.divf %267, %268 : vector<8x128xf32>
    %270 = arith.mulf %261, %238 : vector<8x128xf32>
    %271 = arith.mulf %255, %263 : vector<8x128xf32>
    %272 = arith.addf %270, %271 : vector<8x128xf32>
    %273 = math.tanh %272 : vector<8x128xf32>
    %274 = arith.mulf %269, %273 : vector<8x128xf32>
    %c7_75 = arith.constant 7 : index
    %c0_76 = arith.constant 0 : index
    %c0_77 = arith.constant 0 : index
    %275 = vector.load %arg4[%c7_75, %c0_76, %c0_77] : memref<8x8x128xf32, #tpu.memory_space<vmem>>, vector<1x8x128xf32>
    %276 = vector.shape_cast %275 : vector<1x8x128xf32> to vector<8x128xf32>
    %277 = vector.shape_cast %274 : vector<8x128xf32> to vector<1x8x128xf32>
    tpu.vector_store %arg4[%c7_75, %c0_76, %c0_77], %277 {strides = array<i32>} : memref<8x8x128xf32, #tpu.memory_space<vmem>>, vector<1x8x128xf32>,
    %c0_78 = arith.constant 0 : index
    %c0_79 = arith.constant 0 : index
    %278 = vector.load %arg5[%c0_78, %c0_79] : memref<8x128xf32, #tpu.memory_space<vmem>>, vector<8x128xf32>
    tpu.vector_store %arg5[%c0_78, %c0_79], %274 {strides = array<i32>} : memref<8x128xf32, #tpu.memory_space<vmem>>, vector<8x128xf32>,
    %c0_80 = arith.constant 0 : index
    %c0_81 = arith.constant 0 : index
    %279 = vector.load %arg6[%c0_80, %c0_81] : memref<8x128xf32, #tpu.memory_space<vmem>>, vector<8x128xf32>
    tpu.vector_store %arg6[%c0_80, %c0_81], %272 {strides = array<i32>} : memref<8x128xf32, #tpu.memory_space<vmem>>, vector<8x128xf32>,
    return
  }
  func.func @transform_0(%arg0: i32, %arg1: i32) -> (i32, i32, i32) {
    %c0_i32 = arith.constant 0 : i32
    %c0_i32_0 = arith.constant 0 : i32
    return %arg1, %arg0, %c0_i32 : i32, i32, i32
  }
  func.func @transform_1(%arg0: i32, %arg1: i32) -> (i32, i32) {
    %c0_i32 = arith.constant 0 : i32
    %c0_i32_0 = arith.constant 0 : i32
    %c0_i32_1 = arith.constant 0 : i32
    return %c0_i32, %c0_i32_0 : i32, i32
  }
  func.func @transform_2(%arg0: i32, %arg1: i32) -> (i32, i32, i32) {
    %c0_i32 = arith.constant 0 : i32
    %c0_i32_0 = arith.constant 0 : i32
    return %arg1, %arg0, %c0_i32 : i32, i32, i32
  }
}

</mosaic_0001>

<bundles_post_ra>
// kernel: multi_lstm_seq_forward.3
= control target key start
LH: loop header
LB: loop body
LE: loop exit
PB: predicated region body
PF: predicated region fallthrough
CT: control target
= control target key end

     0   :  { %vm61_vm0 = vcmask 130048   ;;  %s437_s1 = inlined_call_operand.vmem [shape: bf16[16,512], index: 1, kind: input, shape index: {}]   ;;  %s438_s0 = inlined_call_operand.vmem [shape: f32[64,16], index: 0, kind: input, shape index: {}]   ;;  %s439_s2 = inlined_call_operand.vmem [shape: f32[1,512], index: 2, kind: input, shape index: {}]   ;;  %s440_s3 = inlined_call_operand.vmem [shape: bf16[64,512], index: 3, kind: output, shape index: {}]  }
   0x1   :  { %v228_v0 = vld [vmem:[%s437_s1] sm:$0xf]  ;;  %v260_v1 = vld [vmem:[%s437_s1 + $0xc] sm:$0xf0]  ;;  %v258_v2 = vld [vmem:[%s437_s1 + $0x4] sm:$0xf] }
   0x2   :  { %v229_v3 = vor.u32 %v260_v1, %v228_v0  ;;  %v230_v4 = vld [vmem:[%s437_s1 + $0x10] sm:$0xf0]  ;;  %v236_v5 = vld [vmem:[%s437_s1 + $0x8] sm:$0xf]  ;;  %v261_v6 = vld [vmem:[%s437_s1 + $0x14] sm:$0xf0] }
   0x3   :  { %v233_v7 = vor.u32 %v258_v2, %v230_v4  ;;  %v237_v8 = vor.u32 %v261_v6, %v236_v5  ;;  %v259_v9 = vld [vmem:[%s437_s1 + $0xc] sm:$0xf]  ;;  %v238_v10 = vld [vmem:[%s437_s1 + $0x18] sm:$0xf0]  ;;  %v15_v11 = vld [vmem:[%s438_s0] sm:$0xff] }
   0x4   :  { %81 = vmatpush.bf16.msra.mxu0 %v229_v3  ;;  %v241_v12 = vor.u32 %v259_v9, %v238_v10  ;;  %v16_v13 = vld [vmem:[%s438_s0 + $0x8] sm:$0xff]  ;;  %v17_v15 = vld [vmem:[%s438_s0 + $0x10] sm:$0xff]  ;;  %v18_v16 = vld [vmem:[%s438_s0 + $0x18] sm:$0xff] }
   0x5   :  { %110 = vmatpush.bf16.msra.mxu1 %v233_v7  ;;  %139 = vmatpush.bf16.msra.mxu2 %v237_v8  ;;  %v23_v14 = vpack.c.bf16 %v16_v13, %v15_v11  ;;  %v24_v17 = vpack.c.bf16 %v18_v16, %v17_v15  ;;  %v19_v18 = vld [vmem:[%s438_s0 + $0x20] sm:$0xff]  ;;  %v20_v19 = vld [vmem:[%s438_s0 + $0x28] sm:$0xff]  ;;  %v21_v21 = vld [vmem:[%s438_s0 + $0x30] sm:$0xff] }
   0x6   :  { %168 = vmatpush.bf16.msra.mxu3 %v241_v12  ;;  %v25_v20 = vpack.c.bf16 %v20_v19, %v19_v18  ;;  %v22_v22 = vld [vmem:[%s438_s0 + $0x38] sm:$0xff]  ;;  %v31_v24 = vld [vmem:[%s439_s2] sm:$0xf] }
   0x7   :  { %242 = vmatmul.msk.bf16.vlgmr.msra.gmra.mxu0 %vm61_vm0, %v23_v14  ;;  %v26_v23 = vpack.c.bf16 %v22_v22, %v21_v21  ;;  %v349_v25 = vperm.slane %v31_v24, 0  ;;  %v351_v26 = vperm.slane %v31_v24, 1  ;;  %v355_v32 = vperm.slane %v31_v24, 2 }
   0x8   :  { %246 = vmatmul.msk.bf16.vlgmr.msra.gmra.mxu1 %vm61_vm0, %v23_v14  ;;  %250 = vmatmul.msk.bf16.vlgmr.msra.gmra.mxu2 %vm61_vm0, %v23_v14  ;;  %v357_v33 = vperm.slane %v31_v24, 3 }
   0x9   :  { %254 = vmatmul.msk.bf16.vlgmr.msra.gmra.mxu3 %vm61_vm0, %v23_v14 }
  0x17   :  { %243 = vmatmul.msk.bf16.gmra.mxu0 %vm61_vm0, %v24_v17 }
  0x18   :  { %247 = vmatmul.msk.bf16.gmra.mxu1 %vm61_vm0, %v24_v17  ;;  %251 = vmatmul.msk.bf16.gmra.mxu2 %vm61_vm0, %v24_v17 }
  0x19   :  { %255 = vmatmul.msk.bf16.gmra.mxu3 %vm61_vm0, %v24_v17 }
  0x27   :  { %244 = vmatmul.msk.bf16.gmra.mxu0 %vm61_vm0, %v25_v20 }
  0x28   :  { %248 = vmatmul.msk.bf16.gmra.mxu1 %vm61_vm0, %v25_v20  ;;  %252 = vmatmul.msk.bf16.gmra.mxu2 %vm61_vm0, %v25_v20 }
  0x29   :  { %256 = vmatmul.msk.bf16.gmra.mxu3 %vm61_vm0, %v25_v20 }
  0x37   :  { %245 = vmatmul.msk.bf16.gmra.mxu0 %vm61_vm0, %v26_v23 }
  0x38   :  { %249 = vmatmul.msk.bf16.gmra.mxu1 %vm61_vm0, %v26_v23  ;;  %253 = vmatmul.msk.bf16.gmra.mxu2 %vm61_vm0, %v26_v23 }
  0x39   :  { %257 = vmatmul.msk.bf16.gmra.mxu3 %vm61_vm0, %v26_v23 }
  0x84   :  { %v83_v27 = vpop.f32.mrf.mxu0 }
  0x85   :  { %v84_v28 = vadd.f32 %v83_v27, %v349_v25  ;;  %v112_v29 = vpop.f32.mrf.mxu1 }
  0x86   :  { %v113_v30 = vadd.f32 %v112_v29, %v351_v26 }
  0x88   :  { %v190_v31 = vpack.c.bf16 %v113_v30, %v84_v28 }
  0x8a   :  { %206 = vst [vmem:[%s440_s3] sm:$0xff] %v190_v31 }
  0x8b   :  { %v141_v34 = vpop.f32.mrf.mxu2 }
  0x8c   :  { %v142_v35 = vadd.f32 %v141_v34, %v355_v32  ;;  %v170_v36 = vpop.f32.mrf.mxu3  ;;  %v85_v37 = vpop.f32.mrf.mxu0 }
  0x8d   :  { %v171_v38 = vadd.f32 %v170_v36, %v357_v33  ;;  %v86_v39 = vadd.f32 %v85_v37, %v349_v25  ;;  %v114_v40 = vpop.f32.mrf.mxu1 }
  0x8e   :  { %v115_v41 = vadd.f32 %v114_v40, %v351_v26 }
  0x8f   :  { %v191_v42 = vpack.c.bf16 %v171_v38, %v142_v35 }
  0x90   :  { %v192_v43 = vpack.c.bf16 %v115_v41, %v86_v39 }
  0x91   :  { %207 = vst [vmem:[%s440_s3 + $0x8] sm:$0xff] %v191_v42 }
  0x92   :  { %208 = vst [vmem:[%s440_s3 + $0x10] sm:$0xff] %v192_v43 }
  0x93   :  { %v143_v44 = vpop.f32.mrf.mxu2 }
  0x94   :  { %v144_v45 = vadd.f32 %v143_v44, %v355_v32  ;;  %v172_v46 = vpop.f32.mrf.mxu3  ;;  %v88_v47 = vpop.f32.mrf.mxu0 }
  0x95   :  { %v173_v48 = vadd.f32 %v172_v46, %v357_v33  ;;  %v89_v49 = vadd.f32 %v88_v47, %v349_v25  ;;  %v117_v50 = vpop.f32.mrf.mxu1 }
  0x96   :  { %v118_v51 = vadd.f32 %v117_v50, %v351_v26 }
  0x97   :  { %v193_v52 = vpack.c.bf16 %v173_v48, %v144_v45 }
  0x98   :  { %v194_v53 = vpack.c.bf16 %v118_v51, %v89_v49 }
  0x99   :  { %209 = vst [vmem:[%s440_s3 + $0x18] sm:$0xff] %v193_v52 }
  0x9a   :  { %210 = vst [vmem:[%s440_s3 + $0x20] sm:$0xff] %v194_v53 }
  0x9b   :  { %v146_v54 = vpop.f32.mrf.mxu2 }
  0x9c   :  { %v147_v55 = vadd.f32 %v146_v54, %v355_v32  ;;  %v175_v56 = vpop.f32.mrf.mxu3  ;;  %v90_v57 = vpop.f32.mrf.mxu0 }
  0x9d   :  { %v176_v58 = vadd.f32 %v175_v56, %v357_v33  ;;  %v91_v59 = vadd.f32 %v90_v57, %v349_v25  ;;  %v119_v60 = vpop.f32.mrf.mxu1 }
  0x9e   :  { %v120_v61 = vadd.f32 %v119_v60, %v351_v26 }
  0x9f   :  { %v195_v62 = vpack.c.bf16 %v176_v58, %v147_v55 }
  0xa0   :  { %v196_v63 = vpack.c.bf16 %v120_v61, %v91_v59 }
  0xa1   :  { %211 = vst [vmem:[%s440_s3 + $0x28] sm:$0xff] %v195_v62 }
  0xa2   :  { %212 = vst [vmem:[%s440_s3 + $0x30] sm:$0xff] %v196_v63 }
  0xa3   :  { %v148_v0 = vpop.f32.mrf.mxu2 }
  0xa4   :  { %v149_v1 = vadd.f32 %v148_v0, %v355_v32  ;;  %v177_v2 = vpop.f32.mrf.mxu3  ;;  %v93_v3 = vpop.f32.mrf.mxu0 }
  0xa5   :  { %v178_v4 = vadd.f32 %v177_v2, %v357_v33  ;;  %v94_v5 = vadd.f32 %v93_v3, %v349_v25  ;;  %v122_v6 = vpop.f32.mrf.mxu1 }
  0xa6   :  { %v123_v7 = vadd.f32 %v122_v6, %v351_v26 }
  0xa7   :  { %v197_v8 = vpack.c.bf16 %v178_v4, %v149_v1 }
  0xa8   :  { %v198_v9 = vpack.c.bf16 %v123_v7, %v94_v5 }
  0xa9   :  { %213 = vst [vmem:[%s440_s3 + $0x38] sm:$0xff] %v197_v8 }
  0xaa   :  { %214 = vst [vmem:[%s440_s3 + $0x40] sm:$0xff] %v198_v9 }
  0xab   :  { %v151_v10 = vpop.f32.mrf.mxu2 }
  0xac   :  { %v152_v11 = vadd.f32 %v151_v10, %v355_v32  ;;  %v180_v12 = vpop.f32.mrf.mxu3  ;;  %v95_v13 = vpop.f32.mrf.mxu0 }
  0xad   :  { %v181_v14 = vadd.f32 %v180_v12, %v357_v33  ;;  %v96_v15 = vadd.f32 %v95_v13, %v349_v25  ;;  %v124_v16 = vpop.f32.mrf.mxu1 }
  0xae   :  { %v125_v17 = vadd.f32 %v124_v16, %v351_v26 }
  0xaf   :  { %v199_v18 = vpack.c.bf16 %v181_v14, %v152_v11 }
  0xb0   :  { %v200_v19 = vpack.c.bf16 %v125_v17, %v96_v15 }
  0xb1   :  { %215 = vst [vmem:[%s440_s3 + $0x48] sm:$0xff] %v199_v18 }
  0xb2   :  { %216 = vst [vmem:[%s440_s3 + $0x50] sm:$0xff] %v200_v19 }
  0xb3   :  { %v153_v20 = vpop.f32.mrf.mxu2 }
  0xb4   :  { %v154_v21 = vadd.f32 %v153_v20, %v355_v32  ;;  %v182_v22 = vpop.f32.mrf.mxu3  ;;  %v98_v23 = vpop.f32.mrf.mxu0 }
  0xb5   :  { %v183_v24 = vadd.f32 %v182_v22, %v357_v33  ;;  %v99_v27 = vadd.f32 %v98_v23, %v349_v25  ;;  %v127_v28 = vpop.f32.mrf.mxu1 }
  0xb6   :  { %v128_v29 = vadd.f32 %v127_v28, %v351_v26 }
  0xb7   :  { %v201_v30 = vpack.c.bf16 %v183_v24, %v154_v21 }
  0xb8   :  { %v202_v31 = vpack.c.bf16 %v128_v29, %v99_v27 }
  0xb9   :  { %217 = vst [vmem:[%s440_s3 + $0x58] sm:$0xff] %v201_v30 }
  0xba   :  { %218 = vst [vmem:[%s440_s3 + $0x60] sm:$0xff] %v202_v31 }
  0xbb   :  { %v156_v34 = vpop.f32.mrf.mxu2 }
  0xbc   :  { %v157_v35 = vadd.f32 %v156_v34, %v355_v32  ;;  %v185_v36 = vpop.f32.mrf.mxu3  ;;  %v100_v37 = vpop.f32.mrf.mxu0 }
  0xbd   :  { %v186_v38 = vadd.f32 %v185_v36, %v357_v33  ;;  %v101_v39 = vadd.f32 %v100_v37, %v349_v25  ;;  %v129_v40 = vpop.f32.mrf.mxu1 }
  0xbe   :  { %v130_v41 = vadd.f32 %v129_v40, %v351_v26 }
  0xbf   :  { %v203_v42 = vpack.c.bf16 %v186_v38, %v157_v35 }
  0xc0   :  { %v204_v43 = vpack.c.bf16 %v130_v41, %v101_v39 }
  0xc1   :  { %219 = vst [vmem:[%s440_s3 + $0x68] sm:$0xff] %v203_v42 }
  0xc2   :  { %220 = vst [vmem:[%s440_s3 + $0x70] sm:$0xff] %v204_v43 }
  0xc3   :  { %v158_v44 = vpop.f32.mrf.mxu2 }
  0xc4   :  { %v159_v45 = vadd.f32 %v158_v44, %v355_v32  ;;  %v187_v46 = vpop.f32.mrf.mxu3 }
  0xc5   :  { %v188_v47 = vadd.f32 %v187_v46, %v357_v33 }
  0xc7   :  { %v205_v25 = vpack.c.bf16 %v188_v47, %v159_v45 }
  0xc9   :  { %221 = vst [vmem:[%s440_s3 + $0x78] sm:$0xff] %v205_v25 }

// kernel: multi_lstm_seq_forward.5
= control target key start
LH: loop header
LB: loop body
LE: loop exit
PB: predicated region body
PF: predicated region fallthrough
CT: control target
= control target key end

     0   :  { %s2209_s1 = inlined_call_operand.vmem [shape: bf16[128,512], index: 1, kind: input, shape index: {}]   ;;  %s2210_s0 = inlined_call_operand.vmem [shape: bf16[8,8,512], index: 0, kind: input, shape index: {}]   ;;  %s2211_s2 = inlined_call_operand.vmem [shape: f32[8,8,128], index: 2, kind: output, shape index: {}]  }
   0x1   :  { %v1361_v0 = vld [vmem:[%s2209_s1 + $0xe0] sm:$0xf]  ;;  %v1450_v1 = vld [vmem:[%s2209_s1 + $0xec] sm:$0xf0]  ;;  %v1448_v2 = vld [vmem:[%s2209_s1 + $0xe4] sm:$0xf] }
   0x2   :  { %v1606_v3 = vor.u32 %v1450_v1, %v1361_v0  ;;  %v1363_v4 = vld [vmem:[%s2209_s1 + $0xf0] sm:$0xf0]  ;;  %v1449_v5 = vld [vmem:[%s2209_s1 + $0xec] sm:$0xf]  ;;  %v1371_v6 = vld [vmem:[%s2209_s1 + $0xf8] sm:$0xf0] }
   0x3   :  { %v1617_v7 = vor.u32 %v1448_v2, %v1363_v4  ;;  %v1619_v8 = vor.u32 %v1449_v5, %v1371_v6  ;;  %v1345_v9 = vld [vmem:[%s2209_s1 + $0xc0] sm:$0xf]  ;;  %v1446_v10 = vld [vmem:[%s2209_s1 + $0xcc] sm:$0xf0]  ;;  %v1444_v11 = vld [vmem:[%s2209_s1 + $0xc4] sm:$0xf] }
   0x4   :  { %218 = vmatpush.bf16.msra.mxu0 %v1606_v3  ;;  %v1631_v12 = vor.u32 %v1446_v10, %v1345_v9  ;;  %v1347_v13 = vld [vmem:[%s2209_s1 + $0xd0] sm:$0xf0]  ;;  %v1445_v14 = vld [vmem:[%s2209_s1 + $0xcc] sm:$0xf]  ;;  %v1355_v15 = vld [vmem:[%s2209_s1 + $0xd8] sm:$0xf0] }
   0x5   :  { %231 = vmatpush.bf16.msra.mxu1 %v1617_v7  ;;  %257 = vmatpush.bf16.msra.mxu3 %v1619_v8  ;;  %v1644_v16 = vor.u32 %v1444_v11, %v1347_v13  ;;  %v1646_v17 = vor.u32 %v1445_v14, %v1355_v15  ;;  %v1369_v18 = vld [vmem:[%s2209_s1 + $0xe8] sm:$0xf]  ;;  %v1451_v19 = vld [vmem:[%s2209_s1 + $0xf4] sm:$0xf0]  ;;  %v1329_v20 = vld [vmem:[%s2209_s1 + $0xa0] sm:$0xf] }
   0x6   :  { %v1657_v21 = vor.u32 %v1451_v19, %v1369_v18  ;;  %v1442_v22 = vld [vmem:[%s2209_s1 + $0xac] sm:$0xf0]  ;;  %v1440_v23 = vld [vmem:[%s2209_s1 + $0xa4] sm:$0xf]  ;;  %v1331_v24 = vld [vmem:[%s2209_s1 + $0xb0] sm:$0xf0] }
   0x7   :  { %v1441_v25 = vld [vmem:[%s2209_s1 + $0xac] sm:$0xf]  ;;  %v1339_v26 = vld [vmem:[%s2209_s1 + $0xb8] sm:$0xf0]  ;;  %v1353_v27 = vld [vmem:[%s2209_s1 + $0xc8] sm:$0xf]  ;;  %v1679_v28 = vor.u32 %v1442_v22, %v1329_v20  ;;  %v1692_v32 = vor.u32 %v1440_v23, %v1331_v24 }
   0x8   :  { %219 = vmatpush.bf16.msra.mxu0 %v1631_v12  ;;  %244 = vmatpush.bf16.msra.mxu2 %v1657_v21  ;;  %v1447_v29 = vld [vmem:[%s2209_s1 + $0xd4] sm:$0xf0]  ;;  %v1313_v30 = vld [vmem:[%s2209_s1 + $0x80] sm:$0xf]  ;;  %v1438_v31 = vld [vmem:[%s2209_s1 + $0x8c] sm:$0xf0]  ;;  %v1694_v33 = vor.u32 %v1441_v25, %v1339_v26 }
   0x9   :  { %232 = vmatpush.bf16.msra.mxu1 %v1644_v16  ;;  %258 = vmatpush.bf16.msra.mxu3 %v1646_v17  ;;  %v1696_v34 = vor.u32 %v1447_v29, %v1353_v27  ;;  %v1436_v35 = vld [vmem:[%s2209_s1 + $0x84] sm:$0xf]  ;;  %v1315_v36 = vld [vmem:[%s2209_s1 + $0x90] sm:$0xf0]  ;;  %v1437_v37 = vld [vmem:[%s2209_s1 + $0x8c] sm:$0xf]  ;;  %v1718_v41 = vor.u32 %v1438_v31, %v1313_v30 }
   0xa   :  { %v1323_v38 = vld [vmem:[%s2209_s1 + $0x98] sm:$0xf0]  ;;  %v1337_v39 = vld [vmem:[%s2209_s1 + $0xa8] sm:$0xf]  ;;  %v1443_v40 = vld [vmem:[%s2209_s1 + $0xb4] sm:$0xf0]  ;;  %v1730_v45 = vor.u32 %v1436_v35, %v1315_v36 }
   0xb   :  { %v1720_v42 = vor.u32 %v1443_v40, %v1337_v39  ;;  %v1297_v43 = vld [vmem:[%s2209_s1 + $0x60] sm:$0xf]  ;;  %v1434_v44 = vld [vmem:[%s2209_s1 + $0x6c] sm:$0xf0]  ;;  %v1732_v46 = vor.u32 %v1437_v37, %v1323_v38  ;;  %v1432_v47 = vld [vmem:[%s2209_s1 + $0x64] sm:$0xf] }
   0xc   :  { %220 = vmatpush.bf16.msra.mxu0 %v1679_v28  ;;  %245 = vmatpush.bf16.msra.mxu2 %v1696_v34  ;;  %v1321_v48 = vld [vmem:[%s2209_s1 + $0x88] sm:$0xf]  ;;  %v1439_v49 = vld [vmem:[%s2209_s1 + $0x94] sm:$0xf0]  ;;  %v1299_v50 = vld [vmem:[%s2209_s1 + $0x70] sm:$0xf0]  ;;  %v1754_v53 = vor.u32 %v1434_v44, %v1297_v43 }
   0xd   :  { %233 = vmatpush.bf16.msra.mxu1 %v1692_v32  ;;  %259 = vmatpush.bf16.msra.mxu3 %v1694_v33  ;;  %v1433_v51 = vld [vmem:[%s2209_s1 + $0x6c] sm:$0xf]  ;;  %v1307_v52 = vld [vmem:[%s2209_s1 + $0x78] sm:$0xf0]  ;;  %v1756_v54 = vor.u32 %v1439_v49, %v1321_v48  ;;  %v1281_v55 = vld [vmem:[%s2209_s1 + $0x40] sm:$0xf]  ;;  %v1766_v57 = vor.u32 %v1432_v47, %v1299_v50 }
   0xe   :  { %v1430_v56 = vld [vmem:[%s2209_s1 + $0x4c] sm:$0xf0]  ;;  %v1768_v58 = vor.u32 %v1433_v51, %v1307_v52  ;;  %v1428_v59 = vld [vmem:[%s2209_s1 + $0x44] sm:$0xf]  ;;  %v1305_v60 = vld [vmem:[%s2209_s1 + $0x68] sm:$0xf] }
   0xf   :  { %v1435_v61 = vld [vmem:[%s2209_s1 + $0x74] sm:$0xf0]  ;;  %v1283_v62 = vld [vmem:[%s2209_s1 + $0x50] sm:$0xf0]  ;;  %v1429_v63 = vld [vmem:[%s2209_s1 + $0x4c] sm:$0xf]  ;;  %v1790_v1 = vor.u32 %v1430_v56, %v1281_v55 }
  0x10   :  { %221 = vmatpush.bf16.msra.mxu0 %v1718_v41  ;;  %246 = vmatpush.bf16.msra.mxu2 %v1720_v42  ;;  %v1291_v0 = vld [vmem:[%s2209_s1 + $0x58] sm:$0xf0]  ;;  %v1792_v2 = vor.u32 %v1435_v61, %v1305_v60  ;;  %v1265_v4 = vld [vmem:[%s2209_s1 + $0x20] sm:$0xf]  ;;  %v1426_v5 = vld [vmem:[%s2209_s1 + $0x2c] sm:$0xf0]  ;;  %v1802_v6 = vor.u32 %v1428_v59, %v1283_v62 }
  0x11   :  { %234 = vmatpush.bf16.msra.mxu1 %v1730_v45  ;;  %260 = vmatpush.bf16.msra.mxu3 %v1732_v46  ;;  %v1804_v9 = vor.u32 %v1429_v63, %v1291_v0  ;;  %v1424_v10 = vld [vmem:[%s2209_s1 + $0x24] sm:$0xf]  ;;  %v1289_v11 = vld [vmem:[%s2209_s1 + $0x48] sm:$0xf]  ;;  %v1431_v13 = vld [vmem:[%s2209_s1 + $0x54] sm:$0xf0]  ;;  %v1826_v19 = vor.u32 %v1426_v5, %v1265_v4 }
  0x12   :  { %v1267_v14 = vld [vmem:[%s2209_s1 + $0x30] sm:$0xf0]  ;;  %v1425_v15 = vld [vmem:[%s2209_s1 + $0x2c] sm:$0xf]  ;;  %v1275_v18 = vld [vmem:[%s2209_s1 + $0x38] sm:$0xf0]  ;;  %v1828_v20 = vor.u32 %v1431_v13, %v1289_v11 }
  0x13   :  { %v1249_v22 = vld [vmem:[%s2209_s1] sm:$0xf]  ;;  %v1422_v23 = vld [vmem:[%s2209_s1 + $0xc] sm:$0xf0]  ;;  %v1838_v24 = vor.u32 %v1424_v10, %v1267_v14  ;;  %v1840_v25 = vor.u32 %v1425_v15, %v1275_v18  ;;  %v1420_v26 = vld [vmem:[%s2209_s1 + $0x4] sm:$0xf] }
  0x14   :  { %222 = vmatpush.bf16.msra.mxu0 %v1754_v53  ;;  %247 = vmatpush.bf16.msra.mxu2 %v1756_v54  ;;  %v1273_v27 = vld [vmem:[%s2209_s1 + $0x28] sm:$0xf]  ;;  %v1427_v29 = vld [vmem:[%s2209_s1 + $0x34] sm:$0xf0]  ;;  %v1251_v30 = vld [vmem:[%s2209_s1 + $0x10] sm:$0xf0]  ;;  %v1862_v36 = vor.u32 %v1422_v23, %v1249_v22 }
  0x15   :  { %235 = vmatpush.bf16.msra.mxu1 %v1766_v57  ;;  %261 = vmatpush.bf16.msra.mxu3 %v1768_v58  ;;  %v1421_v31 = vld [vmem:[%s2209_s1 + $0xc] sm:$0xf]  ;;  %v1259_v35 = vld [vmem:[%s2209_s1 + $0x18] sm:$0xf0]  ;;  %v1864_v37 = vor.u32 %v1427_v29, %v1273_v27  ;;  %v1868_v38 = vor.u32 %v1420_v26, %v1251_v30  ;;  %v1257_v40 = vld [vmem:[%s2209_s1 + $0x8] sm:$0xf] }
  0x16   :  { %v1870_v39 = vor.u32 %v1421_v31, %v1259_v35  ;;  %v1423_v43 = vld [vmem:[%s2209_s1 + $0x14] sm:$0xf0]  ;;  %v1581_v47 = vmov 0.0|0.0   ;;  %v51_v48 = vld [vmem:[%s2210_s0] sm:$0xff]  ;;  %v52_v56 = vld [vmem:[%s2210_s0 + $0x8] sm:$0xff] }
  0x17   :  { %v1882_v44 = vor.u32 %v1423_v43, %v1257_v40  ;;  %v53_v49 = vunpack.c.l.bf16 %v51_v48  ;;  %v54_v50 = vunpack.c.h.bf16 %v51_v48  ;;  %v56_v62 = vunpack.c.h.bf16 %v52_v56 }
  0x18   :  { %223 = vmatpush.bf16.msra.mxu0 %v1790_v1  ;;  %248 = vmatpush.bf16.msra.mxu2 %v1792_v2  ;;  %v55_v22 = vunpack.c.l.bf16 %v52_v56 }
  0x19   :  { %236 = vmatpush.bf16.msra.mxu1 %v1802_v6  ;;  %262 = vmatpush.bf16.msra.mxu3 %v1804_v9 }
  0x1c   :  { %224 = vmatpush.bf16.msra.mxu0 %v1826_v19  ;;  %249 = vmatpush.bf16.msra.mxu2 %v1828_v20 }
  0x1d   :  { %237 = vmatpush.bf16.msra.mxu1 %v1838_v24  ;;  %263 = vmatpush.bf16.msra.mxu3 %v1840_v25 }
  0x20   :  { %225 = vmatpush.bf16.msra.mxu0 %v1862_v36  ;;  %250 = vmatpush.bf16.msra.mxu2 %v1864_v37 }
  0x21   :  { %238 = vmatpush.bf16.msra.mxu1 %v1868_v38  ;;  %264 = vmatpush.bf16.msra.mxu3 %v1870_v39 }
  0x23   :  { %226 = vmatmul.bf16.vlgmr.msra.gmra.mxu0 %v1581_v47 }
  0x24   :  { %346 = vmatpush.bf16.msrb.mxu0 %v1606_v3  ;;  %239 = vmatmul.bf16.vlgmr.msra.gmra.mxu1 %v1581_v47 }
  0x25   :  { %359 = vmatpush.bf16.msrb.mxu1 %v1617_v7  ;;  %385 = vmatpush.bf16.msrb.mxu3 %v1619_v8 }
  0x26   :  { %265 = vmatmul.bf16.vlgmr.msra.gmra.mxu3 %v1581_v47  ;;  %251 = vmatpush.bf16.msra.mxu2 %v1882_v44 }
  0x28   :  { %347 = vmatpush.bf16.msrb.mxu0 %v1631_v12 }
  0x29   :  { %360 = vmatpush.bf16.msrb.mxu1 %v1644_v16  ;;  %386 = vmatpush.bf16.msrb.mxu3 %v1646_v17 }
  0x2a   :  { %372 = vmatpush.bf16.msrb.mxu2 %v1657_v21 }
  0x2b   :  { %252 = vmatmul.bf16.vlgmr.msra.gmra.mxu2 %v1581_v47 }
  0x2c   :  { %348 = vmatpush.bf16.msrb.mxu0 %v1679_v28 }
  0x2d   :  { %361 = vmatpush.bf16.msrb.mxu1 %v1692_v32  ;;  %387 = vmatpush.bf16.msrb.mxu3 %v1694_v33 }
  0x2e   :  { %373 = vmatpush.bf16.msrb.mxu2 %v1696_v34 }
  0x30   :  { %349 = vmatpush.bf16.msrb.mxu0 %v1718_v41 }
  0x31   :  { %362 = vmatpush.bf16.msrb.mxu1 %v1730_v45  ;;  %388 = vmatpush.bf16.msrb.mxu3 %v1732_v46 }
  0x32   :  { %374 = vmatpush.bf16.msrb.mxu2 %v1720_v42 }
  0x34   :  { %350 = vmatpush.bf16.msrb.mxu0 %v1754_v53 }
  0x35   :  { %363 = vmatpush.bf16.msrb.mxu1 %v1766_v57  ;;  %389 = vmatpush.bf16.msrb.mxu3 %v1768_v58 }
  0x36   :  { %375 = vmatpush.bf16.msrb.mxu2 %v1756_v54 }
  0x38   :  { %351 = vmatpush.bf16.msrb.mxu0 %v1790_v1 }
  0x39   :  { %364 = vmatpush.bf16.msrb.mxu1 %v1802_v6  ;;  %390 = vmatpush.bf16.msrb.mxu3 %v1804_v9 }
  0x3a   :  { %376 = vmatpush.bf16.msrb.mxu2 %v1792_v2 }
  0x3c   :  { %352 = vmatpush.bf16.msrb.mxu0 %v1826_v19 }
  0x3d   :  { %365 = vmatpush.bf16.msrb.mxu1 %v1838_v24  ;;  %391 = vmatpush.bf16.msrb.mxu3 %v1840_v25 }
  0x3e   :  { %377 = vmatpush.bf16.msrb.mxu2 %v1828_v20 }
  0x40   :  { %353 = vmatpush.bf16.msrb.mxu0 %v1862_v36 }
  0x41   :  { %366 = vmatpush.bf16.msrb.mxu1 %v1868_v38  ;;  %392 = vmatpush.bf16.msrb.mxu3 %v1870_v39 }
  0x42   :  { %378 = vmatpush.bf16.msrb.mxu2 %v1864_v37 }
  0x44   :  { %475 = vmatpush.bf16.msra.mxu0 %v1606_v3 }
  0x45   :  { %488 = vmatpush.bf16.msra.mxu1 %v1617_v7  ;;  %514 = vmatpush.bf16.msra.mxu3 %v1619_v8 }
  0x46   :  { %379 = vmatpush.bf16.msrb.mxu2 %v1882_v44 }
  0x48   :  { %476 = vmatpush.bf16.msra.mxu0 %v1631_v12 }
  0x49   :  { %489 = vmatpush.bf16.msra.mxu1 %v1644_v16  ;;  %515 = vmatpush.bf16.msra.mxu3 %v1646_v17 }
  0x4a   :  { %501 = vmatpush.bf16.msra.mxu2 %v1657_v21 }
  0x4c   :  { %477 = vmatpush.bf16.msra.mxu0 %v1679_v28 }
  0x4d   :  { %490 = vmatpush.bf16.msra.mxu1 %v1692_v32  ;;  %516 = vmatpush.bf16.msra.mxu3 %v1694_v33 }
  0x4e   :  { %502 = vmatpush.bf16.msra.mxu2 %v1696_v34 }
  0x50   :  { %478 = vmatpush.bf16.msra.mxu0 %v1718_v41 }
  0x51   :  { %491 = vmatpush.bf16.msra.mxu1 %v1730_v45  ;;  %517 = vmatpush.bf16.msra.mxu3 %v1732_v46 }
  0x52   :  { %503 = vmatpush.bf16.msra.mxu2 %v1720_v42 }
  0x54   :  { %479 = vmatpush.bf16.msra.mxu0 %v1754_v53 }
  0x55   :  { %492 = vmatpush.bf16.msra.mxu1 %v1766_v57  ;;  %518 = vmatpush.bf16.msra.mxu3 %v1768_v58 }
  0x56   :  { %504 = vmatpush.bf16.msra.mxu2 %v1756_v54 }
  0x58   :  { %480 = vmatpush.bf16.msra.mxu0 %v1790_v1 }
  0x59   :  { %493 = vmatpush.bf16.msra.mxu1 %v1802_v6  ;;  %519 = vmatpush.bf16.msra.mxu3 %v1804_v9 }
  0x5a   :  { %505 = vmatpush.bf16.msra.mxu2 %v1792_v2 }
  0x5c   :  { %481 = vmatpush.bf16.msra.mxu0 %v1826_v19 }
  0x5d   :  { %494 = vmatpush.bf16.msra.mxu1 %v1838_v24  ;;  %520 = vmatpush.bf16.msra.mxu3 %v1840_v25 }
  0x5e   :  { %506 = vmatpush.bf16.msra.mxu2 %v1828_v20 }
  0x60   :  { %482 = vmatpush.bf16.msra.mxu0 %v1862_v36 }
  0x61   :  { %495 = vmatpush.bf16.msra.mxu1 %v1868_v38  ;;  %521 = vmatpush.bf16.msra.mxu3 %v1870_v39 }
  0x62   :  { %507 = vmatpush.bf16.msra.mxu2 %v1864_v37 }
  0x66   :  { %508 = vmatpush.bf16.msra.mxu2 %v1882_v44 }
  0xa0   :  { %v227_v51 = vpop.f32.mrf.mxu0 }
  0xa1   :  { %v270_v52 = vadd.f32 %v227_v51, %v53_v49  ;;  %v240_v55 = vpop.f32.mrf.mxu1 }
  0xa2   :  { %v271_v59 = vadd.f32 %v240_v55, %v54_v50 }
  0xa3   :  { %v1375_v60 = vmul.f32 -1.442695, %v270_v52 }
  0xa4   :  { %v1376_v61 = vmul.f32 -1.442695, %v271_v59 }
  0xa5   :  { %1453 = vpow2.f32 %v1375_v60 }
  0xa6   :  { %1455 = vpow2.f32 %v1376_v61 }
  0xa8   :  { %v229_v4 = vpop.f32.mrf.mxu0 }
  0xa9   :  { %v266_v63 = vpop.f32.mrf.mxu3  ;;  %v242_v5 = vpop.f32.mrf.mxu1 }
  0xaa   :  { %v273_v0 = vadd.f32 %v266_v63, %v56_v62 }
  0xab   :  { %v1454_v11 = vpop.eup %1453 }
  0xac   :  { %v1377_v10 = vmul.f32 -1.442695, %v273_v0  ;;  %v1456_v14 = vpop.eup %1455  ;;  %v277_v15 = vadd.f32 1.0, %v1454_v11 }
  0xad   :  { %v296_v18 = vadd.f32 1.0, %v1456_v14 }
  0xae   :  { %v253_v13 = vpop.f32.mrf.mxu2  ;;  %1457 = vpow2.f32 %v1377_v10  ;;  %v289_v49 = vand.u32 2147483648, %v277_v15  ;;  %v287_v52 = vand.u32 2147483647, %v277_v15  ;;  %vm283_vm2 = vweird.f32 %v277_v15 }
  0xaf   :  { %1459 = vrcp.f32 %v277_v15  ;;  %v272_v27 = vadd.f32 %v253_v13, %v55_v22  ;;  %v308_v50 = vand.u32 2147483648, %v296_v18  ;;  %v306_v56 = vand.u32 2147483647, %v296_v18 }
  0xb0   :  { %1461 = vrcp.f32 %v296_v18  ;;  %vm302_vm3 = vweird.f32 %v296_v18  ;;  %v290_v63 = vor.u32 1.1754944e-38, %v289_v49  ;;  %vm288_vm5 = vcmp.eq.f32.partialorder %v287_v52, 8.507059e+37 }
  0xb1   :  { %v268_v23 = vpop.f32.mrf.mxu3  ;;  %v309_v4 = vor.u32 1.1754944e-38, %v308_v50  ;;  %vm307_vm7 = vcmp.eq.f32.partialorder %v306_v56, 8.507059e+37 }
  0xb4   :  { %v1458_v26 = vpop.eup %1457 }
  0xb5   :  { %v316_v29 = vadd.f32 1.0, %v1458_v26  ;;  %v1460_v31 = vpop.eup %1459 }
  0xb6   :  { %v255_v30 = vpop.f32.mrf.mxu2  ;;  %v1462_v35 = vpop.eup %1461  ;;  %v279_v40 = vmul.f32 %v1460_v31, %v277_v15  ;;  %vm284_vm0 = vweird.f32 %v1460_v31 }
  0xb7   :  { %1463 = vrcp.f32 %v316_v29  ;;  %v298_v43 = vmul.f32 %v1462_v35, %v296_v18  ;;  %vm303_vm1 = vweird.f32 %v1462_v35  ;;  %vm285_vm4 = vmor %vm283_vm2, %vm284_vm0  ;;  %v328_v18 = vand.u32 2147483648, %v316_v29 }
  0xb8   :  { %1465 = vtanh.f32 %v272_v27  ;;  %v280_v47 = vsub.f32 1.0, %v279_v40  ;;  %vm304_vm6 = vmor %vm302_vm3, %vm303_vm1  ;;  %vm322_vm9 = vweird.f32 %v316_v29  ;;  %v326_v30 = vand.u32 2147483647, %v316_v29 }
  0xb9   :  { %v299_v48 = vsub.f32 1.0, %v298_v43  ;;  %v329_v40 = vor.u32 1.1754944e-38, %v328_v18 }
  0xba   :  { %v281_v51 = vmul.f32 %v1460_v31, %v280_v47  ;;  %vm327_vm11 = vcmp.eq.f32.partialorder %v326_v30, 8.507059e+37 }
  0xbb   :  { %v300_v55 = vmul.f32 %v1462_v35, %v299_v48 }
  0xbc   :  { %v282_v60 = vadd.f32 %v1460_v31, %v281_v51 }
  0xbd   :  { %v1464_v59 = vpop.eup %1463  ;;  %v301_v0 = vadd.f32 %v1462_v35, %v300_v55 }
  0xbe   :  { %v1466_v61 = vpop.eup %1465  ;;  %v318_v62 = vmul.f32 %v1464_v59, %v316_v29  ;;  %v286_v5 = vsel %vm285_vm4, %v1460_v31, %v282_v60  ;;  %vm323_vm8 = vweird.f32 %v1464_v59  ;;  %v1378_v29 = vld [vmem:[%s2210_s0 + $0x10] sm:$0xff] }
  0xbf   :  { %v291_v11 = vsel %vm288_vm5, %v290_v63, %v286_v5  ;;  %v305_v13 = vsel %vm304_vm6, %v1462_v35, %v301_v0  ;;  %vm324_vm10 = vmor %vm322_vm9, %vm323_vm8  ;;  %v341_v49 = vunpack.c.l.bf16 %v1378_v29  ;;  %v342_v50 = vunpack.c.h.bf16 %v1378_v29 }
  0xc0   :  { %v319_v10 = vsub.f32 1.0, %v318_v62  ;;  %v310_v14 = vsel %vm307_vm7, %v309_v4, %v305_v13  ;;  %v333_v22 = vmul.f32 %v1466_v61, %v291_v11 }
  0xc1   :  { %v332_v26 = vmul.f32 0.0, %v310_v14 }
  0xc2   :  { %v320_v23 = vmul.f32 %v1464_v59, %v319_v10 }
  0xc3   :  { %v1955_v27 = vadd.f32 %v333_v22, %v332_v26 }
  0xc4   :  { %v321_v15 = vadd.f32 %v1464_v59, %v320_v23 }
  0xc5   :  { %1467 = vtanh.f32 %v1955_v27 }
  0xc6   :  { %v325_v31 = vsel %vm324_vm10, %v1464_v59, %v321_v15  ;;  %v1379_v59 = vld [vmem:[%s2210_s0 + $0x18] sm:$0xff] }
  0xc7   :  { %v330_v35 = vsel %vm327_vm11, %v329_v40, %v325_v31  ;;  %v344_v62 = vunpack.c.h.bf16 %v1379_v59  ;;  %v343_v18 = vunpack.c.l.bf16 %v1379_v59 }
  0xcb   :  { %v1468_v43 = vpop.eup %1467 }
  0xcc   :  { %v336_v47 = vmul.f32 %v1468_v43, %v330_v35 }
  0xce   :  { %337 = vst [vmem:[%s2211_s2] sm:$0xff] %v336_v47  ;;  %v345_v48 = vpack.c.bf16 %v336_v47, %v336_v47 }
  0xd0   :  { %354 = vmatmul.bf16.vlgmr.msrb.gmra.mxu0 %v345_v48  ;;  %367 = vmatmul.bf16.vlgmr.msrb.gmra.mxu1 %v345_v48 }
  0xd1   :  { %380 = vmatmul.bf16.vlgmr.msrb.gmra.mxu2 %v345_v48  ;;  %393 = vmatmul.bf16.vlgmr.msrb.gmra.mxu3 %v345_v48 }
  0xd2   :  { %604 = vmatpush.bf16.msrb.mxu0 %v1606_v3  ;;  %617 = vmatpush.bf16.msrb.mxu1 %v1617_v7 }
  0xd3   :  { %630 = vmatpush.bf16.msrb.mxu2 %v1657_v21  ;;  %643 = vmatpush.bf16.msrb.mxu3 %v1619_v8 }
  0xd6   :  { %605 = vmatpush.bf16.msrb.mxu0 %v1631_v12  ;;  %618 = vmatpush.bf16.msrb.mxu1 %v1644_v16 }
  0xd7   :  { %631 = vmatpush.bf16.msrb.mxu2 %v1696_v34  ;;  %644 = vmatpush.bf16.msrb.mxu3 %v1646_v17 }
  0xda   :  { %606 = vmatpush.bf16.msrb.mxu0 %v1679_v28  ;;  %619 = vmatpush.bf16.msrb.mxu1 %v1692_v32 }
  0xdb   :  { %632 = vmatpush.bf16.msrb.mxu2 %v1720_v42  ;;  %645 = vmatpush.bf16.msrb.mxu3 %v1694_v33 }
  0xde   :  { %607 = vmatpush.bf16.msrb.mxu0 %v1718_v41  ;;  %620 = vmatpush.bf16.msrb.mxu1 %v1730_v45 }
  0xdf   :  { %633 = vmatpush.bf16.msrb.mxu2 %v1756_v54  ;;  %646 = vmatpush.bf16.msrb.mxu3 %v1732_v46 }
  0xe2   :  { %608 = vmatpush.bf16.msrb.mxu0 %v1754_v53  ;;  %621 = vmatpush.bf16.msrb.mxu1 %v1766_v57 }
  0xe3   :  { %634 = vmatpush.bf16.msrb.mxu2 %v1792_v2  ;;  %647 = vmatpush.bf16.msrb.mxu3 %v1768_v58 }
  0xe6   :  { %609 = vmatpush.bf16.msrb.mxu0 %v1790_v1  ;;  %622 = vmatpush.bf16.msrb.mxu1 %v1802_v6 }
  0xe7   :  { %635 = vmatpush.bf16.msrb.mxu2 %v1828_v20  ;;  %648 = vmatpush.bf16.msrb.mxu3 %v1804_v9 }
  0xea   :  { %610 = vmatpush.bf16.msrb.mxu0 %v1826_v19  ;;  %623 = vmatpush.bf16.msrb.mxu1 %v1838_v24 }
  0xeb   :  { %636 = vmatpush.bf16.msrb.mxu2 %v1864_v37  ;;  %649 = vmatpush.bf16.msrb.mxu3 %v1840_v25 }
  0xee   :  { %611 = vmatpush.bf16.msrb.mxu0 %v1862_v36  ;;  %624 = vmatpush.bf16.msrb.mxu1 %v1868_v38 }
  0xef   :  { %637 = vmatpush.bf16.msrb.mxu2 %v1882_v44  ;;  %650 = vmatpush.bf16.msrb.mxu3 %v1870_v39 }
 0x14d   :  { %v355_v51 = vpop.f32.mrf.mxu0  ;;  %v368_v52 = vpop.f32.mrf.mxu1 }
 0x14e   :  { %v398_v55 = vadd.f32 %v355_v51, %v341_v49  ;;  %v399_v56 = vadd.f32 %v368_v52, %v342_v50 }
 0x150   :  { %v1380_v60 = vmul.f32 -1.442695, %v398_v55  ;;  %v1381_v61 = vmul.f32 -1.442695, %v399_v56 }
 0x152   :  { %1469 = vpow2.f32 %v1380_v60 }
 0x153   :  { %1471 = vpow2.f32 %v1381_v61 }
 0x154   :  { %v381_v63 = vpop.f32.mrf.mxu2  ;;  %v394_v0 = vpop.f32.mrf.mxu3 }
 0x155   :  { %v401_v4 = vadd.f32 %v394_v0, %v344_v62  ;;  %v357_v5 = vpop.f32.mrf.mxu0  ;;  %v370_v10 = vpop.f32.mrf.mxu1  ;;  %v400_v43 = vadd.f32 %v381_v63, %v343_v18 }
 0x157   :  { %v1382_v11 = vmul.f32 -1.442695, %v401_v4 }
 0x158   :  { %v1470_v13 = vpop.eup %1469 }
 0x159   :  { %v1472_v14 = vpop.eup %1471  ;;  %v405_v22 = vadd.f32 1.0, %v1470_v13  ;;  %1473 = vpow2.f32 %v1382_v11 }
 0x15a   :  { %v424_v23 = vadd.f32 1.0, %v1472_v14 }
 0x15b   :  { %1475 = vrcp.f32 %v405_v22  ;;  %v417_v50 = vand.u32 2147483648, %v405_v22  ;;  %v415_v55 = vand.u32 2147483647, %v405_v22  ;;  %vm411_vm14 = vweird.f32 %v405_v22 }
 0x15c   :  { %1477 = vrcp.f32 %v424_v23  ;;  %v383_v26 = vpop.f32.mrf.mxu2  ;;  %v396_v15 = vpop.f32.mrf.mxu3  ;;  %v436_v51 = vand.u32 2147483648, %v424_v23  ;;  %v434_v60 = vand.u32 2147483647, %v424_v23  ;;  %vm430_vm15 = vweird.f32 %v424_v23 }
 0x15d   :  { %v418_v62 = vor.u32 1.1754944e-38, %v417_v50  ;;  %vm416_vm2 = vcmp.eq.f32.partialorder %v415_v55, 8.507059e+37 }
 0x15e   :  { %v437_v4 = vor.u32 1.1754944e-38, %v436_v51  ;;  %vm435_vm3 = vcmp.eq.f32.partialorder %v434_v60, 8.507059e+37 }
 0x15f   :  { %v1474_v30 = vpop.eup %1473 }
 0x160   :  { %v444_v31 = vadd.f32 1.0, %v1474_v30 }
 0x161   :  { %v1476_v40 = vpop.eup %1475 }
 0x162   :  { %v1478_v35 = vpop.eup %1477  ;;  %v407_v47 = vmul.f32 %v1476_v40, %v405_v22  ;;  %1479 = vrcp.f32 %v444_v31  ;;  %vm412_vm12 = vweird.f32 %v1476_v40  ;;  %vm450_vm5 = vweird.f32 %v444_v31 }
 0x163   :  { %v426_v48 = vmul.f32 %v1478_v35, %v424_v23  ;;  %1481 = vtanh.f32 %v400_v43  ;;  %vm431_vm13 = vweird.f32 %v1478_v35  ;;  %vm413_vm0 = vmor %vm411_vm14, %vm412_vm12  ;;  %v456_v43 = vand.u32 2147483648, %v444_v31 }
 0x164   :  { %v408_v29 = vsub.f32 1.0, %v407_v47  ;;  %vm432_vm1 = vmor %vm430_vm15, %vm431_vm13 }
 0x165   :  { %v427_v49 = vsub.f32 1.0, %v426_v48  ;;  %v457_v48 = vor.u32 1.1754944e-38, %v456_v43 }
 0x166   :  { %v409_v52 = vmul.f32 %v1476_v40, %v408_v29 }
 0x167   :  { %v428_v56 = vmul.f32 %v1478_v35, %v427_v49 }
 0x168   :  { %v1480_v59 = vpop.eup %1479  ;;  %v410_v61 = vadd.f32 %v1476_v40, %v409_v52 }
 0x169   :  { %v429_v63 = vadd.f32 %v1478_v35, %v428_v56  ;;  %v446_v0 = vmul.f32 %v1480_v59, %v444_v31  ;;  %v1482_v10 = vpop.eup %1481  ;;  %vm451_vm4 = vweird.f32 %v1480_v59 }
 0x16a   :  { %v414_v5 = vsel %vm413_vm0, %v1476_v40, %v410_v61  ;;  %v454_v40 = vand.u32 2147483647, %v444_v31  ;;  %vm452_vm6 = vmor %vm450_vm5, %vm451_vm4  ;;  %v1384_v31 = vld [vmem:[%s2210_s0 + $0x20] sm:$0xff] }
 0x16b   :  { %v419_v11 = vsel %vm416_vm2, %v418_v62, %v414_v5  ;;  %v433_v13 = vsel %vm432_vm1, %v1478_v35, %v429_v63  ;;  %v447_v14 = vsub.f32 1.0, %v446_v0  ;;  %v470_v50 = vunpack.c.l.bf16 %v1384_v31 }
 0x16c   :  { %v438_v26 = vsel %vm435_vm3, %v437_v4, %v433_v13  ;;  %v461_v15 = vmul.f32 %v1482_v10, %v419_v11  ;;  %vm455_vm7 = vcmp.eq.f32.partialorder %v454_v40, 8.507059e+37  ;;  %v471_v51 = vunpack.c.h.bf16 %v1384_v31 }
 0x16d   :  { %v460_v18 = vmul.f32 %v438_v26, %v1955_v27  ;;  %v448_v30 = vmul.f32 %v1480_v59, %v447_v14 }
 0x16f   :  { %v2000_v22 = vadd.f32 %v461_v15, %v460_v18  ;;  %v449_v23 = vadd.f32 %v1480_v59, %v448_v30 }
 0x171   :  { %1483 = vtanh.f32 %v2000_v22  ;;  %v453_v47 = vsel %vm452_vm6, %v1480_v59, %v449_v23  ;;  %v1385_v59 = vld [vmem:[%s2210_s0 + $0x28] sm:$0xff] }
 0x172   :  { %v458_v29 = vsel %vm455_vm7, %v457_v48, %v453_v47  ;;  %v473_v63 = vunpack.c.h.bf16 %v1385_v59  ;;  %v472_v43 = vunpack.c.l.bf16 %v1385_v59 }
 0x177   :  { %v1484_v35 = vpop.eup %1483 }
 0x178   :  { %v464_v49 = vmul.f32 %v1484_v35, %v458_v29 }
 0x17a   :  { %1383 = vst [vmem:[%s2211_s2 + $0x8] sm:$0xff] %v464_v49  ;;  %v474_v27 = vpack.c.bf16 %v464_v49, %v464_v49 }
 0x17c   :  { %483 = vmatmul.bf16.vlgmr.msra.gmra.mxu0 %v474_v27  ;;  %496 = vmatmul.bf16.vlgmr.msra.gmra.mxu1 %v474_v27 }
 0x17d   :  { %509 = vmatmul.bf16.vlgmr.msra.gmra.mxu2 %v474_v27  ;;  %522 = vmatmul.bf16.vlgmr.msra.gmra.mxu3 %v474_v27 }
 0x17e   :  { %733 = vmatpush.bf16.msra.mxu0 %v1606_v3  ;;  %746 = vmatpush.bf16.msra.mxu1 %v1617_v7 }
 0x17f   :  { %759 = vmatpush.bf16.msra.mxu2 %v1657_v21  ;;  %772 = vmatpush.bf16.msra.mxu3 %v1619_v8 }
 0x182   :  { %734 = vmatpush.bf16.msra.mxu0 %v1631_v12  ;;  %747 = vmatpush.bf16.msra.mxu1 %v1644_v16 }
 0x183   :  { %760 = vmatpush.bf16.msra.mxu2 %v1696_v34  ;;  %773 = vmatpush.bf16.msra.mxu3 %v1646_v17 }
 0x186   :  { %735 = vmatpush.bf16.msra.mxu0 %v1679_v28  ;;  %748 = vmatpush.bf16.msra.mxu1 %v1692_v32 }
 0x187   :  { %761 = vmatpush.bf16.msra.mxu2 %v1720_v42  ;;  %774 = vmatpush.bf16.msra.mxu3 %v1694_v33 }
 0x18a   :  { %736 = vmatpush.bf16.msra.mxu0 %v1718_v41  ;;  %749 = vmatpush.bf16.msra.mxu1 %v1730_v45 }
 0x18b   :  { %762 = vmatpush.bf16.msra.mxu2 %v1756_v54  ;;  %775 = vmatpush.bf16.msra.mxu3 %v1732_v46 }
 0x18e   :  { %737 = vmatpush.bf16.msra.mxu0 %v1754_v53  ;;  %750 = vmatpush.bf16.msra.mxu1 %v1766_v57 }
 0x18f   :  { %763 = vmatpush.bf16.msra.mxu2 %v1792_v2  ;;  %776 = vmatpush.bf16.msra.mxu3 %v1768_v58 }
 0x192   :  { %738 = vmatpush.bf16.msra.mxu0 %v1790_v1  ;;  %751 = vmatpush.bf16.msra.mxu1 %v1802_v6 }
 0x193   :  { %764 = vmatpush.bf16.msra.mxu2 %v1828_v20  ;;  %777 = vmatpush.bf16.msra.mxu3 %v1804_v9 }
 0x196   :  { %739 = vmatpush.bf16.msra.mxu0 %v1826_v19  ;;  %752 = vmatpush.bf16.msra.mxu1 %v1838_v24 }
 0x197   :  { %765 = vmatpush.bf16.msra.mxu2 %v1864_v37  ;;  %778 = vmatpush.bf16.msra.mxu3 %v1840_v25 }
 0x19a   :  { %740 = vmatpush.bf16.msra.mxu0 %v1862_v36  ;;  %753 = vmatpush.bf16.msra.mxu1 %v1868_v38 }
 0x19b   :  { %766 = vmatpush.bf16.msra.mxu2 %v1882_v44  ;;  %779 = vmatpush.bf16.msra.mxu3 %v1870_v39 }
 0x1f9   :  { %v484_v52 = vpop.f32.mrf.mxu0  ;;  %v497_v55 = vpop.f32.mrf.mxu1 }
 0x1fa   :  { %v527_v56 = vadd.f32 %v484_v52, %v470_v50  ;;  %v528_v60 = vadd.f32 %v497_v55, %v471_v51 }
 0x1fc   :  { %v1386_v61 = vmul.f32 -1.442695, %v527_v56  ;;  %v1387_v62 = vmul.f32 -1.442695, %v528_v60 }
 0x1fe   :  { %1485 = vpow2.f32 %v1386_v61 }
 0x1ff   :  { %1487 = vpow2.f32 %v1387_v62 }
 0x200   :  { %v510_v0 = vpop.f32.mrf.mxu2  ;;  %v523_v4 = vpop.f32.mrf.mxu3 }
 0x201   :  { %v530_v5 = vadd.f32 %v523_v4, %v473_v63  ;;  %v486_v10 = vpop.f32.mrf.mxu0  ;;  %v499_v11 = vpop.f32.mrf.mxu1  ;;  %v529_v35 = vadd.f32 %v510_v0, %v472_v43 }
 0x203   :  { %v1388_v13 = vmul.f32 -1.442695, %v530_v5 }
 0x204   :  { %v1486_v14 = vpop.eup %1485 }
 0x205   :  { %v1488_v26 = vpop.eup %1487  ;;  %v534_v15 = vadd.f32 1.0, %v1486_v14  ;;  %1489 = vpow2.f32 %v1388_v13 }
 0x206   :  { %v553_v18 = vadd.f32 1.0, %v1488_v26 }
 0x207   :  { %1491 = vrcp.f32 %v534_v15  ;;  %v546_v51 = vand.u32 2147483648, %v534_v15  ;;  %v544_v56 = vand.u32 2147483647, %v534_v15  ;;  %vm540_vm10 = vweird.f32 %v534_v15 }
 0x208   :  { %1493 = vrcp.f32 %v553_v18  ;;  %v512_v30 = vpop.f32.mrf.mxu2  ;;  %v525_v23 = vpop.f32.mrf.mxu3  ;;  %v565_v52 = vand.u32 2147483648, %v553_v18  ;;  %v563_v61 = vand.u32 2147483647, %v553_v18  ;;  %vm559_vm11 = vweird.f32 %v553_v18 }
 0x209   :  { %v547_v63 = vor.u32 1.1754944e-38, %v546_v51  ;;  %vm545_vm14 = vcmp.eq.f32.partialorder %v544_v56, 8.507059e+37 }
 0x20a   :  { %v566_v5 = vor.u32 1.1754944e-38, %v565_v52  ;;  %vm564_vm15 = vcmp.eq.f32.partialorder %v563_v61, 8.507059e+37 }
 0x20b   :  { %v1490_v40 = vpop.eup %1489 }
 0x20c   :  { %v573_v47 = vadd.f32 1.0, %v1490_v40 }
 0x20d   :  { %v1492_v48 = vpop.eup %1491 }
 0x20e   :  { %v1494_v29 = vpop.eup %1493  ;;  %v536_v49 = vmul.f32 %v1492_v48, %v534_v15  ;;  %1495 = vrcp.f32 %v573_v47  ;;  %vm541_vm8 = vweird.f32 %v1492_v48  ;;  %vm579_vm1 = vweird.f32 %v573_v47 }
 0x20f   :  { %v555_v27 = vmul.f32 %v1494_v29, %v553_v18  ;;  %1497 = vtanh.f32 %v529_v35  ;;  %vm560_vm9 = vweird.f32 %v1494_v29  ;;  %vm542_vm12 = vmor %vm540_vm10, %vm541_vm8  ;;  %v585_v35 = vand.u32 2147483648, %v573_v47 }
 0x210   :  { %v537_v31 = vsub.f32 1.0, %v536_v49  ;;  %vm561_vm13 = vmor %vm559_vm11, %vm560_vm9 }
 0x211   :  { %v556_v50 = vsub.f32 1.0, %v555_v27  ;;  %v586_v27 = vor.u32 1.1754944e-38, %v585_v35 }
 0x212   :  { %v538_v55 = vmul.f32 %v1492_v48, %v537_v31 }
 0x213   :  { %v557_v60 = vmul.f32 %v1494_v29, %v556_v50 }
 0x214   :  { %v1496_v59 = vpop.eup %1495  ;;  %v539_v62 = vadd.f32 %v1492_v48, %v538_v55 }
 0x215   :  { %v558_v0 = vadd.f32 %v1494_v29, %v557_v60  ;;  %v575_v4 = vmul.f32 %v1496_v59, %v573_v47  ;;  %v1498_v11 = vpop.eup %1497  ;;  %vm580_vm0 = vweird.f32 %v1496_v59 }
 0x216   :  { %v543_v10 = vsel %vm542_vm12, %v1492_v48, %v539_v62  ;;  %v583_v48 = vand.u32 2147483647, %v573_v47  ;;  %vm581_vm2 = vmor %vm579_vm1, %vm580_vm0  ;;  %v1390_v47 = vld [vmem:[%s2210_s0 + $0x30] sm:$0xff] }
 0x217   :  { %v548_v13 = vsel %vm545_vm14, %v547_v63, %v543_v10  ;;  %v562_v14 = vsel %vm561_vm13, %v1494_v29, %v558_v0  ;;  %v576_v26 = vsub.f32 1.0, %v575_v4  ;;  %v599_v51 = vunpack.c.l.bf16 %v1390_v47 }
 0x218   :  { %v567_v30 = vsel %vm564_vm15, %v566_v5, %v562_v14  ;;  %v590_v23 = vmul.f32 %v1498_v11, %v548_v13  ;;  %vm584_vm3 = vcmp.eq.f32.partialorder %v583_v48, 8.507059e+37  ;;  %v600_v52 = vunpack.c.h.bf16 %v1390_v47 }
 0x219   :  { %v589_v43 = vmul.f32 %v567_v30, %v2000_v22  ;;  %v577_v40 = vmul.f32 %v1496_v59, %v576_v26 }
 0x21b   :  { %v2045_v15 = vadd.f32 %v590_v23, %v589_v43  ;;  %v578_v18 = vadd.f32 %v1496_v59, %v577_v40 }
 0x21d   :  { %1499 = vtanh.f32 %v2045_v15  ;;  %v582_v49 = vsel %vm581_vm2, %v1496_v59, %v578_v18  ;;  %v1391_v59 = vld [vmem:[%s2210_s0 + $0x38] sm:$0xff] }
 0x21e   :  { %v587_v31 = vsel %vm584_vm3, %v586_v27, %v582_v49  ;;  %v602_v0 = vunpack.c.h.bf16 %v1391_v59  ;;  %v601_v35 = vunpack.c.l.bf16 %v1391_v59 }
 0x223   :  { %v1500_v29 = vpop.eup %1499 }
 0x224   :  { %v593_v50 = vmul.f32 %v1500_v29, %v587_v31 }
 0x226   :  { %1389 = vst [vmem:[%s2211_s2 + $0x10] sm:$0xff] %v593_v50  ;;  %v603_v22 = vpack.c.bf16 %v593_v50, %v593_v50 }
 0x228   :  { %612 = vmatmul.bf16.vlgmr.msrb.gmra.mxu0 %v603_v22  ;;  %625 = vmatmul.bf16.vlgmr.msrb.gmra.mxu1 %v603_v22 }
 0x229   :  { %638 = vmatmul.bf16.vlgmr.msrb.gmra.mxu2 %v603_v22  ;;  %651 = vmatmul.bf16.vlgmr.msrb.gmra.mxu3 %v603_v22 }
 0x22a   :  { %862 = vmatpush.bf16.msrb.mxu0 %v1606_v3  ;;  %875 = vmatpush.bf16.msrb.mxu1 %v1617_v7 }
 0x22b   :  { %888 = vmatpush.bf16.msrb.mxu2 %v1657_v21  ;;  %901 = vmatpush.bf16.msrb.mxu3 %v1619_v8 }
 0x22e   :  { %863 = vmatpush.bf16.msrb.mxu0 %v1631_v12  ;;  %876 = vmatpush.bf16.msrb.mxu1 %v1644_v16 }
 0x22f   :  { %889 = vmatpush.bf16.msrb.mxu2 %v1696_v34  ;;  %902 = vmatpush.bf16.msrb.mxu3 %v1646_v17 }
 0x232   :  { %864 = vmatpush.bf16.msrb.mxu0 %v1679_v28  ;;  %877 = vmatpush.bf16.msrb.mxu1 %v1692_v32 }
 0x233   :  { %890 = vmatpush.bf16.msrb.mxu2 %v1720_v42  ;;  %903 = vmatpush.bf16.msrb.mxu3 %v1694_v33 }
 0x236   :  { %865 = vmatpush.bf16.msrb.mxu0 %v1718_v41  ;;  %878 = vmatpush.bf16.msrb.mxu1 %v1730_v45 }
 0x237   :  { %891 = vmatpush.bf16.msrb.mxu2 %v1756_v54  ;;  %904 = vmatpush.bf16.msrb.mxu3 %v1732_v46 }
 0x23a   :  { %866 = vmatpush.bf16.msrb.mxu0 %v1754_v53  ;;  %879 = vmatpush.bf16.msrb.mxu1 %v1766_v57 }
 0x23b   :  { %892 = vmatpush.bf16.msrb.mxu2 %v1792_v2  ;;  %905 = vmatpush.bf16.msrb.mxu3 %v1768_v58 }
 0x23e   :  { %867 = vmatpush.bf16.msrb.mxu0 %v1790_v1  ;;  %880 = vmatpush.bf16.msrb.mxu1 %v1802_v6 }
 0x23f   :  { %893 = vmatpush.bf16.msrb.mxu2 %v1828_v20  ;;  %906 = vmatpush.bf16.msrb.mxu3 %v1804_v9 }
 0x242   :  { %868 = vmatpush.bf16.msrb.mxu0 %v1826_v19  ;;  %881 = vmatpush.bf16.msrb.mxu1 %v1838_v24 }
 0x243   :  { %894 = vmatpush.bf16.msrb.mxu2 %v1864_v37  ;;  %907 = vmatpush.bf16.msrb.mxu3 %v1840_v25 }
 0x246   :  { %869 = vmatpush.bf16.msrb.mxu0 %v1862_v36  ;;  %882 = vmatpush.bf16.msrb.mxu1 %v1868_v38 }
 0x247   :  { %895 = vmatpush.bf16.msrb.mxu2 %v1882_v44  ;;  %908 = vmatpush.bf16.msrb.mxu3 %v1870_v39 }
 0x2a5   :  { %v613_v55 = vpop.f32.mrf.mxu0  ;;  %v626_v56 = vpop.f32.mrf.mxu1 }
 0x2a6   :  { %v656_v60 = vadd.f32 %v613_v55, %v599_v51  ;;  %v657_v61 = vadd.f32 %v626_v56, %v600_v52 }
 0x2a8   :  { %v1392_v62 = vmul.f32 -1.442695, %v656_v60  ;;  %v1393_v63 = vmul.f32 -1.442695, %v657_v61 }
 0x2aa   :  { %1501 = vpow2.f32 %v1392_v62 }
 0x2ab   :  { %1503 = vpow2.f32 %v1393_v63 }
 0x2ac   :  { %v639_v4 = vpop.f32.mrf.mxu2  ;;  %v652_v5 = vpop.f32.mrf.mxu3 }
 0x2ad   :  { %v659_v10 = vadd.f32 %v652_v5, %v602_v0  ;;  %v615_v11 = vpop.f32.mrf.mxu0  ;;  %v628_v13 = vpop.f32.mrf.mxu1  ;;  %v658_v29 = vadd.f32 %v639_v4, %v601_v35 }
 0x2af   :  { %v1394_v14 = vmul.f32 -1.442695, %v659_v10 }
 0x2b0   :  { %v1502_v26 = vpop.eup %1501 }
 0x2b1   :  { %v1504_v30 = vpop.eup %1503  ;;  %v663_v23 = vadd.f32 1.0, %v1502_v26  ;;  %1505 = vpow2.f32 %v1394_v14 }
 0x2b2   :  { %v682_v43 = vadd.f32 1.0, %v1504_v30 }
 0x2b3   :  { %1507 = vrcp.f32 %v663_v23  ;;  %v675_v52 = vand.u32 2147483648, %v663_v23  ;;  %v673_v60 = vand.u32 2147483647, %v663_v23  ;;  %vm669_vm6 = vweird.f32 %v663_v23 }
 0x2b4   :  { %1509 = vrcp.f32 %v682_v43  ;;  %v641_v40 = vpop.f32.mrf.mxu2  ;;  %v654_v18 = vpop.f32.mrf.mxu3  ;;  %v694_v55 = vand.u32 2147483648, %v682_v43  ;;  %v692_v62 = vand.u32 2147483647, %v682_v43  ;;  %vm688_vm7 = vweird.f32 %v682_v43 }
 0x2b5   :  { %v676_v0 = vor.u32 1.1754944e-38, %v675_v52  ;;  %vm674_vm10 = vcmp.eq.f32.partialorder %v673_v60, 8.507059e+37 }
 0x2b6   :  { %v695_v10 = vor.u32 1.1754944e-38, %v694_v55  ;;  %vm693_vm11 = vcmp.eq.f32.partialorder %v692_v62, 8.507059e+37 }
 0x2b7   :  { %v1506_v48 = vpop.eup %1505 }
 0x2b8   :  { %v702_v49 = vadd.f32 1.0, %v1506_v48 }
 0x2b9   :  { %v1508_v27 = vpop.eup %1507 }
 0x2ba   :  { %v1510_v31 = vpop.eup %1509  ;;  %v665_v50 = vmul.f32 %v1508_v27, %v663_v23  ;;  %1511 = vrcp.f32 %v702_v49  ;;  %vm670_vm4 = vweird.f32 %v1508_v27  ;;  %vm708_vm13 = vweird.f32 %v702_v49 }
 0x2bb   :  { %v684_v22 = vmul.f32 %v1510_v31, %v682_v43  ;;  %1513 = vtanh.f32 %v658_v29  ;;  %vm689_vm5 = vweird.f32 %v1510_v31  ;;  %vm671_vm8 = vmor %vm669_vm6, %vm670_vm4  ;;  %v714_v29 = vand.u32 2147483648, %v702_v49 }
 0x2bc   :  { %v666_v47 = vsub.f32 1.0, %v665_v50  ;;  %vm690_vm9 = vmor %vm688_vm7, %vm689_vm5 }
 0x2bd   :  { %v685_v51 = vsub.f32 1.0, %v684_v22  ;;  %v715_v22 = vor.u32 1.1754944e-38, %v714_v29 }
 0x2be   :  { %v667_v56 = vmul.f32 %v1508_v27, %v666_v47 }
 0x2bf   :  { %v686_v61 = vmul.f32 %v1510_v31, %v685_v51 }
 0x2c0   :  { %v1512_v59 = vpop.eup %1511  ;;  %v668_v63 = vadd.f32 %v1508_v27, %v667_v56 }
 0x2c1   :  { %v687_v4 = vadd.f32 %v1510_v31, %v686_v61  ;;  %v704_v5 = vmul.f32 %v1512_v59, %v702_v49  ;;  %v1514_v13 = vpop.eup %1513  ;;  %vm709_vm12 = vweird.f32 %v1512_v59 }
 0x2c2   :  { %v672_v11 = vsel %vm671_vm8, %v1508_v27, %v668_v63  ;;  %v712_v27 = vand.u32 2147483647, %v702_v49  ;;  %vm710_vm14 = vmor %vm708_vm13, %vm709_vm12  ;;  %v1396_v49 = vld [vmem:[%s2210_s0 + $0x40] sm:$0xff] }
 0x2c3   :  { %v677_v14 = vsel %vm674_vm10, %v676_v0, %v672_v11  ;;  %v691_v26 = vsel %vm690_vm9, %v1510_v31, %v687_v4  ;;  %v705_v30 = vsub.f32 1.0, %v704_v5  ;;  %v728_v52 = vunpack.c.l.bf16 %v1396_v49 }
 0x2c4   :  { %v696_v40 = vsel %vm693_vm11, %v695_v10, %v691_v26  ;;  %v719_v18 = vmul.f32 %v1514_v13, %v677_v14  ;;  %vm713_vm15 = vcmp.eq.f32.partialorder %v712_v27, 8.507059e+37  ;;  %v729_v55 = vunpack.c.h.bf16 %v1396_v49 }
 0x2c5   :  { %v718_v35 = vmul.f32 %v696_v40, %v2045_v15  ;;  %v706_v48 = vmul.f32 %v1512_v59, %v705_v30 }
 0x2c7   :  { %v2090_v23 = vadd.f32 %v719_v18, %v718_v35  ;;  %v707_v43 = vadd.f32 %v1512_v59, %v706_v48 }
 0x2c9   :  { %1515 = vtanh.f32 %v2090_v23  ;;  %v711_v50 = vsel %vm710_vm14, %v1512_v59, %v707_v43  ;;  %v1397_v59 = vld [vmem:[%s2210_s0 + $0x48] sm:$0xff] }
 0x2ca   :  { %v716_v47 = vsel %vm713_vm15, %v715_v22, %v711_v50  ;;  %v731_v4 = vunpack.c.h.bf16 %v1397_v59  ;;  %v730_v29 = vunpack.c.l.bf16 %v1397_v59 }
 0x2cf   :  { %v1516_v31 = vpop.eup %1515 }
 0x2d0   :  { %v722_v51 = vmul.f32 %v1516_v31, %v716_v47 }
 0x2d2   :  { %1395 = vst [vmem:[%s2211_s2 + $0x18] sm:$0xff] %v722_v51  ;;  %v732_v15 = vpack.c.bf16 %v722_v51, %v722_v51 }
 0x2d4   :  { %741 = vmatmul.bf16.vlgmr.msra.gmra.mxu0 %v732_v15  ;;  %754 = vmatmul.bf16.vlgmr.msra.gmra.mxu1 %v732_v15 }
 0x2d5   :  { %767 = vmatmul.bf16.vlgmr.msra.gmra.mxu2 %v732_v15  ;;  %780 = vmatmul.bf16.vlgmr.msra.gmra.mxu3 %v732_v15 }
 0x2d6   :  { %991 = vmatpush.bf16.msra.mxu0 %v1606_v3  ;;  %1004 = vmatpush.bf16.msra.mxu1 %v1617_v7 }
 0x2d7   :  { %1017 = vmatpush.bf16.msra.mxu2 %v1657_v21  ;;  %1030 = vmatpush.bf16.msra.mxu3 %v1619_v8 }
 0x2da   :  { %992 = vmatpush.bf16.msra.mxu0 %v1631_v12  ;;  %1005 = vmatpush.bf16.msra.mxu1 %v1644_v16 }
 0x2db   :  { %1018 = vmatpush.bf16.msra.mxu2 %v1696_v34  ;;  %1031 = vmatpush.bf16.msra.mxu3 %v1646_v17 }
 0x2de   :  { %993 = vmatpush.bf16.msra.mxu0 %v1679_v28  ;;  %1006 = vmatpush.bf16.msra.mxu1 %v1692_v32 }
 0x2df   :  { %1019 = vmatpush.bf16.msra.mxu2 %v1720_v42  ;;  %1032 = vmatpush.bf16.msra.mxu3 %v1694_v33 }
 0x2e2   :  { %994 = vmatpush.bf16.msra.mxu0 %v1718_v41  ;;  %1007 = vmatpush.bf16.msra.mxu1 %v1730_v45 }
 0x2e3   :  { %1020 = vmatpush.bf16.msra.mxu2 %v1756_v54  ;;  %1033 = vmatpush.bf16.msra.mxu3 %v1732_v46 }
 0x2e6   :  { %995 = vmatpush.bf16.msra.mxu0 %v1754_v53  ;;  %1008 = vmatpush.bf16.msra.mxu1 %v1766_v57 }
 0x2e7   :  { %1021 = vmatpush.bf16.msra.mxu2 %v1792_v2  ;;  %1034 = vmatpush.bf16.msra.mxu3 %v1768_v58 }
 0x2ea   :  { %996 = vmatpush.bf16.msra.mxu0 %v1790_v1  ;;  %1009 = vmatpush.bf16.msra.mxu1 %v1802_v6 }
 0x2eb   :  { %1022 = vmatpush.bf16.msra.mxu2 %v1828_v20  ;;  %1035 = vmatpush.bf16.msra.mxu3 %v1804_v9 }
 0x2ee   :  { %997 = vmatpush.bf16.msra.mxu0 %v1826_v19  ;;  %1010 = vmatpush.bf16.msra.mxu1 %v1838_v24 }
 0x2ef   :  { %1023 = vmatpush.bf16.msra.mxu2 %v1864_v37  ;;  %1036 = vmatpush.bf16.msra.mxu3 %v1840_v25 }
 0x2f2   :  { %998 = vmatpush.bf16.msra.mxu0 %v1862_v36  ;;  %1011 = vmatpush.bf16.msra.mxu1 %v1868_v38 }
 0x2f3   :  { %1024 = vmatpush.bf16.msra.mxu2 %v1882_v44  ;;  %1037 = vmatpush.bf16.msra.mxu3 %v1870_v39 }
 0x351   :  { %v742_v56 = vpop.f32.mrf.mxu0  ;;  %v755_v60 = vpop.f32.mrf.mxu1 }
 0x352   :  { %v785_v61 = vadd.f32 %v742_v56, %v728_v52  ;;  %v786_v62 = vadd.f32 %v755_v60, %v729_v55 }
 0x354   :  { %v1398_v63 = vmul.f32 -1.442695, %v785_v61  ;;  %v1399_v0 = vmul.f32 -1.442695, %v786_v62 }
 0x356   :  { %1517 = vpow2.f32 %v1398_v63 }
 0x357   :  { %1519 = vpow2.f32 %v1399_v0 }
 0x358   :  { %v768_v5 = vpop.f32.mrf.mxu2  ;;  %v781_v10 = vpop.f32.mrf.mxu3 }
 0x359   :  { %v788_v11 = vadd.f32 %v781_v10, %v731_v4  ;;  %v744_v13 = vpop.f32.mrf.mxu0  ;;  %v757_v14 = vpop.f32.mrf.mxu1  ;;  %v787_v31 = vadd.f32 %v768_v5, %v730_v29 }
 0x35b   :  { %v1400_v26 = vmul.f32 -1.442695, %v788_v11 }
 0x35c   :  { %v1518_v30 = vpop.eup %1517 }
 0x35d   :  { %v1520_v40 = vpop.eup %1519  ;;  %v792_v18 = vadd.f32 1.0, %v1518_v30  ;;  %1521 = vpow2.f32 %v1400_v26 }
 0x35e   :  { %v811_v35 = vadd.f32 1.0, %v1520_v40 }
 0x35f   :  { %1523 = vrcp.f32 %v792_v18  ;;  %v804_v55 = vand.u32 2147483648, %v792_v18  ;;  %v802_v61 = vand.u32 2147483647, %v792_v18  ;;  %vm798_vm2 = vweird.f32 %v792_v18 }
 0x360   :  { %1525 = vrcp.f32 %v811_v35  ;;  %v770_v48 = vpop.f32.mrf.mxu2  ;;  %v783_v43 = vpop.f32.mrf.mxu3  ;;  %v823_v56 = vand.u32 2147483648, %v811_v35  ;;  %v821_v63 = vand.u32 2147483647, %v811_v35  ;;  %vm817_vm3 = vweird.f32 %v811_v35 }
 0x361   :  { %v805_v4 = vor.u32 1.1754944e-38, %v804_v55  ;;  %vm803_vm6 = vcmp.eq.f32.partialorder %v802_v61, 8.507059e+37 }
 0x362   :  { %v824_v11 = vor.u32 1.1754944e-38, %v823_v56  ;;  %vm822_vm7 = vcmp.eq.f32.partialorder %v821_v63, 8.507059e+37 }
 0x363   :  { %v1522_v27 = vpop.eup %1521 }
 0x364   :  { %v831_v50 = vadd.f32 1.0, %v1522_v27 }
 0x365   :  { %v1524_v22 = vpop.eup %1523 }
 0x366   :  { %v1526_v47 = vpop.eup %1525  ;;  %v794_v51 = vmul.f32 %v1524_v22, %v792_v18  ;;  %1527 = vrcp.f32 %v831_v50  ;;  %vm799_vm0 = vweird.f32 %v1524_v22  ;;  %vm837_vm9 = vweird.f32 %v831_v50 }
 0x367   :  { %v813_v15 = vmul.f32 %v1526_v47, %v811_v35  ;;  %1529 = vtanh.f32 %v787_v31  ;;  %vm818_vm1 = vweird.f32 %v1526_v47  ;;  %vm800_vm4 = vmor %vm798_vm2, %vm799_vm0  ;;  %v843_v31 = vand.u32 2147483648, %v831_v50 }
 0x368   :  { %v795_v49 = vsub.f32 1.0, %v794_v51  ;;  %vm819_vm5 = vmor %vm817_vm3, %vm818_vm1 }
 0x369   :  { %v814_v52 = vsub.f32 1.0, %v813_v15  ;;  %v844_v15 = vor.u32 1.1754944e-38, %v843_v31 }
 0x36a   :  { %v796_v60 = vmul.f32 %v1524_v22, %v795_v49 }
 0x36b   :  { %v815_v62 = vmul.f32 %v1526_v47, %v814_v52 }
 0x36c   :  { %v1528_v59 = vpop.eup %1527  ;;  %v797_v0 = vadd.f32 %v1524_v22, %v796_v60 }
 0x36d   :  { %v816_v5 = vadd.f32 %v1526_v47, %v815_v62  ;;  %v833_v10 = vmul.f32 %v1528_v59, %v831_v50  ;;  %v1530_v14 = vpop.eup %1529  ;;  %vm838_vm8 = vweird.f32 %v1528_v59 }
 0x36e   :  { %v801_v13 = vsel %vm800_vm4, %v1524_v22, %v797_v0  ;;  %v841_v22 = vand.u32 2147483647, %v831_v50  ;;  %vm839_vm10 = vmor %vm837_vm9, %vm838_vm8 }
 0x36f   :  { %v806_v26 = vsel %vm803_vm6, %v805_v4, %v801_v13  ;;  %v820_v30 = vsel %vm819_vm5, %v1526_v47, %v816_v5  ;;  %v834_v40 = vsub.f32 1.0, %v833_v10 }
 0x370   :  { %v825_v48 = vsel %vm822_vm7, %v824_v11, %v820_v30  ;;  %v848_v43 = vmul.f32 %v1530_v14, %v806_v26  ;;  %vm842_vm11 = vcmp.eq.f32.partialorder %v841_v22, 8.507059e+37 }
 0x371   :  { %v847_v29 = vmul.f32 %v825_v48, %v2090_v23  ;;  %v835_v27 = vmul.f32 %v1528_v59, %v834_v40 }
 0x373   :  { %v2135_v18 = vadd.f32 %v848_v43, %v847_v29  ;;  %v836_v35 = vadd.f32 %v1528_v59, %v835_v27 }
 0x375   :  { %1531 = vtanh.f32 %v2135_v18  ;;  %v840_v51 = vsel %vm839_vm10, %v1528_v59, %v836_v35 }
 0x376   :  { %v845_v49 = vsel %vm842_vm11, %v844_v15, %v840_v51 }
 0x37b   :  { %v1532_v47 = vpop.eup %1531 }
 0x37c   :  { %v851_v52 = vmul.f32 %v1532_v47, %v845_v49 }
 0x37e   :  { %1401 = vst [vmem:[%s2211_s2 + $0x20] sm:$0xff] %v851_v52  ;;  %v861_v23 = vpack.c.bf16 %v851_v52, %v851_v52 }
 0x380   :  { %870 = vmatmul.bf16.vlgmr.msrb.gmra.mxu0 %v861_v23  ;;  %883 = vmatmul.bf16.vlgmr.msrb.gmra.mxu1 %v861_v23 }
 0x381   :  { %896 = vmatmul.bf16.vlgmr.msrb.gmra.mxu2 %v861_v23  ;;  %909 = vmatmul.bf16.vlgmr.msrb.gmra.mxu3 %v861_v23 }
 0x382   :  { %1120 = vmatpush.bf16.msrb.mxu0 %v1606_v3  ;;  %1133 = vmatpush.bf16.msrb.mxu1 %v1617_v7  ;;  %v1402_v3 = vld [vmem:[%s2210_s0 + $0x50] sm:$0xff] }
 0x383   :  { %1146 = vmatpush.bf16.msrb.mxu2 %v1657_v21  ;;  %1159 = vmatpush.bf16.msrb.mxu3 %v1619_v8  ;;  %v857_v7 = vunpack.c.l.bf16 %v1402_v3  ;;  %v858_v8 = vunpack.c.h.bf16 %v1402_v3  ;;  %v1408_v3 = vld [vmem:[%s2210_s0 + $0x60] sm:$0xff] }
 0x386   :  { %1121 = vmatpush.bf16.msrb.mxu0 %v1631_v12  ;;  %1134 = vmatpush.bf16.msrb.mxu1 %v1644_v16 }
 0x387   :  { %1147 = vmatpush.bf16.msrb.mxu2 %v1696_v34  ;;  %1160 = vmatpush.bf16.msrb.mxu3 %v1646_v17 }
 0x38a   :  { %1122 = vmatpush.bf16.msrb.mxu0 %v1679_v28  ;;  %1135 = vmatpush.bf16.msrb.mxu1 %v1692_v32  ;;  %v1403_v28 = vld [vmem:[%s2210_s0 + $0x58] sm:$0xff] }
 0x38b   :  { %1148 = vmatpush.bf16.msrb.mxu2 %v1720_v42  ;;  %1161 = vmatpush.bf16.msrb.mxu3 %v1694_v33  ;;  %v860_v34 = vunpack.c.h.bf16 %v1403_v28 }
 0x38e   :  { %1123 = vmatpush.bf16.msrb.mxu0 %v1718_v41  ;;  %1136 = vmatpush.bf16.msrb.mxu1 %v1730_v45 }
 0x38f   :  { %1149 = vmatpush.bf16.msrb.mxu2 %v1756_v54  ;;  %1162 = vmatpush.bf16.msrb.mxu3 %v1732_v46 }
 0x392   :  { %1124 = vmatpush.bf16.msrb.mxu0 %v1754_v53  ;;  %1137 = vmatpush.bf16.msrb.mxu1 %v1766_v57 }
 0x393   :  { %1150 = vmatpush.bf16.msrb.mxu2 %v1792_v2  ;;  %1163 = vmatpush.bf16.msrb.mxu3 %v1768_v58 }
 0x396   :  { %1125 = vmatpush.bf16.msrb.mxu0 %v1790_v1  ;;  %1138 = vmatpush.bf16.msrb.mxu1 %v1802_v6 }
 0x397   :  { %1151 = vmatpush.bf16.msrb.mxu2 %v1828_v20  ;;  %1164 = vmatpush.bf16.msrb.mxu3 %v1804_v9 }
 0x39a   :  { %1126 = vmatpush.bf16.msrb.mxu0 %v1826_v19  ;;  %1139 = vmatpush.bf16.msrb.mxu1 %v1838_v24  ;;  %v859_v19 = vunpack.c.l.bf16 %v1403_v28  ;;  %v1409_v28 = vld [vmem:[%s2210_s0 + $0x68] sm:$0xff] }
 0x39b   :  { %1152 = vmatpush.bf16.msrb.mxu2 %v1864_v37  ;;  %1165 = vmatpush.bf16.msrb.mxu3 %v1840_v25 }
 0x39e   :  { %1127 = vmatpush.bf16.msrb.mxu0 %v1862_v36  ;;  %1140 = vmatpush.bf16.msrb.mxu1 %v1868_v38 }
 0x39f   :  { %1153 = vmatpush.bf16.msrb.mxu2 %v1882_v44  ;;  %1166 = vmatpush.bf16.msrb.mxu3 %v1870_v39 }
 0x3fd   :  { %v871_v12 = vpop.f32.mrf.mxu0  ;;  %v884_v16 = vpop.f32.mrf.mxu1 }
 0x3fe   :  { %v914_v17 = vadd.f32 %v871_v12, %v857_v7  ;;  %v915_v21 = vadd.f32 %v884_v16, %v858_v8  ;;  %v986_v7 = vunpack.c.l.bf16 %v1408_v3  ;;  %v987_v8 = vunpack.c.h.bf16 %v1408_v3  ;;  %v1414_v3 = vld [vmem:[%s2210_s0 + $0x70] sm:$0xff] }
 0x400   :  { %v1404_v32 = vmul.f32 -1.442695, %v914_v17  ;;  %v1405_v33 = vmul.f32 -1.442695, %v915_v21 }
 0x402   :  { %1533 = vpow2.f32 %v1404_v32 }
 0x403   :  { %1535 = vpow2.f32 %v1405_v33 }
 0x404   :  { %v897_v41 = vpop.f32.mrf.mxu2  ;;  %v910_v42 = vpop.f32.mrf.mxu3 }
 0x405   :  { %v917_v45 = vadd.f32 %v910_v42, %v860_v34  ;;  %v873_v46 = vpop.f32.mrf.mxu0  ;;  %v886_v53 = vpop.f32.mrf.mxu1  ;;  %v916_v36 = vadd.f32 %v897_v41, %v859_v19  ;;  %v989_v34 = vunpack.c.h.bf16 %v1409_v28  ;;  %v988_v19 = vunpack.c.l.bf16 %v1409_v28  ;;  %v1415_v28 = vld [vmem:[%s2210_s0 + $0x78] sm:$0xff] }
 0x407   :  { %v1406_v54 = vmul.f32 -1.442695, %v917_v45 }
 0x408   :  { %v1534_v57 = vpop.eup %1533 }
 0x409   :  { %v1536_v58 = vpop.eup %1535  ;;  %v921_v1 = vadd.f32 1.0, %v1534_v57  ;;  %1537 = vpow2.f32 %v1406_v54 }
 0x40a   :  { %v940_v2 = vadd.f32 1.0, %v1536_v58 }
 0x40b   :  { %1539 = vrcp.f32 %v921_v1  ;;  %v933_v55 = vand.u32 2147483648, %v921_v1  ;;  %v931_v61 = vand.u32 2147483647, %v921_v1  ;;  %vm927_vm14 = vweird.f32 %v921_v1 }
 0x40c   :  { %1541 = vrcp.f32 %v940_v2  ;;  %v899_v6 = vpop.f32.mrf.mxu2  ;;  %v912_v9 = vpop.f32.mrf.mxu3  ;;  %v952_v56 = vand.u32 2147483648, %v940_v2  ;;  %v950_v63 = vand.u32 2147483647, %v940_v2  ;;  %vm946_vm15 = vweird.f32 %v940_v2 }
 0x40d   :  { %v934_v4 = vor.u32 1.1754944e-38, %v933_v55  ;;  %vm932_vm2 = vcmp.eq.f32.partialorder %v931_v61, 8.507059e+37 }
 0x40e   :  { %v953_v11 = vor.u32 1.1754944e-38, %v952_v56  ;;  %vm951_vm3 = vcmp.eq.f32.partialorder %v950_v63, 8.507059e+37 }
 0x40f   :  { %v1538_v20 = vpop.eup %1537 }
 0x410   :  { %v960_v24 = vadd.f32 1.0, %v1538_v20 }
 0x411   :  { %v1540_v25 = vpop.eup %1539 }
 0x412   :  { %v1542_v37 = vpop.eup %1541  ;;  %v923_v38 = vmul.f32 %v1540_v25, %v921_v1  ;;  %1543 = vrcp.f32 %v960_v24  ;;  %vm928_vm12 = vweird.f32 %v1540_v25  ;;  %v972_v22 = vand.u32 2147483648, %v960_v24 }
 0x413   :  { %v942_v39 = vmul.f32 %v1542_v37, %v940_v2  ;;  %1545 = vtanh.f32 %v916_v36  ;;  %vm947_vm13 = vweird.f32 %v1542_v37  ;;  %vm929_vm0 = vmor %vm927_vm14, %vm928_vm12  ;;  %vm966_vm5 = vweird.f32 %v960_v24 }
 0x414   :  { %v924_v44 = vsub.f32 1.0, %v923_v38  ;;  %vm948_vm1 = vmor %vm946_vm15, %vm947_vm13  ;;  %v970_v51 = vand.u32 2147483647, %v960_v24  ;;  %v973_v47 = vor.u32 1.1754944e-38, %v972_v22 }
 0x415   :  { %v943_v50 = vsub.f32 1.0, %v942_v39 }
 0x416   :  { %v925_v60 = vmul.f32 %v1540_v25, %v924_v44  ;;  %vm971_vm7 = vcmp.eq.f32.partialorder %v970_v51, 8.507059e+37 }
 0x417   :  { %v944_v62 = vmul.f32 %v1542_v37, %v943_v50 }
 0x418   :  { %v1544_v59 = vpop.eup %1543  ;;  %v926_v0 = vadd.f32 %v1540_v25, %v925_v60 }
 0x419   :  { %v945_v5 = vadd.f32 %v1542_v37, %v944_v62  ;;  %v962_v10 = vmul.f32 %v1544_v59, %v960_v24  ;;  %v1546_v14 = vpop.eup %1545  ;;  %vm967_vm4 = vweird.f32 %v1544_v59 }
 0x41a   :  { %v930_v13 = vsel %vm929_vm0, %v1540_v25, %v926_v0  ;;  %vm968_vm6 = vmor %vm966_vm5, %vm967_vm4 }
 0x41b   :  { %v935_v26 = vsel %vm932_vm2, %v934_v4, %v930_v13  ;;  %v949_v30 = vsel %vm948_vm1, %v1542_v37, %v945_v5  ;;  %v963_v40 = vsub.f32 1.0, %v962_v10 }
 0x41c   :  { %v954_v48 = vsel %vm951_vm3, %v953_v11, %v949_v30  ;;  %v977_v43 = vmul.f32 %v1546_v14, %v935_v26 }
 0x41d   :  { %v976_v29 = vmul.f32 %v954_v48, %v2135_v18  ;;  %v964_v27 = vmul.f32 %v1544_v59, %v963_v40 }
 0x41f   :  { %v2180_v35 = vadd.f32 %v977_v43, %v976_v29  ;;  %v965_v31 = vadd.f32 %v1544_v59, %v964_v27 }
 0x421   :  { %1547 = vtanh.f32 %v2180_v35  ;;  %v969_v15 = vsel %vm968_vm6, %v1544_v59, %v965_v31 }
 0x422   :  { %v974_v52 = vsel %vm971_vm7, %v973_v47, %v969_v15 }
 0x427   :  { %v1548_v49 = vpop.eup %1547 }
 0x428   :  { %v980_v23 = vmul.f32 %v1548_v49, %v974_v52 }
 0x42a   :  { %1407 = vst [vmem:[%s2211_s2 + $0x28] sm:$0xff] %v980_v23  ;;  %v990_v18 = vpack.c.bf16 %v980_v23, %v980_v23 }
 0x42c   :  { %999 = vmatmul.bf16.vlgmr.msra.gmra.mxu0 %v990_v18  ;;  %1012 = vmatmul.bf16.vlgmr.msra.gmra.mxu1 %v990_v18 }
 0x42d   :  { %1025 = vmatmul.bf16.vlgmr.msra.gmra.mxu2 %v990_v18  ;;  %1038 = vmatmul.bf16.vlgmr.msra.gmra.mxu3 %v990_v18 }
 0x4a9   :  { %v1000_v12 = vpop.f32.mrf.mxu0  ;;  %v1013_v16 = vpop.f32.mrf.mxu1 }
 0x4aa   :  { %v1043_v17 = vadd.f32 %v1000_v12, %v986_v7  ;;  %v1044_v21 = vadd.f32 %v1013_v16, %v987_v8  ;;  %v1115_v7 = vunpack.c.l.bf16 %v1414_v3  ;;  %v1116_v8 = vunpack.c.h.bf16 %v1414_v3 }
 0x4ac   :  { %v1410_v32 = vmul.f32 -1.442695, %v1043_v17  ;;  %v1411_v33 = vmul.f32 -1.442695, %v1044_v21 }
 0x4ae   :  { %1549 = vpow2.f32 %v1410_v32 }
 0x4af   :  { %1551 = vpow2.f32 %v1411_v33 }
 0x4b0   :  { %v1026_v41 = vpop.f32.mrf.mxu2  ;;  %v1039_v42 = vpop.f32.mrf.mxu3 }
 0x4b1   :  { %v1046_v45 = vadd.f32 %v1039_v42, %v989_v34  ;;  %v1002_v46 = vpop.f32.mrf.mxu0  ;;  %v1015_v53 = vpop.f32.mrf.mxu1  ;;  %v1045_v36 = vadd.f32 %v1026_v41, %v988_v19  ;;  %v1118_v34 = vunpack.c.h.bf16 %v1415_v28  ;;  %v1117_v19 = vunpack.c.l.bf16 %v1415_v28 }
 0x4b3   :  { %v1412_v54 = vmul.f32 -1.442695, %v1046_v45 }
 0x4b4   :  { %v1550_v57 = vpop.eup %1549 }
 0x4b5   :  { %v1552_v58 = vpop.eup %1551  ;;  %v1050_v1 = vadd.f32 1.0, %v1550_v57  ;;  %1553 = vpow2.f32 %v1412_v54 }
 0x4b6   :  { %v1069_v2 = vadd.f32 1.0, %v1552_v58 }
 0x4b7   :  { %1555 = vrcp.f32 %v1050_v1  ;;  %v1062_v55 = vand.u32 2147483648, %v1050_v1  ;;  %v1060_v61 = vand.u32 2147483647, %v1050_v1  ;;  %vm1056_vm10 = vweird.f32 %v1050_v1 }
 0x4b8   :  { %1557 = vrcp.f32 %v1069_v2  ;;  %v1028_v6 = vpop.f32.mrf.mxu2  ;;  %v1041_v9 = vpop.f32.mrf.mxu3  ;;  %v1081_v56 = vand.u32 2147483648, %v1069_v2  ;;  %v1079_v63 = vand.u32 2147483647, %v1069_v2  ;;  %vm1075_vm11 = vweird.f32 %v1069_v2 }
 0x4b9   :  { %v1063_v4 = vor.u32 1.1754944e-38, %v1062_v55  ;;  %vm1061_vm14 = vcmp.eq.f32.partialorder %v1060_v61, 8.507059e+37 }
 0x4ba   :  { %v1082_v11 = vor.u32 1.1754944e-38, %v1081_v56  ;;  %vm1080_vm15 = vcmp.eq.f32.partialorder %v1079_v63, 8.507059e+37 }
 0x4bb   :  { %v1554_v20 = vpop.eup %1553 }
 0x4bc   :  { %v1089_v24 = vadd.f32 1.0, %v1554_v20 }
 0x4bd   :  { %v1556_v25 = vpop.eup %1555 }
 0x4be   :  { %v1558_v37 = vpop.eup %1557  ;;  %v1052_v38 = vmul.f32 %v1556_v25, %v1050_v1  ;;  %1559 = vrcp.f32 %v1089_v24  ;;  %vm1057_vm8 = vweird.f32 %v1556_v25  ;;  %v1101_v51 = vand.u32 2147483648, %v1089_v24 }
 0x4bf   :  { %v1071_v39 = vmul.f32 %v1558_v37, %v1069_v2  ;;  %1561 = vtanh.f32 %v1045_v36  ;;  %vm1076_vm9 = vweird.f32 %v1558_v37  ;;  %vm1058_vm12 = vmor %vm1056_vm10, %vm1057_vm8  ;;  %vm1095_vm1 = vweird.f32 %v1089_v24 }
 0x4c0   :  { %v1053_v44 = vsub.f32 1.0, %v1052_v38  ;;  %vm1077_vm13 = vmor %vm1075_vm11, %vm1076_vm9  ;;  %v1099_v15 = vand.u32 2147483647, %v1089_v24  ;;  %v1102_v49 = vor.u32 1.1754944e-38, %v1101_v51 }
 0x4c1   :  { %v1072_v50 = vsub.f32 1.0, %v1071_v39 }
 0x4c2   :  { %v1054_v60 = vmul.f32 %v1556_v25, %v1053_v44  ;;  %vm1100_vm3 = vcmp.eq.f32.partialorder %v1099_v15, 8.507059e+37 }
 0x4c3   :  { %v1073_v62 = vmul.f32 %v1558_v37, %v1072_v50 }
 0x4c4   :  { %v1560_v59 = vpop.eup %1559  ;;  %v1055_v0 = vadd.f32 %v1556_v25, %v1054_v60 }
 0x4c5   :  { %v1074_v5 = vadd.f32 %v1558_v37, %v1073_v62  ;;  %v1091_v10 = vmul.f32 %v1560_v59, %v1089_v24  ;;  %v1562_v14 = vpop.eup %1561  ;;  %vm1096_vm0 = vweird.f32 %v1560_v59 }
 0x4c6   :  { %v1059_v13 = vsel %vm1058_vm12, %v1556_v25, %v1055_v0  ;;  %vm1097_vm2 = vmor %vm1095_vm1, %vm1096_vm0 }
 0x4c7   :  { %v1064_v26 = vsel %vm1061_vm14, %v1063_v4, %v1059_v13  ;;  %v1078_v30 = vsel %vm1077_vm13, %v1558_v37, %v1074_v5  ;;  %v1092_v40 = vsub.f32 1.0, %v1091_v10 }
 0x4c8   :  { %v1083_v48 = vsel %vm1080_vm15, %v1082_v11, %v1078_v30  ;;  %v1106_v43 = vmul.f32 %v1562_v14, %v1064_v26 }
 0x4c9   :  { %v1105_v29 = vmul.f32 %v1083_v48, %v2180_v35  ;;  %v1093_v27 = vmul.f32 %v1560_v59, %v1092_v40 }
 0x4cb   :  { %v2193_v31 = vadd.f32 %v1106_v43, %v1105_v29  ;;  %v1094_v22 = vadd.f32 %v1560_v59, %v1093_v27 }
 0x4cd   :  { %1563 = vtanh.f32 %v2193_v31  ;;  %v1098_v47 = vsel %vm1097_vm2, %v1560_v59, %v1094_v22 }
 0x4ce   :  { %v1103_v23 = vsel %vm1100_vm3, %v1102_v49, %v1098_v47 }
 0x4d3   :  { %v1564_v52 = vpop.eup %1563 }
 0x4d4   :  { %v1109_v18 = vmul.f32 %v1564_v52, %v1103_v23 }
 0x4d6   :  { %1413 = vst [vmem:[%s2211_s2 + $0x30] sm:$0xff] %v1109_v18  ;;  %v1119_v35 = vpack.c.bf16 %v1109_v18, %v1109_v18 }
 0x4d8   :  { %1128 = vmatmul.bf16.vlgmr.msrb.gmra.mxu0 %v1119_v35  ;;  %1141 = vmatmul.bf16.vlgmr.msrb.gmra.mxu1 %v1119_v35 }
 0x4d9   :  { %1154 = vmatmul.bf16.vlgmr.msrb.gmra.mxu2 %v1119_v35  ;;  %1167 = vmatmul.bf16.vlgmr.msrb.gmra.mxu3 %v1119_v35 }
 0x555   :  { %v1129_v12 = vpop.f32.mrf.mxu0  ;;  %v1142_v16 = vpop.f32.mrf.mxu1 }
 0x556   :  { %v1172_v17 = vadd.f32 %v1129_v12, %v1115_v7  ;;  %v1173_v21 = vadd.f32 %v1142_v16, %v1116_v8 }
 0x558   :  { %v1416_v32 = vmul.f32 -1.442695, %v1172_v17  ;;  %v1417_v33 = vmul.f32 -1.442695, %v1173_v21 }
 0x55a   :  { %1565 = vpow2.f32 %v1416_v32 }
 0x55b   :  { %1567 = vpow2.f32 %v1417_v33 }
 0x55c   :  { %v1155_v41 = vpop.f32.mrf.mxu2  ;;  %v1168_v42 = vpop.f32.mrf.mxu3 }
 0x55d   :  { %v1175_v45 = vadd.f32 %v1168_v42, %v1118_v34  ;;  %v1131_v46 = vpop.f32.mrf.mxu0  ;;  %v1144_v53 = vpop.f32.mrf.mxu1  ;;  %v1174_v36 = vadd.f32 %v1155_v41, %v1117_v19 }
 0x55f   :  { %v1418_v54 = vmul.f32 -1.442695, %v1175_v45 }
 0x560   :  { %v1566_v57 = vpop.eup %1565 }
 0x561   :  { %v1568_v58 = vpop.eup %1567  ;;  %v1179_v1 = vadd.f32 1.0, %v1566_v57  ;;  %1569 = vpow2.f32 %v1418_v54 }
 0x562   :  { %v1198_v2 = vadd.f32 1.0, %v1568_v58 }
 0x563   :  { %1571 = vrcp.f32 %v1179_v1  ;;  %v1191_v55 = vand.u32 2147483648, %v1179_v1  ;;  %v1189_v61 = vand.u32 2147483647, %v1179_v1  ;;  %vm1185_vm6 = vweird.f32 %v1179_v1 }
 0x564   :  { %1573 = vrcp.f32 %v1198_v2  ;;  %v1157_v6 = vpop.f32.mrf.mxu2  ;;  %v1170_v9 = vpop.f32.mrf.mxu3  ;;  %v1210_v56 = vand.u32 2147483648, %v1198_v2  ;;  %v1208_v63 = vand.u32 2147483647, %v1198_v2  ;;  %vm1204_vm7 = vweird.f32 %v1198_v2 }
 0x565   :  { %v1192_v4 = vor.u32 1.1754944e-38, %v1191_v55  ;;  %vm1190_vm10 = vcmp.eq.f32.partialorder %v1189_v61, 8.507059e+37 }
 0x566   :  { %v1211_v11 = vor.u32 1.1754944e-38, %v1210_v56  ;;  %vm1209_vm11 = vcmp.eq.f32.partialorder %v1208_v63, 8.507059e+37 }
 0x567   :  { %v1570_v20 = vpop.eup %1569 }
 0x568   :  { %v1218_v24 = vadd.f32 1.0, %v1570_v20 }
 0x569   :  { %v1572_v25 = vpop.eup %1571 }
 0x56a   :  { %v1574_v37 = vpop.eup %1573  ;;  %v1181_v38 = vmul.f32 %v1572_v25, %v1179_v1  ;;  %1575 = vrcp.f32 %v1218_v24  ;;  %vm1186_vm4 = vweird.f32 %v1572_v25  ;;  %v1230_v15 = vand.u32 2147483648, %v1218_v24 }
 0x56b   :  { %v1200_v39 = vmul.f32 %v1574_v37, %v1198_v2  ;;  %1577 = vtanh.f32 %v1174_v36  ;;  %vm1205_vm5 = vweird.f32 %v1574_v37  ;;  %vm1187_vm8 = vmor %vm1185_vm6, %vm1186_vm4  ;;  %vm1224_vm13 = vweird.f32 %v1218_v24 }
 0x56c   :  { %v1182_v44 = vsub.f32 1.0, %v1181_v38  ;;  %vm1206_vm9 = vmor %vm1204_vm7, %vm1205_vm5  ;;  %v1228_v47 = vand.u32 2147483647, %v1218_v24  ;;  %v1231_v52 = vor.u32 1.1754944e-38, %v1230_v15 }
 0x56d   :  { %v1201_v50 = vsub.f32 1.0, %v1200_v39 }
 0x56e   :  { %v1183_v60 = vmul.f32 %v1572_v25, %v1182_v44  ;;  %vm1229_vm15 = vcmp.eq.f32.partialorder %v1228_v47, 8.507059e+37 }
 0x56f   :  { %v1202_v62 = vmul.f32 %v1574_v37, %v1201_v50 }
 0x570   :  { %v1576_v59 = vpop.eup %1575  ;;  %v1184_v0 = vadd.f32 %v1572_v25, %v1183_v60 }
 0x571   :  { %v1203_v5 = vadd.f32 %v1574_v37, %v1202_v62  ;;  %v1220_v10 = vmul.f32 %v1576_v59, %v1218_v24  ;;  %v1578_v14 = vpop.eup %1577  ;;  %vm1225_vm12 = vweird.f32 %v1576_v59 }
 0x572   :  { %v1188_v13 = vsel %vm1187_vm8, %v1572_v25, %v1184_v0  ;;  %vm1226_vm14 = vmor %vm1224_vm13, %vm1225_vm12 }
 0x573   :  { %v1193_v26 = vsel %vm1190_vm10, %v1192_v4, %v1188_v13  ;;  %v1207_v30 = vsel %vm1206_vm9, %v1574_v37, %v1203_v5  ;;  %v1221_v40 = vsub.f32 1.0, %v1220_v10 }
 0x574   :  { %v1212_v48 = vsel %vm1209_vm11, %v1211_v11, %v1207_v30  ;;  %v1235_v43 = vmul.f32 %v1578_v14, %v1193_v26 }
 0x575   :  { %v1234_v29 = vmul.f32 %v1212_v48, %v2193_v31  ;;  %v1222_v27 = vmul.f32 %v1576_v59, %v1221_v40 }
 0x577   :  { %v1236_v22 = vadd.f32 %v1235_v43, %v1234_v29  ;;  %v1223_v51 = vadd.f32 %v1576_v59, %v1222_v27 }
 0x579   :  { %1579 = vtanh.f32 %v1236_v22  ;;  %v1227_v49 = vsel %vm1226_vm14, %v1576_v59, %v1223_v51 }
 0x57a   :  { %v1232_v18 = vsel %vm1229_vm15, %v1231_v52, %v1227_v49 }
 0x57f   :  { %v1580_v23 = vpop.eup %1579 }
 0x580   :  { %v1238_v35 = vmul.f32 %v1580_v23, %v1232_v18 }
 0x582   :  { %1419 = vst [vmem:[%s2211_s2 + $0x38] sm:$0xff] %v1238_v35 }

// kernel: multi_lstm_seq_forward.4
= control target key start
LH: loop header
LB: loop body
LE: loop exit
PB: predicated region body
PF: predicated region fallthrough
CT: control target
= control target key end

     0   :  { %s3106_s1 = inlined_call_operand.vmem [shape: bf16[128,512], index: 1, kind: input, shape index: {}]   ;;  %s3107_s0 = inlined_call_operand.vmem [shape: bf16[8,8,512], index: 0, kind: input, shape index: {}]   ;;  %s3108_s2 = inlined_call_operand.vmem [shape: bf16[128,512], index: 2, kind: input, shape index: {}]   ;;  %s3109_s3 = inlined_call_operand.vmem [shape: f32[1,512], index: 3, kind: input, shape index: {}]   ;;  %s3110_s4 = inlined_call_operand.vmem [shape: bf16[8,8,512], index: 4, kind: output, shape index: {}]  }
   0x1   :  { %v1750_v0 = vld [vmem:[%s3106_s1 + $0xe0] sm:$0xf]  ;;  %v1976_v1 = vld [vmem:[%s3106_s1 + $0xec] sm:$0xf0]  ;;  %v1974_v2 = vld [vmem:[%s3106_s1 + $0xe4] sm:$0xf] }
   0x2   :  { %v2178_v3 = vor.u32 %v1976_v1, %v1750_v0  ;;  %v1752_v4 = vld [vmem:[%s3106_s1 + $0xf0] sm:$0xf0]  ;;  %v1975_v5 = vld [vmem:[%s3106_s1 + $0xec] sm:$0xf]  ;;  %v1760_v6 = vld [vmem:[%s3106_s1 + $0xf8] sm:$0xf0] }
   0x3   :  { %v2189_v7 = vor.u32 %v1974_v2, %v1752_v4  ;;  %v2191_v8 = vor.u32 %v1975_v5, %v1760_v6  ;;  %v1734_v9 = vld [vmem:[%s3106_s1 + $0xc0] sm:$0xf]  ;;  %v1972_v10 = vld [vmem:[%s3106_s1 + $0xcc] sm:$0xf0]  ;;  %v1970_v11 = vld [vmem:[%s3106_s1 + $0xc4] sm:$0xf] }
   0x4   :  { %224 = vmatpush.bf16.msra.mxu0 %v2178_v3  ;;  %v2203_v12 = vor.u32 %v1972_v10, %v1734_v9  ;;  %v1736_v13 = vld [vmem:[%s3106_s1 + $0xd0] sm:$0xf0]  ;;  %v1971_v14 = vld [vmem:[%s3106_s1 + $0xcc] sm:$0xf]  ;;  %v1744_v15 = vld [vmem:[%s3106_s1 + $0xd8] sm:$0xf0] }
   0x5   :  { %237 = vmatpush.bf16.msra.mxu1 %v2189_v7  ;;  %263 = vmatpush.bf16.msra.mxu3 %v2191_v8  ;;  %v2216_v16 = vor.u32 %v1970_v11, %v1736_v13  ;;  %v2218_v17 = vor.u32 %v1971_v14, %v1744_v15  ;;  %v1758_v18 = vld [vmem:[%s3106_s1 + $0xe8] sm:$0xf]  ;;  %v1977_v19 = vld [vmem:[%s3106_s1 + $0xf4] sm:$0xf0]  ;;  %v1718_v20 = vld [vmem:[%s3106_s1 + $0xa0] sm:$0xf] }
   0x6   :  { %v2229_v21 = vor.u32 %v1977_v19, %v1758_v18  ;;  %v1968_v22 = vld [vmem:[%s3106_s1 + $0xac] sm:$0xf0]  ;;  %v1966_v23 = vld [vmem:[%s3106_s1 + $0xa4] sm:$0xf]  ;;  %v1720_v24 = vld [vmem:[%s3106_s1 + $0xb0] sm:$0xf0] }
   0x7   :  { %v1967_v25 = vld [vmem:[%s3106_s1 + $0xac] sm:$0xf]  ;;  %v1728_v26 = vld [vmem:[%s3106_s1 + $0xb8] sm:$0xf0]  ;;  %v1742_v27 = vld [vmem:[%s3106_s1 + $0xc8] sm:$0xf]  ;;  %v2251_v28 = vor.u32 %v1968_v22, %v1718_v20  ;;  %v2264_v32 = vor.u32 %v1966_v23, %v1720_v24 }
   0x8   :  { %225 = vmatpush.bf16.msra.mxu0 %v2203_v12  ;;  %250 = vmatpush.bf16.msra.mxu2 %v2229_v21  ;;  %v1973_v29 = vld [vmem:[%s3106_s1 + $0xd4] sm:$0xf0]  ;;  %v1702_v30 = vld [vmem:[%s3106_s1 + $0x80] sm:$0xf]  ;;  %v1964_v31 = vld [vmem:[%s3106_s1 + $0x8c] sm:$0xf0]  ;;  %v2266_v33 = vor.u32 %v1967_v25, %v1728_v26 }
   0x9   :  { %238 = vmatpush.bf16.msra.mxu1 %v2216_v16  ;;  %264 = vmatpush.bf16.msra.mxu3 %v2218_v17  ;;  %v2268_v34 = vor.u32 %v1973_v29, %v1742_v27  ;;  %v1962_v35 = vld [vmem:[%s3106_s1 + $0x84] sm:$0xf]  ;;  %v1704_v36 = vld [vmem:[%s3106_s1 + $0x90] sm:$0xf0]  ;;  %v1963_v37 = vld [vmem:[%s3106_s1 + $0x8c] sm:$0xf]  ;;  %v2290_v41 = vor.u32 %v1964_v31, %v1702_v30 }
   0xa   :  { %v1712_v38 = vld [vmem:[%s3106_s1 + $0x98] sm:$0xf0]  ;;  %v1726_v39 = vld [vmem:[%s3106_s1 + $0xa8] sm:$0xf]  ;;  %v1969_v40 = vld [vmem:[%s3106_s1 + $0xb4] sm:$0xf0]  ;;  %v2302_v45 = vor.u32 %v1962_v35, %v1704_v36 }
   0xb   :  { %v2292_v42 = vor.u32 %v1969_v40, %v1726_v39  ;;  %v1686_v43 = vld [vmem:[%s3106_s1 + $0x60] sm:$0xf]  ;;  %v1960_v44 = vld [vmem:[%s3106_s1 + $0x6c] sm:$0xf0]  ;;  %v2304_v46 = vor.u32 %v1963_v37, %v1712_v38  ;;  %v1958_v47 = vld [vmem:[%s3106_s1 + $0x64] sm:$0xf] }
   0xc   :  { %226 = vmatpush.bf16.msra.mxu0 %v2251_v28  ;;  %251 = vmatpush.bf16.msra.mxu2 %v2268_v34  ;;  %v1710_v48 = vld [vmem:[%s3106_s1 + $0x88] sm:$0xf]  ;;  %v1965_v49 = vld [vmem:[%s3106_s1 + $0x94] sm:$0xf0]  ;;  %v1688_v50 = vld [vmem:[%s3106_s1 + $0x70] sm:$0xf0]  ;;  %v2326_v53 = vor.u32 %v1960_v44, %v1686_v43 }
   0xd   :  { %239 = vmatpush.bf16.msra.mxu1 %v2264_v32  ;;  %265 = vmatpush.bf16.msra.mxu3 %v2266_v33  ;;  %v1959_v51 = vld [vmem:[%s3106_s1 + $0x6c] sm:$0xf]  ;;  %v1696_v52 = vld [vmem:[%s3106_s1 + $0x78] sm:$0xf0]  ;;  %v2328_v54 = vor.u32 %v1965_v49, %v1710_v48  ;;  %v1670_v55 = vld [vmem:[%s3106_s1 + $0x40] sm:$0xf]  ;;  %v2338_v57 = vor.u32 %v1958_v47, %v1688_v50 }
   0xe   :  { %v1956_v56 = vld [vmem:[%s3106_s1 + $0x4c] sm:$0xf0]  ;;  %v2340_v58 = vor.u32 %v1959_v51, %v1696_v52  ;;  %v1954_v59 = vld [vmem:[%s3106_s1 + $0x44] sm:$0xf]  ;;  %v1694_v60 = vld [vmem:[%s3106_s1 + $0x68] sm:$0xf] }
   0xf   :  { %v1961_v61 = vld [vmem:[%s3106_s1 + $0x74] sm:$0xf0]  ;;  %v1672_v62 = vld [vmem:[%s3106_s1 + $0x50] sm:$0xf0]  ;;  %v1955_v63 = vld [vmem:[%s3106_s1 + $0x4c] sm:$0xf]  ;;  %v2362_v1 = vor.u32 %v1956_v56, %v1670_v55 }
  0x10   :  { %227 = vmatpush.bf16.msra.mxu0 %v2290_v41  ;;  %252 = vmatpush.bf16.msra.mxu2 %v2292_v42  ;;  %v1680_v0 = vld [vmem:[%s3106_s1 + $0x58] sm:$0xf0]  ;;  %v2364_v2 = vor.u32 %v1961_v61, %v1694_v60  ;;  %v1654_v4 = vld [vmem:[%s3106_s1 + $0x20] sm:$0xf]  ;;  %v1952_v5 = vld [vmem:[%s3106_s1 + $0x2c] sm:$0xf0]  ;;  %v2374_v6 = vor.u32 %v1954_v59, %v1672_v62 }
  0x11   :  { %240 = vmatpush.bf16.msra.mxu1 %v2302_v45  ;;  %266 = vmatpush.bf16.msra.mxu3 %v2304_v46  ;;  %v2376_v9 = vor.u32 %v1955_v63, %v1680_v0  ;;  %v1950_v10 = vld [vmem:[%s3106_s1 + $0x24] sm:$0xf]  ;;  %v1678_v11 = vld [vmem:[%s3106_s1 + $0x48] sm:$0xf]  ;;  %v1957_v13 = vld [vmem:[%s3106_s1 + $0x54] sm:$0xf0]  ;;  %v2398_v19 = vor.u32 %v1952_v5, %v1654_v4 }
  0x12   :  { %v1656_v14 = vld [vmem:[%s3106_s1 + $0x30] sm:$0xf0]  ;;  %v1951_v15 = vld [vmem:[%s3106_s1 + $0x2c] sm:$0xf]  ;;  %v1664_v18 = vld [vmem:[%s3106_s1 + $0x38] sm:$0xf0]  ;;  %v2400_v20 = vor.u32 %v1957_v13, %v1678_v11 }
  0x13   :  { %v1638_v22 = vld [vmem:[%s3106_s1] sm:$0xf]  ;;  %v1948_v23 = vld [vmem:[%s3106_s1 + $0xc] sm:$0xf0]  ;;  %v2410_v24 = vor.u32 %v1950_v10, %v1656_v14  ;;  %v2412_v25 = vor.u32 %v1951_v15, %v1664_v18  ;;  %v1946_v26 = vld [vmem:[%s3106_s1 + $0x4] sm:$0xf] }
  0x14   :  { %228 = vmatpush.bf16.msra.mxu0 %v2326_v53  ;;  %253 = vmatpush.bf16.msra.mxu2 %v2328_v54  ;;  %v1662_v27 = vld [vmem:[%s3106_s1 + $0x28] sm:$0xf]  ;;  %v1953_v29 = vld [vmem:[%s3106_s1 + $0x34] sm:$0xf0]  ;;  %v1640_v30 = vld [vmem:[%s3106_s1 + $0x10] sm:$0xf0]  ;;  %v2434_v36 = vor.u32 %v1948_v23, %v1638_v22 }
  0x15   :  { %241 = vmatpush.bf16.msra.mxu1 %v2338_v57  ;;  %267 = vmatpush.bf16.msra.mxu3 %v2340_v58  ;;  %v1947_v31 = vld [vmem:[%s3106_s1 + $0xc] sm:$0xf]  ;;  %v1648_v35 = vld [vmem:[%s3106_s1 + $0x18] sm:$0xf0]  ;;  %v2436_v37 = vor.u32 %v1953_v29, %v1662_v27  ;;  %v2440_v38 = vor.u32 %v1946_v26, %v1640_v30  ;;  %v1646_v40 = vld [vmem:[%s3106_s1 + $0x8] sm:$0xf] }
  0x16   :  { %v2442_v39 = vor.u32 %v1947_v31, %v1648_v35  ;;  %v1949_v43 = vld [vmem:[%s3106_s1 + $0x14] sm:$0xf0]  ;;  %v2143_v47 = vmov 0.0|0.0   ;;  %v57_v48 = vld [vmem:[%s3107_s0] sm:$0xff]  ;;  %v58_v56 = vld [vmem:[%s3107_s0 + $0x8] sm:$0xff] }
  0x17   :  { %v2454_v44 = vor.u32 %v1949_v43, %v1646_v40  ;;  %v59_v49 = vunpack.c.l.bf16 %v57_v48  ;;  %v60_v50 = vunpack.c.h.bf16 %v57_v48  ;;  %v62_v62 = vunpack.c.h.bf16 %v58_v56 }
  0x18   :  { %229 = vmatpush.bf16.msra.mxu0 %v2362_v1  ;;  %254 = vmatpush.bf16.msra.mxu2 %v2364_v2  ;;  %v61_v22 = vunpack.c.l.bf16 %v58_v56 }
  0x19   :  { %242 = vmatpush.bf16.msra.mxu1 %v2374_v6  ;;  %268 = vmatpush.bf16.msra.mxu3 %v2376_v9 }
  0x1c   :  { %230 = vmatpush.bf16.msra.mxu0 %v2398_v19  ;;  %255 = vmatpush.bf16.msra.mxu2 %v2400_v20 }
  0x1d   :  { %243 = vmatpush.bf16.msra.mxu1 %v2410_v24  ;;  %269 = vmatpush.bf16.msra.mxu3 %v2412_v25 }
  0x20   :  { %231 = vmatpush.bf16.msra.mxu0 %v2434_v36  ;;  %256 = vmatpush.bf16.msra.mxu2 %v2436_v37 }
  0x21   :  { %244 = vmatpush.bf16.msra.mxu1 %v2440_v38  ;;  %270 = vmatpush.bf16.msra.mxu3 %v2442_v39 }
  0x23   :  { %232 = vmatmul.bf16.vlgmr.msra.gmra.mxu0 %v2143_v47 }
  0x24   :  { %352 = vmatpush.bf16.msrb.mxu0 %v2178_v3  ;;  %245 = vmatmul.bf16.vlgmr.msra.gmra.mxu1 %v2143_v47 }
  0x25   :  { %365 = vmatpush.bf16.msrb.mxu1 %v2189_v7  ;;  %391 = vmatpush.bf16.msrb.mxu3 %v2191_v8 }
  0x26   :  { %271 = vmatmul.bf16.vlgmr.msra.gmra.mxu3 %v2143_v47  ;;  %257 = vmatpush.bf16.msra.mxu2 %v2454_v44 }
  0x28   :  { %353 = vmatpush.bf16.msrb.mxu0 %v2203_v12 }
  0x29   :  { %366 = vmatpush.bf16.msrb.mxu1 %v2216_v16  ;;  %392 = vmatpush.bf16.msrb.mxu3 %v2218_v17 }
  0x2a   :  { %378 = vmatpush.bf16.msrb.mxu2 %v2229_v21 }
  0x2b   :  { %258 = vmatmul.bf16.vlgmr.msra.gmra.mxu2 %v2143_v47 }
  0x2c   :  { %354 = vmatpush.bf16.msrb.mxu0 %v2251_v28 }
  0x2d   :  { %367 = vmatpush.bf16.msrb.mxu1 %v2264_v32  ;;  %393 = vmatpush.bf16.msrb.mxu3 %v2266_v33 }
  0x2e   :  { %379 = vmatpush.bf16.msrb.mxu2 %v2268_v34 }
  0x30   :  { %355 = vmatpush.bf16.msrb.mxu0 %v2290_v41 }
  0x31   :  { %368 = vmatpush.bf16.msrb.mxu1 %v2302_v45  ;;  %394 = vmatpush.bf16.msrb.mxu3 %v2304_v46 }
  0x32   :  { %380 = vmatpush.bf16.msrb.mxu2 %v2292_v42 }
  0x34   :  { %356 = vmatpush.bf16.msrb.mxu0 %v2326_v53 }
  0x35   :  { %369 = vmatpush.bf16.msrb.mxu1 %v2338_v57  ;;  %395 = vmatpush.bf16.msrb.mxu3 %v2340_v58 }
  0x36   :  { %381 = vmatpush.bf16.msrb.mxu2 %v2328_v54 }
  0x38   :  { %357 = vmatpush.bf16.msrb.mxu0 %v2362_v1 }
  0x39   :  { %370 = vmatpush.bf16.msrb.mxu1 %v2374_v6  ;;  %396 = vmatpush.bf16.msrb.mxu3 %v2376_v9 }
  0x3a   :  { %382 = vmatpush.bf16.msrb.mxu2 %v2364_v2 }
  0x3c   :  { %358 = vmatpush.bf16.msrb.mxu0 %v2398_v19 }
  0x3d   :  { %371 = vmatpush.bf16.msrb.mxu1 %v2410_v24  ;;  %397 = vmatpush.bf16.msrb.mxu3 %v2412_v25 }
  0x3e   :  { %383 = vmatpush.bf16.msrb.mxu2 %v2400_v20 }
  0x40   :  { %359 = vmatpush.bf16.msrb.mxu0 %v2434_v36 }
  0x41   :  { %372 = vmatpush.bf16.msrb.mxu1 %v2440_v38  ;;  %398 = vmatpush.bf16.msrb.mxu3 %v2442_v39 }
  0x42   :  { %384 = vmatpush.bf16.msrb.mxu2 %v2436_v37 }
  0x44   :  { %481 = vmatpush.bf16.msra.mxu0 %v2178_v3 }
  0x45   :  { %494 = vmatpush.bf16.msra.mxu1 %v2189_v7  ;;  %520 = vmatpush.bf16.msra.mxu3 %v2191_v8 }
  0x46   :  { %385 = vmatpush.bf16.msrb.mxu2 %v2454_v44 }
  0x48   :  { %482 = vmatpush.bf16.msra.mxu0 %v2203_v12 }
  0x49   :  { %495 = vmatpush.bf16.msra.mxu1 %v2216_v16  ;;  %521 = vmatpush.bf16.msra.mxu3 %v2218_v17 }
  0x4a   :  { %507 = vmatpush.bf16.msra.mxu2 %v2229_v21 }
  0x4c   :  { %483 = vmatpush.bf16.msra.mxu0 %v2251_v28 }
  0x4d   :  { %496 = vmatpush.bf16.msra.mxu1 %v2264_v32  ;;  %522 = vmatpush.bf16.msra.mxu3 %v2266_v33 }
  0x4e   :  { %508 = vmatpush.bf16.msra.mxu2 %v2268_v34 }
  0x50   :  { %484 = vmatpush.bf16.msra.mxu0 %v2290_v41 }
  0x51   :  { %497 = vmatpush.bf16.msra.mxu1 %v2302_v45  ;;  %523 = vmatpush.bf16.msra.mxu3 %v2304_v46 }
  0x52   :  { %509 = vmatpush.bf16.msra.mxu2 %v2292_v42 }
  0x54   :  { %485 = vmatpush.bf16.msra.mxu0 %v2326_v53 }
  0x55   :  { %498 = vmatpush.bf16.msra.mxu1 %v2338_v57  ;;  %524 = vmatpush.bf16.msra.mxu3 %v2340_v58 }
  0x56   :  { %510 = vmatpush.bf16.msra.mxu2 %v2328_v54 }
  0x58   :  { %486 = vmatpush.bf16.msra.mxu0 %v2362_v1 }
  0x59   :  { %499 = vmatpush.bf16.msra.mxu1 %v2374_v6  ;;  %525 = vmatpush.bf16.msra.mxu3 %v2376_v9 }
  0x5a   :  { %511 = vmatpush.bf16.msra.mxu2 %v2364_v2 }
  0x5c   :  { %487 = vmatpush.bf16.msra.mxu0 %v2398_v19 }
  0x5d   :  { %500 = vmatpush.bf16.msra.mxu1 %v2410_v24  ;;  %526 = vmatpush.bf16.msra.mxu3 %v2412_v25 }
  0x5e   :  { %512 = vmatpush.bf16.msra.mxu2 %v2400_v20 }
  0x60   :  { %488 = vmatpush.bf16.msra.mxu0 %v2434_v36 }
  0x61   :  { %501 = vmatpush.bf16.msra.mxu1 %v2440_v38  ;;  %527 = vmatpush.bf16.msra.mxu3 %v2442_v39 }
  0x62   :  { %513 = vmatpush.bf16.msra.mxu2 %v2436_v37 }
  0x66   :  { %514 = vmatpush.bf16.msra.mxu2 %v2454_v44 }
  0xa0   :  { %v233_v51 = vpop.f32.mrf.mxu0 }
  0xa1   :  { %v276_v52 = vadd.f32 %v233_v51, %v59_v49  ;;  %v246_v55 = vpop.f32.mrf.mxu1 }
  0xa2   :  { %v277_v59 = vadd.f32 %v246_v55, %v60_v50 }
  0xa3   :  { %v1764_v60 = vmul.f32 -1.442695, %v276_v52 }
  0xa4   :  { %v1765_v61 = vmul.f32 -1.442695, %v277_v59 }
  0xa5   :  { %2015 = vpow2.f32 %v1764_v60 }
  0xa6   :  { %2017 = vpow2.f32 %v1765_v61 }
  0xa8   :  { %v235_v4 = vpop.f32.mrf.mxu0 }
  0xa9   :  { %v272_v63 = vpop.f32.mrf.mxu3  ;;  %v248_v5 = vpop.f32.mrf.mxu1 }
  0xaa   :  { %v279_v0 = vadd.f32 %v272_v63, %v62_v62 }
  0xab   :  { %v2016_v11 = vpop.eup %2015 }
  0xac   :  { %v1766_v10 = vmul.f32 -1.442695, %v279_v0  ;;  %v2018_v14 = vpop.eup %2017  ;;  %v283_v15 = vadd.f32 1.0, %v2016_v11 }
  0xad   :  { %v302_v18 = vadd.f32 1.0, %v2018_v14 }
  0xae   :  { %v259_v13 = vpop.f32.mrf.mxu2  ;;  %2019 = vpow2.f32 %v1766_v10  ;;  %v295_v49 = vand.u32 2147483648, %v283_v15  ;;  %v293_v52 = vand.u32 2147483647, %v283_v15  ;;  %vm289_vm2 = vweird.f32 %v283_v15 }
  0xaf   :  { %2021 = vrcp.f32 %v283_v15  ;;  %v278_v27 = vadd.f32 %v259_v13, %v61_v22  ;;  %v314_v50 = vand.u32 2147483648, %v302_v18  ;;  %v312_v56 = vand.u32 2147483647, %v302_v18 }
  0xb0   :  { %2023 = vrcp.f32 %v302_v18  ;;  %vm308_vm3 = vweird.f32 %v302_v18  ;;  %v296_v63 = vor.u32 1.1754944e-38, %v295_v49  ;;  %vm294_vm5 = vcmp.eq.f32.partialorder %v293_v52, 8.507059e+37 }
  0xb1   :  { %v274_v23 = vpop.f32.mrf.mxu3  ;;  %v315_v4 = vor.u32 1.1754944e-38, %v314_v50  ;;  %vm313_vm7 = vcmp.eq.f32.partialorder %v312_v56, 8.507059e+37 }
  0xb4   :  { %v2020_v26 = vpop.eup %2019 }
  0xb5   :  { %v322_v29 = vadd.f32 1.0, %v2020_v26  ;;  %v2022_v31 = vpop.eup %2021 }
  0xb6   :  { %v261_v30 = vpop.f32.mrf.mxu2  ;;  %v2024_v35 = vpop.eup %2023  ;;  %v285_v40 = vmul.f32 %v2022_v31, %v283_v15  ;;  %vm290_vm0 = vweird.f32 %v2022_v31 }
  0xb7   :  { %2025 = vrcp.f32 %v322_v29  ;;  %v304_v43 = vmul.f32 %v2024_v35, %v302_v18  ;;  %vm309_vm1 = vweird.f32 %v2024_v35  ;;  %vm291_vm4 = vmor %vm289_vm2, %vm290_vm0  ;;  %v334_v18 = vand.u32 2147483648, %v322_v29 }
  0xb8   :  { %2027 = vtanh.f32 %v278_v27  ;;  %v286_v47 = vsub.f32 1.0, %v285_v40  ;;  %vm310_vm6 = vmor %vm308_vm3, %vm309_vm1  ;;  %vm328_vm9 = vweird.f32 %v322_v29  ;;  %v332_v30 = vand.u32 2147483647, %v322_v29 }
  0xb9   :  { %v305_v48 = vsub.f32 1.0, %v304_v43  ;;  %v335_v40 = vor.u32 1.1754944e-38, %v334_v18 }
  0xba   :  { %v287_v51 = vmul.f32 %v2022_v31, %v286_v47  ;;  %vm333_vm11 = vcmp.eq.f32.partialorder %v332_v30, 8.507059e+37 }
  0xbb   :  { %v306_v55 = vmul.f32 %v2024_v35, %v305_v48 }
  0xbc   :  { %v288_v60 = vadd.f32 %v2022_v31, %v287_v51 }
  0xbd   :  { %v2026_v59 = vpop.eup %2025  ;;  %v307_v0 = vadd.f32 %v2024_v35, %v306_v55 }
  0xbe   :  { %v2028_v61 = vpop.eup %2027  ;;  %v324_v62 = vmul.f32 %v2026_v59, %v322_v29  ;;  %v292_v5 = vsel %vm291_vm4, %v2022_v31, %v288_v60  ;;  %vm329_vm8 = vweird.f32 %v2026_v59  ;;  %v1767_v29 = vld [vmem:[%s3107_s0 + $0x10] sm:$0xff] }
  0xbf   :  { %v297_v11 = vsel %vm294_vm5, %v296_v63, %v292_v5  ;;  %v311_v13 = vsel %vm310_vm6, %v2024_v35, %v307_v0  ;;  %vm330_vm10 = vmor %vm328_vm9, %vm329_vm8  ;;  %v348_v49 = vunpack.c.l.bf16 %v1767_v29  ;;  %v349_v50 = vunpack.c.h.bf16 %v1767_v29 }
  0xc0   :  { %v325_v10 = vsub.f32 1.0, %v324_v62  ;;  %v316_v14 = vsel %vm313_vm7, %v315_v4, %v311_v13  ;;  %v339_v22 = vmul.f32 %v2028_v61, %v297_v11 }
  0xc1   :  { %v338_v26 = vmul.f32 0.0, %v316_v14 }
  0xc2   :  { %v326_v23 = vmul.f32 %v2026_v59, %v325_v10 }
  0xc3   :  { %v2527_v27 = vadd.f32 %v339_v22, %v338_v26 }
  0xc4   :  { %v327_v15 = vadd.f32 %v2026_v59, %v326_v23 }
  0xc5   :  { %2029 = vtanh.f32 %v2527_v27 }
  0xc6   :  { %v331_v31 = vsel %vm330_vm10, %v2026_v59, %v327_v15  ;;  %v1768_v59 = vld [vmem:[%s3107_s0 + $0x18] sm:$0xff] }
  0xc7   :  { %v336_v35 = vsel %vm333_vm11, %v335_v40, %v331_v31  ;;  %v351_v62 = vunpack.c.h.bf16 %v1768_v59  ;;  %v350_v18 = vunpack.c.l.bf16 %v1768_v59 }
  0xcb   :  { %v2030_v43 = vpop.eup %2029 }
  0xcc   :  { %v342_v47 = vmul.f32 %v2030_v43, %v336_v35 }
  0xce   :  { %v343_v48 = vpack.c.bf16 %v342_v47, %v342_v47 }
  0xd0   :  { %344 = vst [vmem:[#allocation4] sm:$0xf] %v343_v48  ;;  %360 = vmatmul.bf16.vlgmr.msrb.gmra.mxu0 %v343_v48  ;;  %373 = vmatmul.bf16.vlgmr.msrb.gmra.mxu1 %v343_v48 }
  0xd1   :  { %386 = vmatmul.bf16.vlgmr.msrb.gmra.mxu2 %v343_v48  ;;  %399 = vmatmul.bf16.vlgmr.msrb.gmra.mxu3 %v343_v48 }
  0xd2   :  { %610 = vmatpush.bf16.msrb.mxu0 %v2178_v3  ;;  %623 = vmatpush.bf16.msrb.mxu1 %v2189_v7 }
  0xd3   :  { %636 = vmatpush.bf16.msrb.mxu2 %v2229_v21  ;;  %649 = vmatpush.bf16.msrb.mxu3 %v2191_v8 }
  0xd6   :  { %611 = vmatpush.bf16.msrb.mxu0 %v2203_v12  ;;  %624 = vmatpush.bf16.msrb.mxu1 %v2216_v16 }
  0xd7   :  { %637 = vmatpush.bf16.msrb.mxu2 %v2268_v34  ;;  %650 = vmatpush.bf16.msrb.mxu3 %v2218_v17 }
  0xda   :  { %612 = vmatpush.bf16.msrb.mxu0 %v2251_v28  ;;  %625 = vmatpush.bf16.msrb.mxu1 %v2264_v32 }
  0xdb   :  { %638 = vmatpush.bf16.msrb.mxu2 %v2292_v42  ;;  %651 = vmatpush.bf16.msrb.mxu3 %v2266_v33 }
  0xde   :  { %613 = vmatpush.bf16.msrb.mxu0 %v2290_v41  ;;  %626 = vmatpush.bf16.msrb.mxu1 %v2302_v45 }
  0xdf   :  { %639 = vmatpush.bf16.msrb.mxu2 %v2328_v54  ;;  %652 = vmatpush.bf16.msrb.mxu3 %v2304_v46 }
  0xe2   :  { %614 = vmatpush.bf16.msrb.mxu0 %v2326_v53  ;;  %627 = vmatpush.bf16.msrb.mxu1 %v2338_v57 }
  0xe3   :  { %640 = vmatpush.bf16.msrb.mxu2 %v2364_v2  ;;  %653 = vmatpush.bf16.msrb.mxu3 %v2340_v58 }
  0xe6   :  { %615 = vmatpush.bf16.msrb.mxu0 %v2362_v1  ;;  %628 = vmatpush.bf16.msrb.mxu1 %v2374_v6 }
  0xe7   :  { %641 = vmatpush.bf16.msrb.mxu2 %v2400_v20  ;;  %654 = vmatpush.bf16.msrb.mxu3 %v2376_v9 }
  0xea   :  { %616 = vmatpush.bf16.msrb.mxu0 %v2398_v19  ;;  %629 = vmatpush.bf16.msrb.mxu1 %v2410_v24 }
  0xeb   :  { %642 = vmatpush.bf16.msrb.mxu2 %v2436_v37  ;;  %655 = vmatpush.bf16.msrb.mxu3 %v2412_v25 }
  0xee   :  { %617 = vmatpush.bf16.msrb.mxu0 %v2434_v36  ;;  %630 = vmatpush.bf16.msrb.mxu1 %v2440_v38 }
  0xef   :  { %643 = vmatpush.bf16.msrb.mxu2 %v2454_v44  ;;  %656 = vmatpush.bf16.msrb.mxu3 %v2442_v39 }
 0x14d   :  { %v361_v51 = vpop.f32.mrf.mxu0  ;;  %v374_v52 = vpop.f32.mrf.mxu1 }
 0x14e   :  { %v404_v55 = vadd.f32 %v361_v51, %v348_v49  ;;  %v405_v56 = vadd.f32 %v374_v52, %v349_v50 }
 0x150   :  { %v1769_v60 = vmul.f32 -1.442695, %v404_v55  ;;  %v1770_v61 = vmul.f32 -1.442695, %v405_v56 }
 0x152   :  { %2031 = vpow2.f32 %v1769_v60 }
 0x153   :  { %2033 = vpow2.f32 %v1770_v61 }
 0x154   :  { %v387_v63 = vpop.f32.mrf.mxu2  ;;  %v400_v0 = vpop.f32.mrf.mxu3 }
 0x155   :  { %v407_v4 = vadd.f32 %v400_v0, %v351_v62  ;;  %v363_v5 = vpop.f32.mrf.mxu0  ;;  %v376_v10 = vpop.f32.mrf.mxu1  ;;  %v406_v43 = vadd.f32 %v387_v63, %v350_v18 }
 0x157   :  { %v1771_v11 = vmul.f32 -1.442695, %v407_v4 }
 0x158   :  { %v2032_v13 = vpop.eup %2031 }
 0x159   :  { %v2034_v14 = vpop.eup %2033  ;;  %v411_v22 = vadd.f32 1.0, %v2032_v13  ;;  %2035 = vpow2.f32 %v1771_v11 }
 0x15a   :  { %v430_v23 = vadd.f32 1.0, %v2034_v14 }
 0x15b   :  { %2037 = vrcp.f32 %v411_v22  ;;  %v423_v50 = vand.u32 2147483648, %v411_v22  ;;  %v421_v55 = vand.u32 2147483647, %v411_v22  ;;  %vm417_vm14 = vweird.f32 %v411_v22 }
 0x15c   :  { %2039 = vrcp.f32 %v430_v23  ;;  %v389_v26 = vpop.f32.mrf.mxu2  ;;  %v402_v15 = vpop.f32.mrf.mxu3  ;;  %v442_v51 = vand.u32 2147483648, %v430_v23  ;;  %v440_v60 = vand.u32 2147483647, %v430_v23  ;;  %vm436_vm15 = vweird.f32 %v430_v23 }
 0x15d   :  { %v424_v62 = vor.u32 1.1754944e-38, %v423_v50  ;;  %vm422_vm2 = vcmp.eq.f32.partialorder %v421_v55, 8.507059e+37 }
 0x15e   :  { %v443_v4 = vor.u32 1.1754944e-38, %v442_v51  ;;  %vm441_vm3 = vcmp.eq.f32.partialorder %v440_v60, 8.507059e+37 }
 0x15f   :  { %v2036_v30 = vpop.eup %2035 }
 0x160   :  { %v450_v31 = vadd.f32 1.0, %v2036_v30 }
 0x161   :  { %v2038_v40 = vpop.eup %2037 }
 0x162   :  { %v2040_v35 = vpop.eup %2039  ;;  %v413_v47 = vmul.f32 %v2038_v40, %v411_v22  ;;  %2041 = vrcp.f32 %v450_v31  ;;  %vm418_vm12 = vweird.f32 %v2038_v40  ;;  %vm456_vm5 = vweird.f32 %v450_v31 }
 0x163   :  { %v432_v48 = vmul.f32 %v2040_v35, %v430_v23  ;;  %2043 = vtanh.f32 %v406_v43  ;;  %vm437_vm13 = vweird.f32 %v2040_v35  ;;  %vm419_vm0 = vmor %vm417_vm14, %vm418_vm12  ;;  %v462_v43 = vand.u32 2147483648, %v450_v31 }
 0x164   :  { %v414_v29 = vsub.f32 1.0, %v413_v47  ;;  %vm438_vm1 = vmor %vm436_vm15, %vm437_vm13 }
 0x165   :  { %v433_v49 = vsub.f32 1.0, %v432_v48  ;;  %v463_v48 = vor.u32 1.1754944e-38, %v462_v43 }
 0x166   :  { %v415_v52 = vmul.f32 %v2038_v40, %v414_v29 }
 0x167   :  { %v434_v56 = vmul.f32 %v2040_v35, %v433_v49 }
 0x168   :  { %v2042_v59 = vpop.eup %2041  ;;  %v416_v61 = vadd.f32 %v2038_v40, %v415_v52 }
 0x169   :  { %v435_v63 = vadd.f32 %v2040_v35, %v434_v56  ;;  %v452_v0 = vmul.f32 %v2042_v59, %v450_v31  ;;  %v2044_v10 = vpop.eup %2043  ;;  %vm457_vm4 = vweird.f32 %v2042_v59 }
 0x16a   :  { %v420_v5 = vsel %vm419_vm0, %v2038_v40, %v416_v61  ;;  %v460_v40 = vand.u32 2147483647, %v450_v31  ;;  %vm458_vm6 = vmor %vm456_vm5, %vm457_vm4 }
 0x16b   :  { %v425_v11 = vsel %vm422_vm2, %v424_v62, %v420_v5  ;;  %v439_v13 = vsel %vm438_vm1, %v2040_v35, %v435_v63  ;;  %v453_v14 = vsub.f32 1.0, %v452_v0 }
 0x16c   :  { %v444_v26 = vsel %vm441_vm3, %v443_v4, %v439_v13  ;;  %v467_v15 = vmul.f32 %v2044_v10, %v425_v11  ;;  %vm461_vm7 = vcmp.eq.f32.partialorder %v460_v40, 8.507059e+37 }
 0x16d   :  { %v466_v18 = vmul.f32 %v444_v26, %v2527_v27  ;;  %v454_v30 = vmul.f32 %v2042_v59, %v453_v14  ;;  %v1772_v27 = vld [vmem:[%s3107_s0 + $0x20] sm:$0xff] }
 0x16e   :  { %v477_v31 = vunpack.c.l.bf16 %v1772_v27  ;;  %v478_v51 = vunpack.c.h.bf16 %v1772_v27 }
 0x16f   :  { %v2569_v22 = vadd.f32 %v467_v15, %v466_v18  ;;  %v455_v23 = vadd.f32 %v2042_v59, %v454_v30 }
 0x171   :  { %2045 = vtanh.f32 %v2569_v22  ;;  %v459_v47 = vsel %vm458_vm6, %v2042_v59, %v455_v23  ;;  %v1773_v59 = vld [vmem:[%s3107_s0 + $0x28] sm:$0xff] }
 0x172   :  { %v464_v29 = vsel %vm461_vm7, %v463_v48, %v459_v47  ;;  %v480_v63 = vunpack.c.h.bf16 %v1773_v59  ;;  %v479_v43 = vunpack.c.l.bf16 %v1773_v59 }
 0x177   :  { %v2046_v35 = vpop.eup %2045 }
 0x178   :  { %v470_v49 = vmul.f32 %v2046_v35, %v464_v29 }
 0x17a   :  { %v471_v50 = vpack.c.bf16 %v470_v49, %v470_v49 }
 0x17c   :  { %473 = vst [vmem:[#allocation4 + $0x4] sm:$0xf] %v471_v50  ;;  %489 = vmatmul.bf16.vlgmr.msra.gmra.mxu0 %v471_v50  ;;  %502 = vmatmul.bf16.vlgmr.msra.gmra.mxu1 %v471_v50 }
 0x17d   :  { %515 = vmatmul.bf16.vlgmr.msra.gmra.mxu2 %v471_v50  ;;  %528 = vmatmul.bf16.vlgmr.msra.gmra.mxu3 %v471_v50 }
 0x17e   :  { %739 = vmatpush.bf16.msra.mxu0 %v2178_v3  ;;  %752 = vmatpush.bf16.msra.mxu1 %v2189_v7 }
 0x17f   :  { %765 = vmatpush.bf16.msra.mxu2 %v2229_v21  ;;  %778 = vmatpush.bf16.msra.mxu3 %v2191_v8 }
 0x182   :  { %740 = vmatpush.bf16.msra.mxu0 %v2203_v12  ;;  %753 = vmatpush.bf16.msra.mxu1 %v2216_v16 }
 0x183   :  { %766 = vmatpush.bf16.msra.mxu2 %v2268_v34  ;;  %779 = vmatpush.bf16.msra.mxu3 %v2218_v17 }
 0x186   :  { %741 = vmatpush.bf16.msra.mxu0 %v2251_v28  ;;  %754 = vmatpush.bf16.msra.mxu1 %v2264_v32 }
 0x187   :  { %767 = vmatpush.bf16.msra.mxu2 %v2292_v42  ;;  %780 = vmatpush.bf16.msra.mxu3 %v2266_v33 }
 0x18a   :  { %742 = vmatpush.bf16.msra.mxu0 %v2290_v41  ;;  %755 = vmatpush.bf16.msra.mxu1 %v2302_v45 }
 0x18b   :  { %768 = vmatpush.bf16.msra.mxu2 %v2328_v54  ;;  %781 = vmatpush.bf16.msra.mxu3 %v2304_v46 }
 0x18e   :  { %743 = vmatpush.bf16.msra.mxu0 %v2326_v53  ;;  %756 = vmatpush.bf16.msra.mxu1 %v2338_v57 }
 0x18f   :  { %769 = vmatpush.bf16.msra.mxu2 %v2364_v2  ;;  %782 = vmatpush.bf16.msra.mxu3 %v2340_v58 }
 0x192   :  { %744 = vmatpush.bf16.msra.mxu0 %v2362_v1  ;;  %757 = vmatpush.bf16.msra.mxu1 %v2374_v6 }
 0x193   :  { %770 = vmatpush.bf16.msra.mxu2 %v2400_v20  ;;  %783 = vmatpush.bf16.msra.mxu3 %v2376_v9 }
 0x196   :  { %745 = vmatpush.bf16.msra.mxu0 %v2398_v19  ;;  %758 = vmatpush.bf16.msra.mxu1 %v2410_v24 }
 0x197   :  { %771 = vmatpush.bf16.msra.mxu2 %v2436_v37  ;;  %784 = vmatpush.bf16.msra.mxu3 %v2412_v25 }
 0x19a   :  { %746 = vmatpush.bf16.msra.mxu0 %v2434_v36  ;;  %759 = vmatpush.bf16.msra.mxu1 %v2440_v38 }
 0x19b   :  { %772 = vmatpush.bf16.msra.mxu2 %v2454_v44  ;;  %785 = vmatpush.bf16.msra.mxu3 %v2442_v39 }
 0x1f9   :  { %v490_v52 = vpop.f32.mrf.mxu0  ;;  %v503_v55 = vpop.f32.mrf.mxu1 }
 0x1fa   :  { %v533_v56 = vadd.f32 %v490_v52, %v477_v31  ;;  %v534_v60 = vadd.f32 %v503_v55, %v478_v51 }
 0x1fc   :  { %v1774_v61 = vmul.f32 -1.442695, %v533_v56  ;;  %v1775_v62 = vmul.f32 -1.442695, %v534_v60 }
 0x1fe   :  { %2047 = vpow2.f32 %v1774_v61 }
 0x1ff   :  { %2049 = vpow2.f32 %v1775_v62 }
 0x200   :  { %v516_v0 = vpop.f32.mrf.mxu2  ;;  %v529_v4 = vpop.f32.mrf.mxu3 }
 0x201   :  { %v536_v5 = vadd.f32 %v529_v4, %v480_v63  ;;  %v492_v10 = vpop.f32.mrf.mxu0  ;;  %v505_v11 = vpop.f32.mrf.mxu1  ;;  %v535_v35 = vadd.f32 %v516_v0, %v479_v43 }
 0x203   :  { %v1776_v13 = vmul.f32 -1.442695, %v536_v5 }
 0x204   :  { %v2048_v14 = vpop.eup %2047 }
 0x205   :  { %v2050_v26 = vpop.eup %2049  ;;  %v540_v15 = vadd.f32 1.0, %v2048_v14  ;;  %2051 = vpow2.f32 %v1776_v13 }
 0x206   :  { %v559_v18 = vadd.f32 1.0, %v2050_v26 }
 0x207   :  { %2053 = vrcp.f32 %v540_v15  ;;  %v552_v51 = vand.u32 2147483648, %v540_v15  ;;  %v550_v56 = vand.u32 2147483647, %v540_v15  ;;  %vm546_vm10 = vweird.f32 %v540_v15 }
 0x208   :  { %2055 = vrcp.f32 %v559_v18  ;;  %v518_v30 = vpop.f32.mrf.mxu2  ;;  %v531_v23 = vpop.f32.mrf.mxu3  ;;  %v571_v52 = vand.u32 2147483648, %v559_v18  ;;  %v569_v61 = vand.u32 2147483647, %v559_v18  ;;  %vm565_vm11 = vweird.f32 %v559_v18 }
 0x209   :  { %v553_v63 = vor.u32 1.1754944e-38, %v552_v51  ;;  %vm551_vm14 = vcmp.eq.f32.partialorder %v550_v56, 8.507059e+37 }
 0x20a   :  { %v572_v5 = vor.u32 1.1754944e-38, %v571_v52  ;;  %vm570_vm15 = vcmp.eq.f32.partialorder %v569_v61, 8.507059e+37 }
 0x20b   :  { %v2052_v40 = vpop.eup %2051 }
 0x20c   :  { %v579_v47 = vadd.f32 1.0, %v2052_v40 }
 0x20d   :  { %v2054_v48 = vpop.eup %2053 }
 0x20e   :  { %v2056_v29 = vpop.eup %2055  ;;  %v542_v49 = vmul.f32 %v2054_v48, %v540_v15  ;;  %2057 = vrcp.f32 %v579_v47  ;;  %vm547_vm8 = vweird.f32 %v2054_v48  ;;  %vm585_vm1 = vweird.f32 %v579_v47 }
 0x20f   :  { %v561_v50 = vmul.f32 %v2056_v29, %v559_v18  ;;  %2059 = vtanh.f32 %v535_v35  ;;  %vm566_vm9 = vweird.f32 %v2056_v29  ;;  %vm548_vm12 = vmor %vm546_vm10, %vm547_vm8  ;;  %v591_v35 = vand.u32 2147483648, %v579_v47 }
 0x210   :  { %v543_v27 = vsub.f32 1.0, %v542_v49  ;;  %vm567_vm13 = vmor %vm565_vm11, %vm566_vm9 }
 0x211   :  { %v562_v31 = vsub.f32 1.0, %v561_v50  ;;  %v592_v50 = vor.u32 1.1754944e-38, %v591_v35 }
 0x212   :  { %v544_v55 = vmul.f32 %v2054_v48, %v543_v27 }
 0x213   :  { %v563_v60 = vmul.f32 %v2056_v29, %v562_v31 }
 0x214   :  { %v2058_v59 = vpop.eup %2057  ;;  %v545_v62 = vadd.f32 %v2054_v48, %v544_v55 }
 0x215   :  { %v564_v0 = vadd.f32 %v2056_v29, %v563_v60  ;;  %v581_v4 = vmul.f32 %v2058_v59, %v579_v47  ;;  %v2060_v11 = vpop.eup %2059  ;;  %vm586_vm0 = vweird.f32 %v2058_v59 }
 0x216   :  { %v549_v10 = vsel %vm548_vm12, %v2054_v48, %v545_v62  ;;  %v589_v48 = vand.u32 2147483647, %v579_v47  ;;  %vm587_vm2 = vmor %vm585_vm1, %vm586_vm0 }
 0x217   :  { %v554_v13 = vsel %vm551_vm14, %v553_v63, %v549_v10  ;;  %v568_v14 = vsel %vm567_vm13, %v2056_v29, %v564_v0  ;;  %v582_v26 = vsub.f32 1.0, %v581_v4 }
 0x218   :  { %v573_v30 = vsel %vm570_vm15, %v572_v5, %v568_v14  ;;  %v596_v23 = vmul.f32 %v2060_v11, %v554_v13  ;;  %vm590_vm3 = vcmp.eq.f32.partialorder %v589_v48, 8.507059e+37 }
 0x219   :  { %v595_v43 = vmul.f32 %v573_v30, %v2569_v22  ;;  %v583_v40 = vmul.f32 %v2058_v59, %v582_v26  ;;  %v1777_v22 = vld [vmem:[%s3107_s0 + $0x30] sm:$0xff] }
 0x21a   :  { %v606_v47 = vunpack.c.l.bf16 %v1777_v22  ;;  %v607_v52 = vunpack.c.h.bf16 %v1777_v22 }
 0x21b   :  { %v2611_v15 = vadd.f32 %v596_v23, %v595_v43  ;;  %v584_v18 = vadd.f32 %v2058_v59, %v583_v40 }
 0x21d   :  { %2061 = vtanh.f32 %v2611_v15  ;;  %v588_v49 = vsel %vm587_vm2, %v2058_v59, %v584_v18  ;;  %v1778_v59 = vld [vmem:[%s3107_s0 + $0x38] sm:$0xff] }
 0x21e   :  { %v593_v27 = vsel %vm590_vm3, %v592_v50, %v588_v49  ;;  %v609_v0 = vunpack.c.h.bf16 %v1778_v59  ;;  %v608_v35 = vunpack.c.l.bf16 %v1778_v59 }
 0x223   :  { %v2062_v29 = vpop.eup %2061 }
 0x224   :  { %v599_v31 = vmul.f32 %v2062_v29, %v593_v27 }
 0x226   :  { %v600_v51 = vpack.c.bf16 %v599_v31, %v599_v31 }
 0x228   :  { %602 = vst [vmem:[#allocation4 + $0x8] sm:$0xf] %v600_v51  ;;  %618 = vmatmul.bf16.vlgmr.msrb.gmra.mxu0 %v600_v51  ;;  %631 = vmatmul.bf16.vlgmr.msrb.gmra.mxu1 %v600_v51 }
 0x229   :  { %644 = vmatmul.bf16.vlgmr.msrb.gmra.mxu2 %v600_v51  ;;  %657 = vmatmul.bf16.vlgmr.msrb.gmra.mxu3 %v600_v51 }
 0x22a   :  { %868 = vmatpush.bf16.msrb.mxu0 %v2178_v3  ;;  %881 = vmatpush.bf16.msrb.mxu1 %v2189_v7 }
 0x22b   :  { %894 = vmatpush.bf16.msrb.mxu2 %v2229_v21  ;;  %907 = vmatpush.bf16.msrb.mxu3 %v2191_v8 }
 0x22e   :  { %869 = vmatpush.bf16.msrb.mxu0 %v2203_v12  ;;  %882 = vmatpush.bf16.msrb.mxu1 %v2216_v16 }
 0x22f   :  { %895 = vmatpush.bf16.msrb.mxu2 %v2268_v34  ;;  %908 = vmatpush.bf16.msrb.mxu3 %v2218_v17 }
 0x232   :  { %870 = vmatpush.bf16.msrb.mxu0 %v2251_v28  ;;  %883 = vmatpush.bf16.msrb.mxu1 %v2264_v32 }
 0x233   :  { %896 = vmatpush.bf16.msrb.mxu2 %v2292_v42  ;;  %909 = vmatpush.bf16.msrb.mxu3 %v2266_v33 }
 0x236   :  { %871 = vmatpush.bf16.msrb.mxu0 %v2290_v41  ;;  %884 = vmatpush.bf16.msrb.mxu1 %v2302_v45 }
 0x237   :  { %897 = vmatpush.bf16.msrb.mxu2 %v2328_v54  ;;  %910 = vmatpush.bf16.msrb.mxu3 %v2304_v46 }
 0x23a   :  { %872 = vmatpush.bf16.msrb.mxu0 %v2326_v53  ;;  %885 = vmatpush.bf16.msrb.mxu1 %v2338_v57 }
 0x23b   :  { %898 = vmatpush.bf16.msrb.mxu2 %v2364_v2  ;;  %911 = vmatpush.bf16.msrb.mxu3 %v2340_v58 }
 0x23e   :  { %873 = vmatpush.bf16.msrb.mxu0 %v2362_v1  ;;  %886 = vmatpush.bf16.msrb.mxu1 %v2374_v6 }
 0x23f   :  { %899 = vmatpush.bf16.msrb.mxu2 %v2400_v20  ;;  %912 = vmatpush.bf16.msrb.mxu3 %v2376_v9 }
 0x242   :  { %874 = vmatpush.bf16.msrb.mxu0 %v2398_v19  ;;  %887 = vmatpush.bf16.msrb.mxu1 %v2410_v24 }
 0x243   :  { %900 = vmatpush.bf16.msrb.mxu2 %v2436_v37  ;;  %913 = vmatpush.bf16.msrb.mxu3 %v2412_v25 }
 0x246   :  { %875 = vmatpush.bf16.msrb.mxu0 %v2434_v36  ;;  %888 = vmatpush.bf16.msrb.mxu1 %v2440_v38 }
 0x247   :  { %901 = vmatpush.bf16.msrb.mxu2 %v2454_v44  ;;  %914 = vmatpush.bf16.msrb.mxu3 %v2442_v39 }
 0x2a5   :  { %v619_v55 = vpop.f32.mrf.mxu0  ;;  %v632_v56 = vpop.f32.mrf.mxu1 }
 0x2a6   :  { %v662_v60 = vadd.f32 %v619_v55, %v606_v47  ;;  %v663_v61 = vadd.f32 %v632_v56, %v607_v52 }
 0x2a8   :  { %v1779_v62 = vmul.f32 -1.442695, %v662_v60  ;;  %v1780_v63 = vmul.f32 -1.442695, %v663_v61 }
 0x2aa   :  { %2063 = vpow2.f32 %v1779_v62 }
 0x2ab   :  { %2065 = vpow2.f32 %v1780_v63 }
 0x2ac   :  { %v645_v4 = vpop.f32.mrf.mxu2  ;;  %v658_v5 = vpop.f32.mrf.mxu3 }
 0x2ad   :  { %v665_v10 = vadd.f32 %v658_v5, %v609_v0  ;;  %v621_v11 = vpop.f32.mrf.mxu0  ;;  %v634_v13 = vpop.f32.mrf.mxu1  ;;  %v664_v29 = vadd.f32 %v645_v4, %v608_v35 }
 0x2af   :  { %v1781_v14 = vmul.f32 -1.442695, %v665_v10 }
 0x2b0   :  { %v2064_v26 = vpop.eup %2063 }
 0x2b1   :  { %v2066_v30 = vpop.eup %2065  ;;  %v669_v23 = vadd.f32 1.0, %v2064_v26  ;;  %2067 = vpow2.f32 %v1781_v14 }
 0x2b2   :  { %v688_v43 = vadd.f32 1.0, %v2066_v30 }
 0x2b3   :  { %2069 = vrcp.f32 %v669_v23  ;;  %v681_v52 = vand.u32 2147483648, %v669_v23  ;;  %v679_v60 = vand.u32 2147483647, %v669_v23  ;;  %vm675_vm6 = vweird.f32 %v669_v23 }
 0x2b4   :  { %2071 = vrcp.f32 %v688_v43  ;;  %v647_v40 = vpop.f32.mrf.mxu2  ;;  %v660_v18 = vpop.f32.mrf.mxu3  ;;  %v700_v55 = vand.u32 2147483648, %v688_v43  ;;  %v698_v62 = vand.u32 2147483647, %v688_v43  ;;  %vm694_vm7 = vweird.f32 %v688_v43 }
 0x2b5   :  { %v682_v0 = vor.u32 1.1754944e-38, %v681_v52  ;;  %vm680_vm10 = vcmp.eq.f32.partialorder %v679_v60, 8.507059e+37 }
 0x2b6   :  { %v701_v10 = vor.u32 1.1754944e-38, %v700_v55  ;;  %vm699_vm11 = vcmp.eq.f32.partialorder %v698_v62, 8.507059e+37 }
 0x2b7   :  { %v2068_v48 = vpop.eup %2067 }
 0x2b8   :  { %v708_v49 = vadd.f32 1.0, %v2068_v48 }
 0x2b9   :  { %v2070_v50 = vpop.eup %2069 }
 0x2ba   :  { %v2072_v27 = vpop.eup %2071  ;;  %v671_v31 = vmul.f32 %v2070_v50, %v669_v23  ;;  %2073 = vrcp.f32 %v708_v49  ;;  %vm676_vm4 = vweird.f32 %v2070_v50  ;;  %vm714_vm13 = vweird.f32 %v708_v49 }
 0x2bb   :  { %v690_v51 = vmul.f32 %v2072_v27, %v688_v43  ;;  %2075 = vtanh.f32 %v664_v29  ;;  %vm695_vm5 = vweird.f32 %v2072_v27  ;;  %vm677_vm8 = vmor %vm675_vm6, %vm676_vm4  ;;  %v720_v29 = vand.u32 2147483648, %v708_v49 }
 0x2bc   :  { %v672_v22 = vsub.f32 1.0, %v671_v31  ;;  %vm696_vm9 = vmor %vm694_vm7, %vm695_vm5 }
 0x2bd   :  { %v691_v47 = vsub.f32 1.0, %v690_v51  ;;  %v721_v51 = vor.u32 1.1754944e-38, %v720_v29 }
 0x2be   :  { %v673_v56 = vmul.f32 %v2070_v50, %v672_v22 }
 0x2bf   :  { %v692_v61 = vmul.f32 %v2072_v27, %v691_v47 }
 0x2c0   :  { %v2074_v59 = vpop.eup %2073  ;;  %v674_v63 = vadd.f32 %v2070_v50, %v673_v56 }
 0x2c1   :  { %v693_v4 = vadd.f32 %v2072_v27, %v692_v61  ;;  %v710_v5 = vmul.f32 %v2074_v59, %v708_v49  ;;  %v2076_v13 = vpop.eup %2075  ;;  %vm715_vm12 = vweird.f32 %v2074_v59 }
 0x2c2   :  { %v678_v11 = vsel %vm677_vm8, %v2070_v50, %v674_v63  ;;  %v718_v50 = vand.u32 2147483647, %v708_v49  ;;  %vm716_vm14 = vmor %vm714_vm13, %vm715_vm12 }
 0x2c3   :  { %v683_v14 = vsel %vm680_vm10, %v682_v0, %v678_v11  ;;  %v697_v26 = vsel %vm696_vm9, %v2072_v27, %v693_v4  ;;  %v711_v30 = vsub.f32 1.0, %v710_v5 }
 0x2c4   :  { %v702_v40 = vsel %vm699_vm11, %v701_v10, %v697_v26  ;;  %v725_v18 = vmul.f32 %v2076_v13, %v683_v14  ;;  %vm719_vm15 = vcmp.eq.f32.partialorder %v718_v50, 8.507059e+37 }
 0x2c5   :  { %v724_v35 = vmul.f32 %v702_v40, %v2611_v15  ;;  %v712_v48 = vmul.f32 %v2074_v59, %v711_v30  ;;  %v1782_v15 = vld [vmem:[%s3107_s0 + $0x40] sm:$0xff] }
 0x2c6   :  { %v735_v49 = vunpack.c.l.bf16 %v1782_v15  ;;  %v736_v55 = vunpack.c.h.bf16 %v1782_v15 }
 0x2c7   :  { %v2653_v23 = vadd.f32 %v725_v18, %v724_v35  ;;  %v713_v43 = vadd.f32 %v2074_v59, %v712_v48 }
 0x2c9   :  { %2077 = vtanh.f32 %v2653_v23  ;;  %v717_v31 = vsel %vm716_vm14, %v2074_v59, %v713_v43  ;;  %v1783_v59 = vld [vmem:[%s3107_s0 + $0x48] sm:$0xff] }
 0x2ca   :  { %v722_v22 = vsel %vm719_vm15, %v721_v51, %v717_v31  ;;  %v738_v4 = vunpack.c.h.bf16 %v1783_v59  ;;  %v737_v29 = vunpack.c.l.bf16 %v1783_v59 }
 0x2cf   :  { %v2078_v27 = vpop.eup %2077 }
 0x2d0   :  { %v728_v47 = vmul.f32 %v2078_v27, %v722_v22 }
 0x2d2   :  { %v729_v52 = vpack.c.bf16 %v728_v47, %v728_v47 }
 0x2d4   :  { %731 = vst [vmem:[#allocation4 + $0xc] sm:$0xf] %v729_v52  ;;  %747 = vmatmul.bf16.vlgmr.msra.gmra.mxu0 %v729_v52  ;;  %760 = vmatmul.bf16.vlgmr.msra.gmra.mxu1 %v729_v52 }
 0x2d5   :  { %773 = vmatmul.bf16.vlgmr.msra.gmra.mxu2 %v729_v52  ;;  %786 = vmatmul.bf16.vlgmr.msra.gmra.mxu3 %v729_v52 }
 0x2d6   :  { %997 = vmatpush.bf16.msra.mxu0 %v2178_v3  ;;  %1010 = vmatpush.bf16.msra.mxu1 %v2189_v7 }
 0x2d7   :  { %1023 = vmatpush.bf16.msra.mxu2 %v2229_v21  ;;  %1036 = vmatpush.bf16.msra.mxu3 %v2191_v8 }
 0x2da   :  { %998 = vmatpush.bf16.msra.mxu0 %v2203_v12  ;;  %1011 = vmatpush.bf16.msra.mxu1 %v2216_v16 }
 0x2db   :  { %1024 = vmatpush.bf16.msra.mxu2 %v2268_v34  ;;  %1037 = vmatpush.bf16.msra.mxu3 %v2218_v17 }
 0x2de   :  { %999 = vmatpush.bf16.msra.mxu0 %v2251_v28  ;;  %1012 = vmatpush.bf16.msra.mxu1 %v2264_v32 }
 0x2df   :  { %1025 = vmatpush.bf16.msra.mxu2 %v2292_v42  ;;  %1038 = vmatpush.bf16.msra.mxu3 %v2266_v33 }
 0x2e2   :  { %1000 = vmatpush.bf16.msra.mxu0 %v2290_v41  ;;  %1013 = vmatpush.bf16.msra.mxu1 %v2302_v45 }
 0x2e3   :  { %1026 = vmatpush.bf16.msra.mxu2 %v2328_v54  ;;  %1039 = vmatpush.bf16.msra.mxu3 %v2304_v46 }
 0x2e6   :  { %1001 = vmatpush.bf16.msra.mxu0 %v2326_v53  ;;  %1014 = vmatpush.bf16.msra.mxu1 %v2338_v57 }
 0x2e7   :  { %1027 = vmatpush.bf16.msra.mxu2 %v2364_v2  ;;  %1040 = vmatpush.bf16.msra.mxu3 %v2340_v58 }
 0x2ea   :  { %1002 = vmatpush.bf16.msra.mxu0 %v2362_v1  ;;  %1015 = vmatpush.bf16.msra.mxu1 %v2374_v6 }
 0x2eb   :  { %1028 = vmatpush.bf16.msra.mxu2 %v2400_v20  ;;  %1041 = vmatpush.bf16.msra.mxu3 %v2376_v9 }
 0x2ee   :  { %1003 = vmatpush.bf16.msra.mxu0 %v2398_v19  ;;  %1016 = vmatpush.bf16.msra.mxu1 %v2410_v24 }
 0x2ef   :  { %1029 = vmatpush.bf16.msra.mxu2 %v2436_v37  ;;  %1042 = vmatpush.bf16.msra.mxu3 %v2412_v25 }
 0x2f2   :  { %1004 = vmatpush.bf16.msra.mxu0 %v2434_v36  ;;  %1017 = vmatpush.bf16.msra.mxu1 %v2440_v38 }
 0x2f3   :  { %1030 = vmatpush.bf16.msra.mxu2 %v2454_v44  ;;  %1043 = vmatpush.bf16.msra.mxu3 %v2442_v39 }
 0x351   :  { %v748_v56 = vpop.f32.mrf.mxu0  ;;  %v761_v60 = vpop.f32.mrf.mxu1 }
 0x352   :  { %v791_v61 = vadd.f32 %v748_v56, %v735_v49  ;;  %v792_v62 = vadd.f32 %v761_v60, %v736_v55 }
 0x354   :  { %v1784_v63 = vmul.f32 -1.442695, %v791_v61  ;;  %v1785_v0 = vmul.f32 -1.442695, %v792_v62 }
 0x356   :  { %2079 = vpow2.f32 %v1784_v63 }
 0x357   :  { %2081 = vpow2.f32 %v1785_v0 }
 0x358   :  { %v774_v5 = vpop.f32.mrf.mxu2  ;;  %v787_v10 = vpop.f32.mrf.mxu3 }
 0x359   :  { %v794_v11 = vadd.f32 %v787_v10, %v738_v4  ;;  %v750_v13 = vpop.f32.mrf.mxu0  ;;  %v763_v14 = vpop.f32.mrf.mxu1  ;;  %v793_v27 = vadd.f32 %v774_v5, %v737_v29 }
 0x35b   :  { %v1786_v26 = vmul.f32 -1.442695, %v794_v11 }
 0x35c   :  { %v2080_v30 = vpop.eup %2079 }
 0x35d   :  { %v2082_v40 = vpop.eup %2081  ;;  %v798_v18 = vadd.f32 1.0, %v2080_v30  ;;  %2083 = vpow2.f32 %v1786_v26 }
 0x35e   :  { %v817_v35 = vadd.f32 1.0, %v2082_v40 }
 0x35f   :  { %2085 = vrcp.f32 %v798_v18  ;;  %v810_v55 = vand.u32 2147483648, %v798_v18  ;;  %v808_v61 = vand.u32 2147483647, %v798_v18  ;;  %vm804_vm2 = vweird.f32 %v798_v18 }
 0x360   :  { %2087 = vrcp.f32 %v817_v35  ;;  %v776_v48 = vpop.f32.mrf.mxu2  ;;  %v789_v43 = vpop.f32.mrf.mxu3  ;;  %v829_v56 = vand.u32 2147483648, %v817_v35  ;;  %v827_v63 = vand.u32 2147483647, %v817_v35  ;;  %vm823_vm3 = vweird.f32 %v817_v35 }
 0x361   :  { %v811_v4 = vor.u32 1.1754944e-38, %v810_v55  ;;  %vm809_vm6 = vcmp.eq.f32.partialorder %v808_v61, 8.507059e+37 }
 0x362   :  { %v830_v11 = vor.u32 1.1754944e-38, %v829_v56  ;;  %vm828_vm7 = vcmp.eq.f32.partialorder %v827_v63, 8.507059e+37 }
 0x363   :  { %v2084_v50 = vpop.eup %2083 }
 0x364   :  { %v837_v31 = vadd.f32 1.0, %v2084_v50 }
 0x365   :  { %v2086_v51 = vpop.eup %2085 }
 0x366   :  { %v2088_v22 = vpop.eup %2087  ;;  %v800_v47 = vmul.f32 %v2086_v51, %v798_v18  ;;  %2089 = vrcp.f32 %v837_v31  ;;  %vm805_vm0 = vweird.f32 %v2086_v51  ;;  %vm843_vm9 = vweird.f32 %v837_v31 }
 0x367   :  { %v819_v52 = vmul.f32 %v2088_v22, %v817_v35  ;;  %2091 = vtanh.f32 %v793_v27  ;;  %vm824_vm1 = vweird.f32 %v2088_v22  ;;  %vm806_vm4 = vmor %vm804_vm2, %vm805_vm0  ;;  %v849_v27 = vand.u32 2147483648, %v837_v31 }
 0x368   :  { %v801_v15 = vsub.f32 1.0, %v800_v47  ;;  %vm825_vm5 = vmor %vm823_vm3, %vm824_vm1 }
 0x369   :  { %v820_v49 = vsub.f32 1.0, %v819_v52  ;;  %v850_v52 = vor.u32 1.1754944e-38, %v849_v27 }
 0x36a   :  { %v802_v60 = vmul.f32 %v2086_v51, %v801_v15 }
 0x36b   :  { %v821_v62 = vmul.f32 %v2088_v22, %v820_v49 }
 0x36c   :  { %v2090_v59 = vpop.eup %2089  ;;  %v803_v0 = vadd.f32 %v2086_v51, %v802_v60 }
 0x36d   :  { %v822_v5 = vadd.f32 %v2088_v22, %v821_v62  ;;  %v839_v10 = vmul.f32 %v2090_v59, %v837_v31  ;;  %v2092_v14 = vpop.eup %2091  ;;  %vm844_vm8 = vweird.f32 %v2090_v59 }
 0x36e   :  { %v807_v13 = vsel %vm806_vm4, %v2086_v51, %v803_v0  ;;  %v847_v51 = vand.u32 2147483647, %v837_v31  ;;  %vm845_vm10 = vmor %vm843_vm9, %vm844_vm8 }
 0x36f   :  { %v812_v26 = vsel %vm809_vm6, %v811_v4, %v807_v13  ;;  %v826_v30 = vsel %vm825_vm5, %v2088_v22, %v822_v5  ;;  %v840_v40 = vsub.f32 1.0, %v839_v10 }
 0x370   :  { %v831_v48 = vsel %vm828_vm7, %v830_v11, %v826_v30  ;;  %v854_v43 = vmul.f32 %v2092_v14, %v812_v26  ;;  %vm848_vm11 = vcmp.eq.f32.partialorder %v847_v51, 8.507059e+37 }
 0x371   :  { %v853_v29 = vmul.f32 %v831_v48, %v2653_v23  ;;  %v841_v50 = vmul.f32 %v2090_v59, %v840_v40 }
 0x373   :  { %v2695_v18 = vadd.f32 %v854_v43, %v853_v29  ;;  %v842_v35 = vadd.f32 %v2090_v59, %v841_v50 }
 0x375   :  { %2093 = vtanh.f32 %v2695_v18  ;;  %v846_v47 = vsel %vm845_vm10, %v2090_v59, %v842_v35 }
 0x376   :  { %v851_v15 = vsel %vm848_vm11, %v850_v52, %v846_v47 }
 0x37b   :  { %v2094_v22 = vpop.eup %2093 }
 0x37c   :  { %v857_v49 = vmul.f32 %v2094_v22, %v851_v15 }
 0x37e   :  { %v858_v55 = vpack.c.bf16 %v857_v49, %v857_v49 }
 0x380   :  { %860 = vst [vmem:[#allocation4 + $0x10] sm:$0xf] %v858_v55  ;;  %876 = vmatmul.bf16.vlgmr.msrb.gmra.mxu0 %v858_v55  ;;  %889 = vmatmul.bf16.vlgmr.msrb.gmra.mxu1 %v858_v55 }
 0x381   :  { %902 = vmatmul.bf16.vlgmr.msrb.gmra.mxu2 %v858_v55  ;;  %915 = vmatmul.bf16.vlgmr.msrb.gmra.mxu3 %v858_v55 }
 0x382   :  { %1126 = vmatpush.bf16.msrb.mxu0 %v2178_v3  ;;  %1139 = vmatpush.bf16.msrb.mxu1 %v2189_v7  ;;  %v1787_v3 = vld [vmem:[%s3107_s0 + $0x50] sm:$0xff] }
 0x383   :  { %1152 = vmatpush.bf16.msrb.mxu2 %v2229_v21  ;;  %1165 = vmatpush.bf16.msrb.mxu3 %v2191_v8  ;;  %v864_v7 = vunpack.c.l.bf16 %v1787_v3  ;;  %v865_v8 = vunpack.c.h.bf16 %v1787_v3 }
 0x386   :  { %1127 = vmatpush.bf16.msrb.mxu0 %v2203_v12  ;;  %1140 = vmatpush.bf16.msrb.mxu1 %v2216_v16 }
 0x387   :  { %1153 = vmatpush.bf16.msrb.mxu2 %v2268_v34  ;;  %1166 = vmatpush.bf16.msrb.mxu3 %v2218_v17 }
 0x38a   :  { %1128 = vmatpush.bf16.msrb.mxu0 %v2251_v28  ;;  %1141 = vmatpush.bf16.msrb.mxu1 %v2264_v32  ;;  %v1788_v28 = vld [vmem:[%s3107_s0 + $0x58] sm:$0xff] }
 0x38b   :  { %1154 = vmatpush.bf16.msrb.mxu2 %v2292_v42  ;;  %1167 = vmatpush.bf16.msrb.mxu3 %v2266_v33  ;;  %v867_v34 = vunpack.c.h.bf16 %v1788_v28 }
 0x38e   :  { %1129 = vmatpush.bf16.msrb.mxu0 %v2290_v41  ;;  %1142 = vmatpush.bf16.msrb.mxu1 %v2302_v45 }
 0x38f   :  { %1155 = vmatpush.bf16.msrb.mxu2 %v2328_v54  ;;  %1168 = vmatpush.bf16.msrb.mxu3 %v2304_v46 }
 0x392   :  { %1130 = vmatpush.bf16.msrb.mxu0 %v2326_v53  ;;  %1143 = vmatpush.bf16.msrb.mxu1 %v2338_v57 }
 0x393   :  { %1156 = vmatpush.bf16.msrb.mxu2 %v2364_v2  ;;  %1169 = vmatpush.bf16.msrb.mxu3 %v2340_v58 }
 0x396   :  { %1131 = vmatpush.bf16.msrb.mxu0 %v2362_v1  ;;  %1144 = vmatpush.bf16.msrb.mxu1 %v2374_v6 }
 0x397   :  { %1157 = vmatpush.bf16.msrb.mxu2 %v2400_v20  ;;  %1170 = vmatpush.bf16.msrb.mxu3 %v2376_v9 }
 0x39a   :  { %1132 = vmatpush.bf16.msrb.mxu0 %v2398_v19  ;;  %1145 = vmatpush.bf16.msrb.mxu1 %v2410_v24  ;;  %v866_v19 = vunpack.c.l.bf16 %v1788_v28  ;;  %v1934_v28 = vld [vmem:[%s3108_s2 + $0xf0] sm:$0xf0] }
 0x39b   :  { %1158 = vmatpush.bf16.msrb.mxu2 %v2436_v37  ;;  %1171 = vmatpush.bf16.msrb.mxu3 %v2412_v25 }
 0x39e   :  { %1133 = vmatpush.bf16.msrb.mxu0 %v2434_v36  ;;  %1146 = vmatpush.bf16.msrb.mxu1 %v2440_v38 }
 0x39f   :  { %1159 = vmatpush.bf16.msrb.mxu2 %v2454_v44  ;;  %1172 = vmatpush.bf16.msrb.mxu3 %v2442_v39 }
 0x3fd   :  { %v877_v12 = vpop.f32.mrf.mxu0  ;;  %v890_v16 = vpop.f32.mrf.mxu1 }
 0x3fe   :  { %v920_v17 = vadd.f32 %v877_v12, %v864_v7  ;;  %v921_v21 = vadd.f32 %v890_v16, %v865_v8  ;;  %v1932_v12 = vld [vmem:[%s3108_s2 + $0xe0] sm:$0xf]  ;;  %v2012_v16 = vld [vmem:[%s3108_s2 + $0xec] sm:$0xf0] }
 0x400   :  { %v1789_v32 = vmul.f32 -1.442695, %v920_v17  ;;  %v1790_v33 = vmul.f32 -1.442695, %v921_v21  ;;  %v2010_v17 = vld [vmem:[%s3108_s2 + $0xe4] sm:$0xf]  ;;  %v1933_v21 = vor.u32 %v2012_v16, %v1932_v12 }
 0x402   :  { %2095 = vpow2.f32 %v1789_v32  ;;  %v1940_v32 = vld [vmem:[%s3108_s2 + $0xe8] sm:$0xf] }
 0x403   :  { %2097 = vpow2.f32 %v1790_v33  ;;  %v2013_v33 = vld [vmem:[%s3108_s2 + $0xf4] sm:$0xf0] }
 0x404   :  { %v903_v41 = vpop.f32.mrf.mxu2  ;;  %v916_v42 = vpop.f32.mrf.mxu3 }
 0x405   :  { %v923_v45 = vadd.f32 %v916_v42, %v867_v34  ;;  %v879_v46 = vpop.f32.mrf.mxu0  ;;  %v892_v53 = vpop.f32.mrf.mxu1  ;;  %v922_v36 = vadd.f32 %v903_v41, %v866_v19  ;;  %v1937_v42 = vor.u32 %v2010_v17, %v1934_v28  ;;  %v1868_v28 = vld [vmem:[%s3108_s2 + $0x60] sm:$0xf] }
 0x406   :  { %v2011_v46 = vld [vmem:[%s3108_s2 + $0xec] sm:$0xf]  ;;  %v1942_v53 = vld [vmem:[%s3108_s2 + $0xf8] sm:$0xf0] }
 0x407   :  { %v1791_v54 = vmul.f32 -1.442695, %v923_v45  ;;  %v1941_v45 = vor.u32 %v2013_v33, %v1940_v32 }
 0x408   :  { %v2096_v57 = vpop.eup %2095 }
 0x409   :  { %v2098_v58 = vpop.eup %2097  ;;  %v927_v1 = vadd.f32 1.0, %v2096_v57  ;;  %2099 = vpow2.f32 %v1791_v54 }
 0x40a   :  { %v946_v2 = vadd.f32 1.0, %v2098_v58  ;;  %v2770_v58 = vld [vmem:[%s3107_s0 + $0x68] sm:$0xff] }
 0x40b   :  { %2101 = vrcp.f32 %v927_v1  ;;  %v939_v31 = vand.u32 2147483648, %v927_v1  ;;  %v937_v61 = vand.u32 2147483647, %v927_v1  ;;  %vm933_vm14 = vweird.f32 %v927_v1 }
 0x40c   :  { %2103 = vrcp.f32 %v946_v2  ;;  %v905_v6 = vpop.f32.mrf.mxu2  ;;  %v918_v9 = vpop.f32.mrf.mxu3  ;;  %v958_v56 = vand.u32 2147483648, %v946_v2  ;;  %v956_v63 = vand.u32 2147483647, %v946_v2  ;;  %vm952_vm15 = vweird.f32 %v946_v2 }
 0x40d   :  { %v940_v4 = vor.u32 1.1754944e-38, %v939_v31  ;;  %vm938_vm2 = vcmp.eq.f32.partialorder %v937_v61, 8.507059e+37  ;;  %v2008_v6 = vld [vmem:[%s3108_s2 + $0xcc] sm:$0xf0]  ;;  %v2006_v9 = vld [vmem:[%s3108_s2 + $0xc4] sm:$0xf] }
 0x40e   :  { %v959_v11 = vor.u32 1.1754944e-38, %v958_v56  ;;  %vm957_vm3 = vcmp.eq.f32.partialorder %v956_v63, 8.507059e+37  ;;  %v1926_v31 = vld [vmem:[%s3108_s2 + $0xd8] sm:$0xf0]  ;;  %v1900_v56 = vld [vmem:[%s3108_s2 + $0xa0] sm:$0xf] }
 0x40f   :  { %v2100_v20 = vpop.eup %2099  ;;  %v2002_v63 = vld [vmem:[%s3108_s2 + $0xa4] sm:$0xf] }
 0x410   :  { %v966_v24 = vadd.f32 1.0, %v2100_v20 }
 0x411   :  { %v2102_v25 = vpop.eup %2101 }
 0x412   :  { %v2104_v37 = vpop.eup %2103  ;;  %v929_v38 = vmul.f32 %v2102_v25, %v927_v1  ;;  %2105 = vrcp.f32 %v966_v24  ;;  %vm934_vm12 = vweird.f32 %v2102_v25  ;;  %v978_v51 = vand.u32 2147483648, %v966_v24 }
 0x413   :  { %v948_v39 = vmul.f32 %v2104_v37, %v946_v2  ;;  %2107 = vtanh.f32 %v922_v36  ;;  %vm953_vm13 = vweird.f32 %v2104_v37  ;;  %vm935_vm0 = vmor %vm933_vm14, %vm934_vm12  ;;  %vm972_vm5 = vweird.f32 %v966_v24  ;;  %v1916_v2 = vld [vmem:[%s3108_s2 + $0xc0] sm:$0xf] }
 0x414   :  { %v930_v44 = vsub.f32 1.0, %v929_v38  ;;  %vm954_vm1 = vmor %vm952_vm15, %vm953_vm13  ;;  %v976_v47 = vand.u32 2147483647, %v966_v24  ;;  %v979_v22 = vor.u32 1.1754944e-38, %v978_v51  ;;  %v1945_v1 = vor.u32 %v2011_v46, %v1942_v53  ;;  %v1924_v38 = vld [vmem:[%s3108_s2 + $0xc8] sm:$0xf] }
 0x415   :  { %v949_v23 = vsub.f32 1.0, %v948_v39  ;;  %v996_v36 = vunpack.c.h.bf16 %v2770_v58  ;;  %v2009_v39 = vld [vmem:[%s3108_s2 + $0xd4] sm:$0xf0] }
 0x416   :  { %v931_v60 = vmul.f32 %v2102_v25, %v930_v44  ;;  %vm977_vm7 = vcmp.eq.f32.partialorder %v976_v47, 8.507059e+37  ;;  %v2007_v44 = vld [vmem:[%s3108_s2 + $0xcc] sm:$0xf]  ;;  %v1886_v47 = vld [vmem:[%s3108_s2 + $0x90] sm:$0xf0] }
 0x417   :  { %v950_v62 = vmul.f32 %v2104_v37, %v949_v23  ;;  %v1925_v23 = vor.u32 %v2009_v39, %v1924_v38  ;;  %v1929_v61 = vor.u32 %v2007_v44, %v1926_v31  ;;  %v1854_v39 = vld [vmem:[%s3108_s2 + $0x50] sm:$0xf0]  ;;  %v1860_v44 = vld [vmem:[%s3108_s2 + $0x48] sm:$0xf] }
 0x418   :  { %v2106_v59 = vpop.eup %2105  ;;  %v932_v0 = vadd.f32 %v2102_v25, %v931_v60  ;;  %v2004_v60 = vld [vmem:[%s3108_s2 + $0xac] sm:$0xf0] }
 0x419   :  { %v951_v5 = vadd.f32 %v2104_v37, %v950_v62  ;;  %v968_v10 = vmul.f32 %v2106_v59, %v966_v24  ;;  %v2108_v14 = vpop.eup %2107  ;;  %vm973_vm4 = vweird.f32 %v2106_v59  ;;  %v1917_v24 = vor.u32 %v2008_v6, %v1916_v2  ;;  %v1995_v6 = vld [vmem:[%s3108_s2 + $0x6c] sm:$0xf] }
 0x41a   :  { %v936_v13 = vsel %vm935_vm0, %v2102_v25, %v932_v0  ;;  %vm974_vm6 = vmor %vm972_vm5, %vm973_vm4  ;;  %v1918_v25 = vld [vmem:[%s3108_s2 + $0xd0] sm:$0xf0]  ;;  %v1901_v62 = vor.u32 %v2004_v60, %v1900_v56  ;;  %v1908_v0 = vld [vmem:[%s3108_s2 + $0xa8] sm:$0xf] }
 0x41b   :  { %v941_v26 = vsel %vm938_vm2, %v940_v4, %v936_v13  ;;  %v955_v30 = vsel %vm954_vm1, %v2104_v37, %v951_v5  ;;  %v969_v40 = vsub.f32 1.0, %v968_v10  ;;  %v1921_v37 = vor.u32 %v2006_v9, %v1918_v25  ;;  %v2003_v13 = vld [vmem:[%s3108_s2 + $0xac] sm:$0xf]  ;;  %v1878_v9 = vld [vmem:[%s3108_s2 + $0x78] sm:$0xf0] }
 0x41c   :  { %v960_v48 = vsel %vm957_vm3, %v959_v11, %v955_v30  ;;  %v983_v43 = vmul.f32 %v2108_v14, %v941_v26  ;;  %v2005_v11 = vld [vmem:[%s3108_s2 + $0xb4] sm:$0xf0]  ;;  %v1910_v14 = vld [vmem:[%s3108_s2 + $0xb8] sm:$0xf0]  ;;  %v1992_v25 = vld [vmem:[%s3108_s2 + $0x4c] sm:$0xf0] }
 0x41d   :  { %v982_v29 = vmul.f32 %v960_v48, %v2695_v18  ;;  %v970_v50 = vmul.f32 %v2106_v59, %v969_v40  ;;  %v1792_v18 = vld [vmem:[%s3107_s0 + $0x60] sm:$0xff]  ;;  %v1909_v48 = vor.u32 %v2005_v11, %v1908_v0  ;;  %v1991_v60 = vld [vmem:[%s3108_s2 + $0x4c] sm:$0xf] }
 0x41e   :  { %v993_v7 = vunpack.c.l.bf16 %v1792_v18  ;;  %v994_v8 = vunpack.c.h.bf16 %v1792_v18 }
 0x41f   :  { %v2737_v35 = vadd.f32 %v983_v43, %v982_v29  ;;  %v971_v27 = vadd.f32 %v2106_v59, %v970_v50  ;;  %v1913_v43 = vor.u32 %v2003_v13, %v1910_v14  ;;  %v1884_v29 = vld [vmem:[%s3108_s2 + $0x80] sm:$0xf]  ;;  %v2000_v50 = vld [vmem:[%s3108_s2 + $0x8c] sm:$0xf0]  ;;  %v1986_v14 = vld [vmem:[%s3108_s2 + $0x24] sm:$0xf] }
 0x420   :  { %v1885_v51 = vor.u32 %v2000_v50, %v1884_v29  ;;  %v1844_v29 = vld [vmem:[%s3108_s2 + $0x28] sm:$0xf] }
 0x421   :  { %2109 = vtanh.f32 %v2737_v35  ;;  %v975_v52 = vsel %vm974_vm6, %v2106_v59, %v971_v27  ;;  %v1902_v59 = vld [vmem:[%s3108_s2 + $0xb0] sm:$0xf0]  ;;  %v1998_v27 = vld [vmem:[%s3108_s2 + $0x84] sm:$0xf] }
 0x422   :  { %v980_v49 = vsel %vm977_vm7, %v979_v22, %v975_v52  ;;  %v1905_v10 = vor.u32 %v2002_v63, %v1902_v59  ;;  %v1892_v52 = vld [vmem:[%s3108_s2 + $0x88] sm:$0xf]  ;;  %v2001_v22 = vld [vmem:[%s3108_s2 + $0x94] sm:$0xf0] }
 0x427   :  { %v2110_v15 = vpop.eup %2109 }
 0x428   :  { %v986_v55 = vmul.f32 %v2110_v15, %v980_v49  ;;  %v1889_v49 = vor.u32 %v1998_v27, %v1886_v47  ;;  %v1987_v47 = vld [vmem:[%s3108_s2 + $0x2c] sm:$0xf] }
 0x42a   :  { %v987_v3 = vpack.c.bf16 %v986_v55, %v986_v55  ;;  %v1999_v55 = vld [vmem:[%s3108_s2 + $0x8c] sm:$0xf] }
 0x42c   :  { %989 = vst [vmem:[#allocation4 + $0x14] sm:$0xf] %v987_v3  ;;  %1005 = vmatmul.bf16.vlgmr.msra.gmra.mxu0 %v987_v3  ;;  %1018 = vmatmul.bf16.vlgmr.msra.gmra.mxu1 %v987_v3 }
 0x42d   :  { %1031 = vmatmul.bf16.vlgmr.msra.gmra.mxu2 %v987_v3  ;;  %1044 = vmatmul.bf16.vlgmr.msra.gmra.mxu3 %v987_v3  ;;  %v1894_v3 = vld [vmem:[%s3108_s2 + $0x98] sm:$0xf0] }
 0x42e   :  { %1484 = vmatpush.bf16.msra.mxu0 %v1933_v21  ;;  %1513 = vmatpush.bf16.msra.mxu1 %v1937_v42  ;;  %v1897_v16 = vor.u32 %v1999_v55, %v1894_v3  ;;  %v995_v21 = vunpack.c.l.bf16 %v2770_v58  ;;  %v1994_v42 = vld [vmem:[%s3108_s2 + $0x64] sm:$0xf]  ;;  %v1820_v55 = vld [vmem:[%s3108_s2] sm:$0xf]  ;;  %v1984_v3 = vld [vmem:[%s3108_s2 + $0xc] sm:$0xf0] }
 0x42f   :  { %1542 = vmatpush.bf16.msra.mxu2 %v1941_v45  ;;  %1571 = vmatpush.bf16.msra.mxu3 %v1945_v1  ;;  %v1870_v45 = vld [vmem:[%s3108_s2 + $0x70] sm:$0xf0] }
 0x430   :  { %v1873_v53 = vor.u32 %v1994_v42, %v1870_v45  ;;  %v1983_v45 = vld [vmem:[%s3108_s2 + $0xc] sm:$0xf] }
 0x432   :  { %1485 = vmatpush.bf16.msra.mxu0 %v1917_v24  ;;  %1514 = vmatpush.bf16.msra.mxu1 %v1921_v37  ;;  %v1881_v24 = vor.u32 %v1995_v6, %v1878_v9 }
 0x433   :  { %1543 = vmatpush.bf16.msra.mxu2 %v1925_v23  ;;  %1572 = vmatpush.bf16.msra.mxu3 %v1929_v61  ;;  %v1993_v23 = vld [vmem:[%s3108_s2 + $0x54] sm:$0xf0]  ;;  %v1862_v61 = vld [vmem:[%s3108_s2 + $0x58] sm:$0xf0] }
 0x434   :  { %v1861_v11 = vor.u32 %v1993_v23, %v1860_v44  ;;  %v1865_v13 = vor.u32 %v1991_v60, %v1862_v61  ;;  %v1978_v60 = vld [vmem:[#allocation4] sm:$0xff]  ;;  %v1979_v61 = vld [vmem:[#allocation4 + $0x8] sm:$0xff] }
 0x436   :  { %1486 = vmatpush.bf16.msra.mxu0 %v1901_v62  ;;  %1515 = vmatpush.bf16.msra.mxu1 %v1905_v10  ;;  %v1836_v62 = vld [vmem:[%s3108_s2 + $0x20] sm:$0xf] }
 0x437   :  { %1544 = vmatpush.bf16.msra.mxu2 %v1909_v48  ;;  %1573 = vmatpush.bf16.msra.mxu3 %v1913_v43 }
 0x43a   :  { %1487 = vmatpush.bf16.msra.mxu0 %v1885_v51  ;;  %1516 = vmatpush.bf16.msra.mxu1 %v1889_v49  ;;  %v1989_v51 = vld [vmem:[%s3108_s2 + $0x34] sm:$0xf0] }
 0x43b   :  { %1574 = vmatpush.bf16.msra.mxu3 %v1897_v16  ;;  %v1821_v16 = vor.u32 %v1984_v3, %v1820_v55 }
 0x43e   :  { %1517 = vmatpush.bf16.msra.mxu1 %v1873_v53 }
 0x43f   :  { %1575 = vmatpush.bf16.msra.mxu3 %v1881_v24 }
 0x443   :  { %1576 = vmatpush.bf16.msra.mxu3 %v1865_v13 }
 0x4a9   :  { %v1006_v34 = vpop.f32.mrf.mxu0  ;;  %v1019_v41 = vpop.f32.mrf.mxu1 }
 0x4aa   :  { %v1049_v54 = vadd.f32 %v1006_v34, %v993_v7  ;;  %v1050_v57 = vadd.f32 %v1019_v41, %v994_v8  ;;  %v1893_v7 = vor.u32 %v2001_v22, %v1892_v52  ;;  %v1996_v34 = vld [vmem:[%s3108_s2 + $0x6c] sm:$0xf0]  ;;  %v1846_v52 = vld [vmem:[%s3108_s2 + $0x38] sm:$0xf0] }
 0x4ab   :  { %v1869_v41 = vor.u32 %v1996_v34, %v1868_v28  ;;  %v1849_v49 = vor.u32 %v1987_v47, %v1846_v52  ;;  %v1828_v28 = vld [vmem:[%s3108_s2 + $0x8] sm:$0xf] }
 0x4ac   :  { %v1794_v19 = vmul.f32 -1.442695, %v1049_v54  ;;  %v1795_v20 = vmul.f32 -1.442695, %v1050_v57  ;;  %1545 = vmatpush.bf16.msra.mxu2 %v1893_v7  ;;  %v1876_v54 = vld [vmem:[%s3108_s2 + $0x68] sm:$0xf] }
 0x4ad   :  { %v1997_v57 = vld [vmem:[%s3108_s2 + $0x74] sm:$0xf0]  ;;  %1488 = vmatpush.bf16.msra.mxu0 %v1869_v41  ;;  %1577 = vmatpush.bf16.msra.mxu3 %v1849_v49 }
 0x4ae   :  { %2111 = vpow2.f32 %v1794_v19  ;;  %v1877_v2 = vor.u32 %v1997_v57, %v1876_v54  ;;  %v1852_v19 = vld [vmem:[%s3108_s2 + $0x40] sm:$0xf] }
 0x4af   :  { %2113 = vpow2.f32 %v1795_v20  ;;  %v1853_v38 = vor.u32 %v1992_v25, %v1852_v19 }
 0x4b0   :  { %v1032_v4 = vpop.f32.mrf.mxu2  ;;  %v1045_v5 = vpop.f32.mrf.mxu3  ;;  %1546 = vmatpush.bf16.msra.mxu2 %v1877_v2 }
 0x4b1   :  { %v1052_v26 = vadd.f32 %v1045_v5, %v996_v36  ;;  %v1008_v30 = vpop.f32.mrf.mxu0  ;;  %v1021_v40 = vpop.f32.mrf.mxu1  ;;  %v1051_v1 = vadd.f32 %v1032_v4, %v995_v21  ;;  %v1990_v36 = vld [vmem:[%s3108_s2 + $0x44] sm:$0xf]  ;;  %1489 = vmatpush.bf16.msra.mxu0 %v1853_v38  ;;  %v1988_v4 = vld [vmem:[%s3108_s2 + $0x2c] sm:$0xf0]  ;;  %v1822_v21 = vld [vmem:[%s3108_s2 + $0x10] sm:$0xf0] }
 0x4b2   :  { %v1857_v10 = vor.u32 %v1990_v36, %v1854_v39  ;;  %v1837_v43 = vor.u32 %v1988_v4, %v1836_v62  ;;  %v1797_v62 = vld [vmem:[%s3107_s0 + $0x70] sm:$0xff] }
 0x4b3   :  { %v1796_v15 = vmul.f32 -1.442695, %v1052_v26  ;;  %v1838_v26 = vld [vmem:[%s3108_s2 + $0x30] sm:$0xf0] }
 0x4b4   :  { %v2112_v18 = vpop.eup %2111  ;;  %1518 = vmatpush.bf16.msra.mxu1 %v1857_v10  ;;  %1547 = vmatpush.bf16.msra.mxu2 %v1861_v11  ;;  %v1841_v27 = vor.u32 %v1986_v14, %v1838_v26  ;;  %v1798_v11 = vld [vmem:[%s3107_s0 + $0x78] sm:$0xff] }
 0x4b5   :  { %v2114_v8 = vpop.eup %2113  ;;  %v2845_v12 = vadd.f32 1.0, %v2112_v18  ;;  %2115 = vpow2.f32 %v1796_v15  ;;  %1490 = vmatpush.bf16.msra.mxu0 %v1837_v43  ;;  %v1845_v15 = vor.u32 %v1989_v51, %v1844_v29  ;;  %v1982_v18 = vld [vmem:[%s3108_s2 + $0x4] sm:$0xf]  ;;  %v1125_v26 = vunpack.c.h.bf16 %v1798_v11 }
 0x4b6   :  { %v2847_v17 = vadd.f32 1.0, %v2114_v8  ;;  %v1825_v54 = vor.u32 %v1982_v18, %v1822_v21  ;;  %v1124_v55 = vunpack.c.l.bf16 %v1798_v11 }
 0x4b7   :  { %2117 = vrcp.f32 %v2845_v12  ;;  %v1066_v46 = vand.u32 2147483647, %v2845_v12  ;;  %v1068_v0 = vand.u32 2147483648, %v2845_v12  ;;  %vm1062_vm12 = vweird.f32 %v2845_v12 }
 0x4b8   :  { %2119 = vrcp.f32 %v2847_v17  ;;  %v1034_v32 = vpop.f32.mrf.mxu2  ;;  %v1047_v33 = vpop.f32.mrf.mxu3  ;;  %v1087_v59 = vand.u32 2147483648, %v2847_v17  ;;  %v1085_v48 = vand.u32 2147483647, %v2847_v17  ;;  %vm1081_vm11 = vweird.f32 %v2847_v17  ;;  %1519 = vmatpush.bf16.msra.mxu1 %v1841_v27  ;;  %1548 = vmatpush.bf16.msra.mxu2 %v1845_v15  ;;  %v1290_v27 = vld [vmem:[%s3109_s3] sm:$0xf] }
 0x4b9   :  { %vm2926_vm8 = vcmp.eq.f32.partialorder %v1066_v46, 8.507059e+37  ;;  %v1985_v32 = vld [vmem:[%s3108_s2 + $0x14] sm:$0xf0]  ;;  %v1069_v41 = vor.u32 1.1754944e-38, %v1068_v0  ;;  %v1830_v46 = vld [vmem:[%s3108_s2 + $0x18] sm:$0xf0]  ;;  %1491 = vmatpush.bf16.msra.mxu0 %v1821_v16 }
 0x4ba   :  { %v1088_v34 = vor.u32 1.1754944e-38, %v1087_v59  ;;  %vm1086_vm15 = vcmp.eq.f32.partialorder %v1085_v48, 8.507059e+37  ;;  %v1829_v57 = vor.u32 %v1985_v32, %v1828_v28  ;;  %v1833_v6 = vor.u32 %v1983_v45, %v1830_v46 }
 0x4bb   :  { %v2116_v58 = vpop.eup %2115  ;;  %v1123_v59 = vunpack.c.h.bf16 %v1797_v62  ;;  %v3004_v15 = vperm.slane %v1290_v27, 0  ;;  %v3006_v49 = vperm.slane %v1290_v27, 1  ;;  %v3019_v46 = vperm.slane %v1290_v27, 3 }
 0x4bc   :  { %v2880_v20 = vadd.f32 1.0, %v2116_v58  ;;  %1520 = vmatpush.bf16.msra.mxu1 %v1825_v54  ;;  %1549 = vmatpush.bf16.msra.mxu2 %v1829_v57 }
 0x4bd   :  { %v2888_v37 = vpop.eup %2117  ;;  %1578 = vmatpush.bf16.msra.mxu3 %v1833_v6 }
 0x4be   :  { %v2899_v31 = vpop.eup %2119  ;;  %v1058_v56 = vmul.f32 %v2888_v37, %v2845_v12  ;;  %2121 = vrcp.f32 %v2880_v20  ;;  %vm1063_vm9 = vweird.f32 %v2888_v37  ;;  %vm1101_vm1 = vweird.f32 %v2880_v20 }
 0x4bf   :  { %v1077_v63 = vmul.f32 %v2899_v31, %v2847_v17  ;;  %2123 = vtanh.f32 %v1051_v1  ;;  %vm1082_vm10 = vweird.f32 %v2899_v31  ;;  %vm1064_vm13 = vmor %vm1062_vm12, %vm1063_vm9  ;;  %v1105_v38 = vand.u32 2147483647, %v2880_v20 }
 0x4c0   :  { %v1059_v5 = vsub.f32 1.0, %v1058_v56  ;;  %vm1083_vm14 = vmor %vm1081_vm11, %vm1082_vm10 }
 0x4c1   :  { %v1078_v30 = vsub.f32 1.0, %v1077_v63  ;;  %vm1106_vm3 = vcmp.eq.f32.partialorder %v1105_v38, 8.507059e+37  ;;  %v1122_v63 = vunpack.c.l.bf16 %v1797_v62 }
 0x4c2   :  { %v1060_v50 = vmul.f32 %v2888_v37, %v1059_v5 }
 0x4c3   :  { %v1079_v22 = vmul.f32 %v2899_v31, %v1078_v30 }
 0x4c4   :  { %v2122_v7 = vpop.eup %2121  ;;  %v1061_v8 = vadd.f32 %v2888_v37, %v1060_v50 }
 0x4c5   :  { %v2124_v33 = vpop.eup %2123  ;;  %v1080_v12 = vadd.f32 %v2899_v31, %v1079_v22  ;;  %v1097_v42 = vmul.f32 %v2122_v7, %v2880_v20  ;;  %vm1102_vm0 = vweird.f32 %v2122_v7 }
 0x4c6   :  { %v1065_v53 = vsel %vm1064_vm13, %v2888_v37, %v1061_v8  ;;  %v1107_v37 = vand.u32 2147483648, %v2880_v20  ;;  %vm1103_vm2 = vmor %vm1101_vm1, %vm1102_vm0  ;;  %v1980_v20 = vld [vmem:[#allocation4 + $0x10] sm:$0xff] }
 0x4c7   :  { %v1070_v58 = vsel %vm2926_vm8, %v1069_v41, %v1065_v53  ;;  %v1084_v1 = vsel %vm1083_vm14, %v2899_v31, %v1080_v12  ;;  %v1098_v2 = vsub.f32 1.0, %v1097_v42  ;;  %v3013_v12 = vperm.slane %v1290_v27, 2 }
 0x4c8   :  { %v1089_v9 = vsel %vm1086_vm15, %v1088_v34, %v1084_v1  ;;  %v1112_v19 = vmul.f32 %v2124_v33, %v1070_v58  ;;  %v1108_v44 = vor.u32 1.1754944e-38, %v1107_v37 }
 0x4c9   :  { %v1111_v17 = vmul.f32 %v1089_v9, %v2737_v35  ;;  %v1099_v24 = vmul.f32 %v2122_v7, %v1098_v2 }
 0x4cb   :  { %v2987_v25 = vadd.f32 %v1112_v19, %v1111_v17  ;;  %v1100_v36 = vadd.f32 %v2122_v7, %v1099_v24 }
 0x4cd   :  { %2125 = vtanh.f32 %v2987_v25  ;;  %v1104_v39 = vsel %vm1103_vm2, %v2122_v7, %v1100_v36 }
 0x4ce   :  { %v1109_v23 = vsel %vm1106_vm3, %v1108_v44, %v1104_v39 }
 0x4d3   :  { %v2126_v35 = vpop.eup %2125 }
 0x4d4   :  { %v1115_v31 = vmul.f32 %v2126_v35, %v1109_v23 }
 0x4d6   :  { %v1116_v56 = vpack.c.bf16 %v1115_v31, %v1115_v31 }
 0x4d8   :  { %1118 = vst [vmem:[#allocation4 + $0x18] sm:$0xf] %v1116_v56  ;;  %1134 = vmatmul.bf16.vlgmr.msrb.gmra.mxu0 %v1116_v56  ;;  %1147 = vmatmul.bf16.vlgmr.msrb.gmra.mxu1 %v1116_v56 }
 0x4d9   :  { %1160 = vmatmul.bf16.vlgmr.msrb.gmra.mxu2 %v1116_v56  ;;  %1173 = vmatmul.bf16.vlgmr.msrb.gmra.mxu3 %v1116_v56 }
 0x4e8   :  { %1492 = vmatmul.bf16.vlgmr.msra.gmra.mxu0 %v1978_v60  ;;  %1521 = vmatmul.bf16.vlgmr.msra.gmra.mxu1 %v1978_v60 }
 0x4e9   :  { %1550 = vmatmul.bf16.vlgmr.msra.gmra.mxu2 %v1978_v60  ;;  %1579 = vmatmul.bf16.vlgmr.msra.gmra.mxu3 %v1978_v60 }
 0x4f8   :  { %1497 = vmatmul.bf16.gmra.mxu0 %v1979_v61  ;;  %1526 = vmatmul.bf16.gmra.mxu1 %v1979_v61 }
 0x4f9   :  { %1555 = vmatmul.bf16.gmra.mxu2 %v1979_v61  ;;  %1584 = vmatmul.bf16.gmra.mxu3 %v1979_v61 }
 0x508   :  { %1502 = vmatmul.bf16.gmra.mxu0 %v1980_v20  ;;  %1531 = vmatmul.bf16.gmra.mxu1 %v1980_v20 }
 0x509   :  { %1560 = vmatmul.bf16.gmra.mxu2 %v1980_v20  ;;  %1589 = vmatmul.bf16.gmra.mxu3 %v1980_v20 }
 0x555   :  { %v1135_v0 = vpop.f32.mrf.mxu0  ;;  %v1148_v4 = vpop.f32.mrf.mxu1 }
 0x556   :  { %v1178_v5 = vadd.f32 %v1135_v0, %v1122_v63  ;;  %v1179_v10 = vadd.f32 %v1148_v4, %v1123_v59 }
 0x558   :  { %v1799_v13 = vmul.f32 -1.442695, %v1178_v5  ;;  %v1800_v14 = vmul.f32 -1.442695, %v1179_v10 }
 0x55a   :  { %2127 = vpow2.f32 %v1799_v13 }
 0x55b   :  { %2129 = vpow2.f32 %v1800_v14 }
 0x55c   :  { %v1161_v30 = vpop.f32.mrf.mxu2  ;;  %v1174_v40 = vpop.f32.mrf.mxu3 }
 0x55d   :  { %v1181_v48 = vadd.f32 %v1174_v40, %v1125_v26  ;;  %v1137_v43 = vpop.f32.mrf.mxu0  ;;  %v1150_v29 = vpop.f32.mrf.mxu1  ;;  %v1180_v32 = vadd.f32 %v1161_v30, %v1124_v55 }
 0x55f   :  { %v1801_v50 = vmul.f32 -1.442695, %v1181_v48 }
 0x560   :  { %v2128_v51 = vpop.eup %2127 }
 0x561   :  { %v2130_v47 = vpop.eup %2129  ;;  %v1185_v52 = vadd.f32 1.0, %v2128_v51  ;;  %2131 = vpow2.f32 %v1801_v50 }
 0x562   :  { %v3002_v22 = vadd.f32 1.0, %v2130_v47 }
 0x563   :  { %2133 = vrcp.f32 %v1185_v52  ;;  %v1195_v57 = vand.u32 2147483647, %v1185_v52  ;;  %v1197_v58 = vand.u32 2147483648, %v1185_v52  ;;  %vm1191_vm6 = vweird.f32 %v1185_v52 }
 0x564   :  { %2135 = vrcp.f32 %v3002_v22  ;;  %v1163_v3 = vpop.f32.mrf.mxu2  ;;  %v1176_v18 = vpop.f32.mrf.mxu3  ;;  %v1216_v9 = vand.u32 2147483648, %v3002_v22  ;;  %v1214_v35 = vand.u32 2147483647, %v3002_v22  ;;  %vm1210_vm7 = vweird.f32 %v3002_v22 }
 0x565   :  { %v1493_v7 = vpop.f32.mrf.mxu0  ;;  %v1522_v8 = vpop.f32.mrf.mxu1  ;;  %v1198_v61 = vor.u32 1.1754944e-38, %v1197_v58  ;;  %vm1196_vm10 = vcmp.eq.f32.partialorder %v1195_v57, 8.507059e+37 }
 0x566   :  { %v1494_v16 = vadd.f32 %v1493_v7, %v3004_v15  ;;  %v1523_v21 = vadd.f32 %v1522_v8, %v3006_v49  ;;  %v1217_v59 = vor.u32 1.1754944e-38, %v1216_v9  ;;  %vm1215_vm11 = vcmp.eq.f32.partialorder %v1214_v35, 8.507059e+37 }
 0x567   :  { %v2132_v28 = vpop.eup %2131 }
 0x568   :  { %v3011_v33 = vadd.f32 1.0, %v2132_v28  ;;  %v1600_v34 = vpack.c.bf16 %v1523_v21, %v1494_v16 }
 0x569   :  { %v2134_v41 = vpop.eup %2133 }
 0x56a   :  { %v2136_v42 = vpop.eup %2135  ;;  %v1187_v45 = vmul.f32 %v2134_v41, %v1185_v52  ;;  %2137 = vrcp.f32 %v3011_v33  ;;  %1616 = vst [vmem:[%s3110_s4] sm:$0xff] %v1600_v34  ;;  %vm1192_vm4 = vweird.f32 %v2134_v41  ;;  %v1236_v3 = vand.u32 2147483648, %v3011_v33 }
 0x56b   :  { %v1206_v53 = vmul.f32 %v2136_v42, %v3002_v22  ;;  %2139 = vtanh.f32 %v1180_v32  ;;  %vm1211_vm5 = vweird.f32 %v2136_v42  ;;  %vm1193_vm8 = vmor %vm1191_vm6, %vm1192_vm4  ;;  %vm1230_vm13 = vweird.f32 %v3011_v33 }
 0x56c   :  { %v1188_v54 = vsub.f32 1.0, %v1187_v45  ;;  %v1551_v1 = vpop.f32.mrf.mxu2  ;;  %v1580_v2 = vpop.f32.mrf.mxu3  ;;  %vm1212_vm9 = vmor %vm1210_vm7, %vm1211_vm5  ;;  %v1237_v16 = vor.u32 1.1754944e-38, %v1236_v3 }
 0x56d   :  { %v1207_v6 = vsub.f32 1.0, %v1206_v53  ;;  %v1552_v19 = vadd.f32 %v1551_v1, %v3013_v12  ;;  %v1495_v17 = vpop.f32.mrf.mxu0  ;;  %v1524_v24 = vpop.f32.mrf.mxu1  ;;  %v1581_v37 = vadd.f32 %v1580_v2, %v3019_v46 }
 0x56e   :  { %v1189_v36 = vmul.f32 %v2134_v41, %v1188_v54  ;;  %v1496_v38 = vadd.f32 %v1495_v17, %v3004_v15  ;;  %v1525_v39 = vadd.f32 %v1524_v24, %v3006_v49 }
 0x56f   :  { %v1208_v44 = vmul.f32 %v2136_v42, %v1207_v6  ;;  %v1601_v56 = vpack.c.bf16 %v1581_v37, %v1552_v19 }
 0x570   :  { %v2138_v23 = vpop.eup %2137  ;;  %v1190_v31 = vadd.f32 %v2134_v41, %v1189_v36  ;;  %v1602_v60 = vpack.c.bf16 %v1525_v39, %v1496_v38 }
 0x571   :  { %v1209_v20 = vadd.f32 %v2136_v42, %v1208_v44  ;;  %v1226_v62 = vmul.f32 %v2138_v23, %v3011_v33  ;;  %v2140_v63 = vpop.eup %2139  ;;  %1617 = vst [vmem:[%s3110_s4 + $0x8] sm:$0xff] %v1601_v56  ;;  %vm1231_vm12 = vweird.f32 %v2138_v23 }
 0x572   :  { %v1194_v0 = vsel %vm1193_vm8, %v2134_v41, %v1190_v31  ;;  %1618 = vst [vmem:[%s3110_s4 + $0x10] sm:$0xff] %v1602_v60  ;;  %vm1232_vm14 = vmor %vm1230_vm13, %vm1231_vm12 }
 0x573   :  { %v1199_v4 = vsel %vm1196_vm10, %v1198_v61, %v1194_v0  ;;  %v1213_v5 = vsel %vm1212_vm9, %v2136_v42, %v1209_v20  ;;  %v1227_v10 = vsub.f32 1.0, %v1226_v62 }
 0x574   :  { %v1218_v11 = vsel %vm1215_vm11, %v1217_v59, %v1213_v5  ;;  %v1241_v13 = vmul.f32 %v2140_v63, %v1199_v4  ;;  %v1553_v14 = vpop.f32.mrf.mxu2  ;;  %v1582_v26 = vpop.f32.mrf.mxu3 }
 0x575   :  { %v1240_v30 = vmul.f32 %v1218_v11, %v2987_v25  ;;  %v1228_v40 = vmul.f32 %v2138_v23, %v1227_v10  ;;  %v1554_v48 = vadd.f32 %v1553_v14, %v3013_v12  ;;  %v1583_v43 = vadd.f32 %v1582_v26, %v3019_v46  ;;  %v1498_v29 = vpop.f32.mrf.mxu0  ;;  %v1527_v50 = vpop.f32.mrf.mxu1 }
 0x576   :  { %v1499_v27 = vadd.f32 %v1498_v29, %v3004_v15  ;;  %v1528_v51 = vadd.f32 %v1527_v50, %v3006_v49  ;;  %v1234_v25 = vand.u32 2147483647, %v3011_v33 }
 0x577   :  { %v1242_v47 = vadd.f32 %v1241_v13, %v1240_v30  ;;  %v1603_v52 = vpack.c.bf16 %v1583_v43, %v1554_v48  ;;  %v1229_v22 = vadd.f32 %v2138_v23, %v1228_v40 }
 0x578   :  { %v1604_v55 = vpack.c.bf16 %v1528_v51, %v1499_v27  ;;  %vm1235_vm15 = vcmp.eq.f32.partialorder %v1234_v25, 8.507059e+37 }
 0x579   :  { %2141 = vtanh.f32 %v1242_v47  ;;  %1619 = vst [vmem:[%s3110_s4 + $0x18] sm:$0xff] %v1603_v52  ;;  %v1233_v18 = vsel %vm1232_vm14, %v2138_v23, %v1229_v22 }
 0x57a   :  { %1620 = vst [vmem:[%s3110_s4 + $0x20] sm:$0xff] %v1604_v55  ;;  %v1238_v45 = vsel %vm1235_vm15, %v1237_v16, %v1233_v18 }
 0x57c   :  { %v1556_v7 = vpop.f32.mrf.mxu2  ;;  %v1585_v8 = vpop.f32.mrf.mxu3 }
 0x57d   :  { %v1557_v21 = vadd.f32 %v1556_v7, %v3013_v12  ;;  %v1586_v28 = vadd.f32 %v1585_v8, %v3019_v46  ;;  %v1500_v32 = vpop.f32.mrf.mxu0  ;;  %v1529_v34 = vpop.f32.mrf.mxu1 }
 0x57e   :  { %v1501_v41 = vadd.f32 %v1500_v32, %v3004_v15  ;;  %v1530_v33 = vadd.f32 %v1529_v34, %v3006_v49 }
 0x57f   :  { %v2142_v42 = vpop.eup %2141  ;;  %v1605_v53 = vpack.c.bf16 %v1586_v28, %v1557_v21 }
 0x580   :  { %v1244_v54 = vmul.f32 %v2142_v42, %v1238_v45  ;;  %v1606_v57 = vpack.c.bf16 %v1530_v33, %v1501_v41 }
 0x581   :  { %1621 = vst [vmem:[%s3110_s4 + $0x28] sm:$0xff] %v1605_v53 }
 0x582   :  { %v1245_v58 = vpack.c.bf16 %v1244_v54, %v1244_v54  ;;  %1622 = vst [vmem:[%s3110_s4 + $0x30] sm:$0xff] %v1606_v57 }
 0x584   :  { %1247 = vst [vmem:[#allocation4 + $0x1c] sm:$0xf] %v1245_v58  ;;  %v1558_v1 = vpop.f32.mrf.mxu2  ;;  %v1587_v2 = vpop.f32.mrf.mxu3 }
 0x585   :  { %v1559_v6 = vadd.f32 %v1558_v1, %v3013_v12  ;;  %v1588_v9 = vadd.f32 %v1587_v2, %v3019_v46  ;;  %v1503_v19 = vpop.f32.mrf.mxu0  ;;  %v1532_v17 = vpop.f32.mrf.mxu1 }
 0x586   :  { %v1504_v24 = vadd.f32 %v1503_v19, %v3004_v15  ;;  %v1533_v36 = vadd.f32 %v1532_v17, %v3006_v49 }
 0x587   :  { %v1607_v37 = vpack.c.bf16 %v1588_v9, %v1559_v6 }
 0x588   :  { %v1608_v38 = vpack.c.bf16 %v1533_v36, %v1504_v24 }
 0x589   :  { %1623 = vst [vmem:[%s3110_s4 + $0x38] sm:$0xff] %v1607_v37 }
 0x58a   :  { %1624 = vst [vmem:[%s3110_s4 + $0x40] sm:$0xff] %v1608_v38 }
 0x58b   :  { %v1981_v39 = vld [vmem:[#allocation4 + $0x18] sm:$0xff] }
 0x58c   :  { %v1561_v44 = vpop.f32.mrf.mxu2  ;;  %v1590_v35 = vpop.f32.mrf.mxu3  ;;  %1507 = vmatmul.bf16.gmra.mxu0 %v1981_v39  ;;  %1536 = vmatmul.bf16.gmra.mxu1 %v1981_v39 }
 0x58d   :  { %v1562_v23 = vadd.f32 %v1561_v44, %v3013_v12  ;;  %v1591_v31 = vadd.f32 %v1590_v35, %v3019_v46  ;;  %v1505_v56 = vpop.f32.mrf.mxu0  ;;  %v1534_v60 = vpop.f32.mrf.mxu1  ;;  %1565 = vmatmul.bf16.gmra.mxu2 %v1981_v39  ;;  %1594 = vmatmul.bf16.gmra.mxu3 %v1981_v39 }
 0x58e   :  { %v1506_v61 = vadd.f32 %v1505_v56, %v3004_v15  ;;  %v1535_v20 = vadd.f32 %v1534_v60, %v3006_v49 }
 0x58f   :  { %v1609_v62 = vpack.c.bf16 %v1591_v31, %v1562_v23 }
 0x590   :  { %v1610_v63 = vpack.c.bf16 %v1535_v20, %v1506_v61 }
 0x591   :  { %1625 = vst [vmem:[%s3110_s4 + $0x48] sm:$0xff] %v1609_v62 }
 0x592   :  { %1626 = vst [vmem:[%s3110_s4 + $0x50] sm:$0xff] %v1610_v63 }
 0x594   :  { %v1563_v59 = vpop.f32.mrf.mxu2  ;;  %v1592_v0 = vpop.f32.mrf.mxu3 }
 0x595   :  { %v1564_v4 = vadd.f32 %v1563_v59, %v3013_v12  ;;  %v1593_v5 = vadd.f32 %v1592_v0, %v3019_v46 }
 0x597   :  { %v1611_v10 = vpack.c.bf16 %v1593_v5, %v1564_v4 }
 0x599   :  { %1627 = vst [vmem:[%s3110_s4 + $0x58] sm:$0xff] %v1611_v10 }
 0x609   :  { %v1508_v11 = vpop.f32.mrf.mxu0  ;;  %v1537_v13 = vpop.f32.mrf.mxu1 }
 0x60a   :  { %v1509_v14 = vadd.f32 %v1508_v11, %v3004_v15  ;;  %v1538_v26 = vadd.f32 %v1537_v13, %v3006_v49 }
 0x60c   :  { %v1612_v30 = vpack.c.bf16 %v1538_v26, %v1509_v14 }
 0x60e   :  { %1628 = vst [vmem:[%s3110_s4 + $0x60] sm:$0xff] %v1612_v30 }
 0x610   :  { %v1566_v40 = vpop.f32.mrf.mxu2  ;;  %v1595_v48 = vpop.f32.mrf.mxu3 }
 0x611   :  { %v1567_v43 = vadd.f32 %v1566_v40, %v3013_v12  ;;  %v1596_v29 = vadd.f32 %v1595_v48, %v3019_v46  ;;  %v1510_v50 = vpop.f32.mrf.mxu0  ;;  %v1539_v27 = vpop.f32.mrf.mxu1 }
 0x612   :  { %v1511_v51 = vadd.f32 %v1510_v50, %v3004_v15  ;;  %v1540_v47 = vadd.f32 %v1539_v27, %v3006_v49 }
 0x613   :  { %v1613_v52 = vpack.c.bf16 %v1596_v29, %v1567_v43 }
 0x614   :  { %v1614_v22 = vpack.c.bf16 %v1540_v47, %v1511_v51 }
 0x615   :  { %1629 = vst [vmem:[%s3110_s4 + $0x68] sm:$0xff] %v1613_v52 }
 0x616   :  { %1630 = vst [vmem:[%s3110_s4 + $0x70] sm:$0xff] %v1614_v22 }
 0x618   :  { %v1568_v55 = vpop.f32.mrf.mxu2  ;;  %v1597_v3 = vpop.f32.mrf.mxu3 }
 0x619   :  { %v1569_v25 = vadd.f32 %v1568_v55, %v3013_v12  ;;  %v1598_v18 = vadd.f32 %v1597_v3, %v3019_v46 }
 0x61b   :  { %v1615_v7 = vpack.c.bf16 %v1598_v18, %v1569_v25 }
 0x61d   :  { %1631 = vst [vmem:[%s3110_s4 + $0x78] sm:$0xff] %v1615_v7 }

</bundles_post_ra>
